<compile_context>
chip_gen: v6e
topology: v6e:2x2x1
jax: 0.10.0
libtpu: 0.0.40
codegen_flags: <defaults>
</compile_context>

<pallas_src>
import functools
import math

import jax
import jax.numpy as jnp
from jax.experimental import pallas as pl
from jax.experimental.pallas import tpu as pltpu

DTYPE = jnp.bfloat16
F32 = jnp.float32
EPS = 1e-6
NEG_INF = -1e30


def _round_up(x, m):
    return (x + m - 1) // m * m


# --------------------- TimestepEmbedder MLPs (t + freq fused) ----------------
def _tmlp_kernel(x_ref, w1_ref, b1_ref, w2_ref, b2_ref, o_ref):
    # Grid-less single invocation; both embedders statically unrolled.
    for i in range(2):
        h = jnp.dot(x_ref[i], w1_ref[i], preferred_element_type=F32) \
            + b1_ref[i].astype(F32)
        h = h / (1.0 + jnp.exp(-h))                                   # exact SiLU
        h = jnp.dot(h.astype(DTYPE), w2_ref[i], preferred_element_type=F32) \
            + b2_ref[i].astype(F32)
        o_ref[i] = h.astype(o_ref.dtype)


def fused_timestep_mlp(x2, w1s, b1s, w2s, b2s):
    # x2 (2, B, F); weights stacked (2, ...): index 0 = t_embedder, 1 = freq_embedder
    _, B, _ = x2.shape
    D = w2s.shape[-1]
    return pl.pallas_call(
        _tmlp_kernel,
        out_shape=jax.ShapeDtypeStruct((2, B, D), DTYPE),
    )(x2, w1s, b1s, w2s, b2s)


# ------------------- fused RDT blocks + final layer kernel -------------------
_BLOCK_WEIGHT_KEYS = (
    "norm1_w", "qkv_w", "qkv_b", "q_norm_w", "k_norm_w", "attn_proj_w", "attn_proj_b",
    "norm2_w", "cq_w", "cq_b", "ckv_w", "ckv_b", "cq_norm_w", "ck_norm_w",
    "cproj_w", "cproj_b",
    "norm3_w", "fc1_w", "fc1_b", "fc2_w", "fc2_b",
)


def _rdt_fused_kernel(x_ref, c_ref, cb_ref, sb_ref, pool_ref,
                      n1, qkvw, qkvb, qn, kn, pw, pb,
                      n2, cqw, cqb, ckvw, ckvb, cqn, ckn, cpw, cpb,
                      n3, f1w, f1b, f2w, f2b,
                      fnw, ff1w, ff1b, ff2w, ff2b,
                      o_ref, resid_ref, *, num_heads, batch, t_pad, lc_pad):
    l = pl.program_id(0)
    parity = l % 2
    M, D = resid_ref.shape
    H = num_heads
    hd = D // H
    scale = float(hd) ** -0.5
    B, Tp, Lc = batch, t_pad, lc_pad

    # Initialize the f32 residual stream from the input on the first layer.
    @pl.when(l == 0)
    def _init():
        resid_ref[...] = x_ref[...].astype(F32)

    x = resid_ref[...]                     # (M = B*Tp, D) f32 residual stream
    c = c_ref[parity]                      # (B*Lc, D) bf16 cond for this layer's parity
    cb = cb_ref[parity]                    # (B, Lc)   f32 cross-attn key bias
    sb = sb_ref[...]                       # (1, Tp)   f32 self-attn pad-key bias
    pool = pool_ref[...]                   # (D, D)    bf16 block-diag (1/hd) pooling

    def rmsnorm(v, w):                     # v (N, D) f32, w (1, D) f32
        var = jnp.mean(v * v, axis=-1, keepdims=True)
        return v * jax.lax.rsqrt(var + EPS) * w

    def head_rmsnorm(v, w):
        # Per-head mean-square via a block-diagonal (1/hd) pooling matmul (MXU);
        # no (H, T, hd) relayout of the activations, weight pre-tiled to (1, D).
        ms = jnp.dot((v * v).astype(DTYPE), pool, preferred_element_type=F32)
        return v * jax.lax.rsqrt(ms + EPS) * w

    def gelu_tanh(v):
        return 0.5 * v * (1.0 + jnp.tanh(
            0.7978845608028654 * (v + 0.044715 * v * v * v)))

    def attention(q, k, v, bias, proj_w, proj_b, tk):
        # q (B*Tp, D) f32; k, v (B*tk, D) f32; bias (B or 1, 1, tk) f32.
        # Heads: static lane slices + leading-batch einsums; output projection is
        # accumulated per head -> no H-way concatenates, everything on the MXU.
        q3 = q.astype(DTYPE).reshape(B, Tp, D)
        k3 = k.astype(DTYPE).reshape(B, tk, D)
        v3 = v.astype(DTYPE).reshape(B, tk, D)
        acc = None
        for h in range(H):
            sl = slice(h * hd, (h + 1) * hd)
            s = jnp.einsum("bqd,bkd->bqk", q3[:, :, sl], k3[:, :, sl],
                           preferred_element_type=F32) * scale
            s = s + bias
            s = s - jnp.max(s, axis=-1, keepdims=True)
            p = jnp.exp(s)
            p = p / jnp.sum(p, axis=-1, keepdims=True)               # exact softmax
            o = jnp.einsum("bqk,bkd->bqd", p.astype(DTYPE), v3[:, :, sl],
                           preferred_element_type=F32)               # (B, Tp, hd)
            contrib = jnp.dot(o.reshape(M, hd).astype(DTYPE), proj_w[sl, :],
                              preferred_element_type=F32)
            acc = contrib if acc is None else acc + contrib
        return acc + proj_b

    # ------------------------------ self attention ------------------------------
    h = rmsnorm(x, n1[0].astype(F32))
    qkv = jnp.dot(h.astype(DTYPE), qkvw[0], preferred_element_type=F32) \
        + qkvb[0].astype(F32)
    q = head_rmsnorm(qkv[:, :D], qn[0].astype(F32))
    k = head_rmsnorm(qkv[:, D:2 * D], kn[0].astype(F32))
    v = qkv[:, 2 * D:]
    x = x + attention(q, k, v, sb[:, None, :], pw[0], pb[0].astype(F32), Tp)

    # ------------------------------ cross attention -----------------------------
    h = rmsnorm(x, n2[0].astype(F32))
    q = jnp.dot(h.astype(DTYPE), cqw[0], preferred_element_type=F32) \
        + cqb[0].astype(F32)
    kv = jnp.dot(c, ckvw[0], preferred_element_type=F32) + ckvb[0].astype(F32)
    q = head_rmsnorm(q, cqn[0].astype(F32))
    k = head_rmsnorm(kv[:, :D], ckn[0].astype(F32))
    v = kv[:, D:]
    # NOTE: a fully-masked cond row degrades to uniform attention over the
    # (zero) padded cond tokens instead of NaN as in the PyTorch reference.
    x = x + attention(q, k, v, cb[:, None, :], cpw[0], cpb[0].astype(F32), Lc)

    # -------------------------------- feed forward ------------------------------
    h = rmsnorm(x, n3[0].astype(F32))
    h = jnp.dot(h.astype(DTYPE), f1w[0], preferred_element_type=F32) + f1b[0].astype(F32)
    h = gelu_tanh(h)
    h = jnp.dot(h.astype(DTYPE), f2w[0], preferred_element_type=F32) + f2b[0].astype(F32)
    x = x + h

    resid_ref[...] = x

    # ------------------ final layer fused into the last depth step --------------
    @pl.when(l == pl.num_programs(0) - 1)
    def _final():
        y = rmsnorm(x, fnw[...].astype(F32))
        y = jnp.dot(y.astype(DTYPE), ff1w[...], preferred_element_type=F32) \
            + ff1b[...].astype(F32)
        y = gelu_tanh(y)
        y = jnp.dot(y.astype(DTYPE), ff2w[...], preferred_element_type=F32) \
            + ff2b[...].astype(F32)
        o_ref[...] = y.astype(o_ref.dtype)


def rdt_blocks_and_final(x_flat, conds_flat, cross_bias, self_bias, head_pool,
                         blocks, final, *, num_heads, batch, t_pad, lc_pad):
    M, D = x_flat.shape
    depth = blocks["qkv_w"].shape[0]
    OP = final["fc2_w"].shape[1]

    block_ws = [blocks[k] for k in _BLOCK_WEIGHT_KEYS]
    final_ws = [final["norm_w"], final["fc1_w"], final["fc1_b"],
                final["fc2_w"], final["fc2_b"]]

    in_specs = [
        pl.BlockSpec(x_flat.shape, lambda l: (0, 0)),           # residual init (resident)
        pl.BlockSpec(conds_flat.shape, lambda l: (0, 0, 0)),    # both cond parities (resident)
        pl.BlockSpec(cross_bias.shape, lambda l: (0, 0, 0)),    # cross-attn bias (resident)
        pl.BlockSpec(self_bias.shape, lambda l: (0, 0)),        # self-attn pad bias (resident)
        pl.BlockSpec(head_pool.shape, lambda l: (0, 0)),        # per-head pooling (resident)
    ]
    # stacked per-layer weights: layer l, fetched exactly once per layer
    in_specs += [pl.BlockSpec((1,) + w.shape[1:], lambda l: (l, 0, 0))
                 for w in block_ws]
    # final-layer weights: resident (same block every step)
    in_specs += [pl.BlockSpec(w.shape, lambda l: (0, 0)) for w in final_ws]

    # TODO(synk): K/N-tile the per-layer weight BlockSpecs (reduction grid axis +
    # f32 accumulator + explicit vmem_limit_bytes) before scaling hidden to
    # production sizes; mandatory on v7x (64 MiB VMEM).
    return pl.pallas_call(
        functools.partial(_rdt_fused_kernel, num_heads=num_heads,
                          batch=batch, t_pad=t_pad, lc_pad=lc_pad),
        out_shape=jax.ShapeDtypeStruct((M, OP), DTYPE),
        grid=(depth,),
        in_specs=in_specs,
        out_specs=pl.BlockSpec((M, OP), lambda l: (0, 0)),
        scratch_shapes=[pltpu.VMEM((M, D), jnp.float32)],
        compiler_params=pltpu.CompilerParams(dimension_semantics=("arbitrary",)),
    )(x_flat, conds_flat, cross_bias, self_bias, head_pool, *block_ws, *final_ws)


# ------------------------------- glue (plain JAX) -----------------------------
def timestep_embedding(t, dim=256, max_period=10000.0):
    half = dim // 2
    freqs = jnp.exp(-math.log(max_period) * jnp.arange(half, dtype=jnp.float32) / half)
    args = t.astype(jnp.float32)[:, None] * freqs[None]
    return jnp.concatenate([jnp.cos(args), jnp.sin(args)], axis=-1)


def sincos_1d(embed_dim, pos):
    omega = jnp.arange(embed_dim // 2, dtype=jnp.float32) / (embed_dim / 2.0)
    omega = 1.0 / (10000.0 ** omega)
    out = pos.astype(jnp.float32)[:, None] * omega[None]
    return jnp.concatenate([jnp.sin(out), jnp.cos(out)], axis=1)


def get_multimodal_cond_pos_embed(embed_dim, mm_cond_lens, embed_modality=True):
    # JAX port of the reference multimodal (modality + position) sin-cos init.
    num_m = len(mm_cond_lens)
    if embed_modality:
        pos_dim = embed_dim // 2
        modality_emb = jnp.concatenate(
            [sincos_1d(embed_dim // 2, jnp.arange(num_m)),
             jnp.zeros((num_m, embed_dim - embed_dim // 2))], axis=1)
    else:
        pos_dim = embed_dim
        modality_emb = jnp.zeros((num_m, embed_dim))
    pieces = []
    for idx, (_, length) in enumerate(mm_cond_lens):
        pe = jnp.concatenate(
            [jnp.zeros((length, embed_dim - pos_dim)),
             sincos_1d(pos_dim, jnp.arange(length))], axis=1)
        pieces.append(pe + modality_emb[idx])
    return jnp.concatenate(pieces, axis=0)


def init_params(key, *, hidden, num_heads, horizon, depth, out_dim,
                max_lang_len, img_len):
    hd = hidden // num_heads
    keys = iter(jax.random.split(key, 256))

    def xavier(*shape):
        fan_in, fan_out = shape[-2], shape[-1]
        lim = math.sqrt(6.0 / (fan_in + fan_out))
        return jax.random.uniform(next(keys), shape, jnp.float32, -lim, lim).astype(DTYPE)

    def normal(*shape, std=0.02):
        return (std * jax.random.normal(next(keys), shape, jnp.float32)).astype(DTYPE)

    def zeros(*shape):
        return jnp.zeros(shape, DTYPE)

    def ones(*shape):
        return jnp.ones(shape, DTYPE)

    out_pad = max(_round_up(out_dim, 128), 128)        # lane-dense final output

    x_pos = get_multimodal_cond_pos_embed(
        hidden, [("timestep", 1), ("ctrl_freq", 1), ("state", 1), ("action", horizon)])

    params = {
        # stacked TimestepEmbedder MLPs: index 0 = t_embedder, 1 = freq_embedder
        "te_w1": jnp.stack([normal(256, hidden), normal(256, hidden)], axis=0),
        "te_b1": zeros(2, 1, hidden),
        "te_w2": jnp.stack([normal(hidden, hidden), normal(hidden, hidden)], axis=0),
        "te_b2": zeros(2, 1, hidden),
        "x_pos": x_pos[None].astype(DTYPE),
        "lang_pos": sincos_1d(hidden, jnp.arange(max_lang_len))[None].astype(DTYPE),
        "img_pos": sincos_1d(hidden, jnp.arange(img_len))[None].astype(DTYPE),
        "final": {
            "norm_w": ones(1, hidden),
            "fc1_w": xavier(hidden, hidden), "fc1_b": zeros(1, hidden),
            # reference zero-inits the final fc2 (padded to 128 lanes, sliced back)
            "fc2_w": zeros(hidden, out_pad), "fc2_b": zeros(1, out_pad),
        },
        # per-layer weights stacked along a leading `depth` axis
        "blocks": {
            "norm1_w": ones(depth, 1, hidden),
            "qkv_w": xavier(depth, hidden, 3 * hidden),
            "qkv_b": zeros(depth, 1, 3 * hidden),
            "q_norm_w": ones(depth, 1, hd), "k_norm_w": ones(depth, 1, hd),
            "attn_proj_w": xavier(depth, hidden, hidden),
            "attn_proj_b": zeros(depth, 1, hidden),
            "norm2_w": ones(depth, 1, hidden),
            "cq_w": xavier(depth, hidden, hidden), "cq_b": zeros(depth, 1, hidden),
            "ckv_w": xavier(depth, hidden, 2 * hidden), "ckv_b": zeros(depth, 1, 2 * hidden),
            "cq_norm_w": ones(depth, 1, hd), "ck_norm_w": ones(depth, 1, hd),
            "cproj_w": xavier(depth, hidden, hidden), "cproj_b": zeros(depth, 1, hidden),
            "norm3_w": ones(depth, 1, hidden),
            "fc1_w": xavier(depth, hidden, hidden), "fc1_b": zeros(depth, 1, hidden),
            "fc2_w": xavier(depth, hidden, hidden), "fc2_b": zeros(depth, 1, hidden),
        },
    }
    return params


def rdt_forward(params, x, freq, t, lang_c, img_c, lang_mask=None, img_mask=None,
                *, horizon, num_heads, out_dim):
    B, _, D = x.shape
    H = num_heads
    hd = D // H

    # timestep / control-frequency embeddings (one grid-less pallas_call)
    t_sin = timestep_embedding(t).astype(DTYPE)
    f_sin = timestep_embedding(freq).astype(DTYPE)
    if t_sin.shape[0] == 1:
        t_sin = jnp.broadcast_to(t_sin, (B, t_sin.shape[1]))
    emb = fused_timestep_mlp(jnp.stack([t_sin, f_sin], axis=0),
                             params["te_w1"], params["te_b1"],
                             params["te_w2"], params["te_b2"])          # (2, B, D)
    t_emb, f_emb = emb[0][:, None, :], emb[1][:, None, :]

    x = jnp.concatenate([t_emb, f_emb, x.astype(DTYPE)], axis=1)        # (B, horizon+3, D)
    T_real = x.shape[1]
    x = (x + params["x_pos"]).astype(DTYPE)
    lang_len, img_len = lang_c.shape[1], img_c.shape[1]
    lang_c = (lang_c + params["lang_pos"][:, :lang_len]).astype(DTYPE)
    img_c = (img_c + params["img_pos"]).astype(DTYPE)

    # pad token axis to a bf16-tile-friendly length; pad keys masked via self_bias
    Tp = _round_up(T_real, 16)
    x = jnp.pad(x, ((0, 0), (0, Tp - T_real), (0, 0)))

    # pad both conds to one common length and stack -> kept resident in VMEM
    Lc = _round_up(max(lang_len, img_len), 16)
    pad_cond = lambda c: jnp.pad(c, ((0, 0), (0, Lc - c.shape[1]), (0, 0)))
    conds = jnp.stack([pad_cond(lang_c), pad_cond(img_c)], axis=0)       # (2, B, Lc, D)

    def mask_to_bias(m, L):
        if m is None:
            m = jnp.ones((B, L), bool)
        m = jnp.pad(m.astype(bool), ((0, 0), (0, Lc - L)), constant_values=False)
        return jnp.where(m, 0.0, NEG_INF).astype(jnp.float32)

    cross_bias = jnp.stack([mask_to_bias(lang_mask, lang_len),
                            mask_to_bias(img_mask, img_len)], axis=0)    # (2, B, Lc)
    self_bias = jnp.where(jnp.arange(Tp) < T_real, 0.0,
                          NEG_INF).astype(jnp.float32)[None, :]          # (1, Tp)

    # block-diagonal (1/hd) pooling matrix for per-head RMSNorm on the MXU
    head_ids = jnp.arange(D) // hd
    head_pool = ((head_ids[:, None] == head_ids[None, :]).astype(jnp.float32)
                 / hd).astype(DTYPE)                                     # (D, D)

    # tile per-head qk-norm weights to full (1, D) width (one vector per head)
    blocks = dict(params["blocks"])
    for key in ("q_norm_w", "k_norm_w", "cq_norm_w", "ck_norm_w"):
        blocks[key] = jnp.tile(blocks[key], (1, 1, H))

    out = rdt_blocks_and_final(
        x.reshape(B * Tp, D), conds.reshape(2, B * Lc, D), cross_bias, self_bias,
        head_pool, blocks, params["final"],
        num_heads=num_heads, batch=B, t_pad=Tp, lc_pad=Lc)               # (B*Tp, 128)
    out = out.reshape(B, Tp, -1)
    return out[:, T_real - horizon:T_real, :out_dim]                     # (B, horizon, out_dim)


# ----------------------------------- main -------------------------------------
if __name__ == "__main__":
    B, hidden, num_heads, horizon, depth, out_dim = 2, 128, 4, 8, 2, 32
    max_lang_len, img_len, lang_len = 16, 16, 12

    key = jax.random.PRNGKey(0)
    kp, kx, kl, ki = jax.random.split(key, 4)
    params = init_params(kp, hidden=hidden, num_heads=num_heads, horizon=horizon,
                         depth=depth, out_dim=out_dim, max_lang_len=max_lang_len,
                         img_len=img_len)

    x = jax.random.normal(kx, (B, horizon + 1, hidden), jnp.float32).astype(DTYPE)
    lang_c = jax.random.normal(kl, (B, lang_len, hidden), jnp.float32).astype(DTYPE)
    img_c = jax.random.normal(ki, (B, img_len, hidden), jnp.float32).astype(DTYPE)
    freq = jnp.array([3.0, 10.0], jnp.float32)
    t = jnp.array([5, 17], jnp.int32)
    lang_mask = jnp.arange(lang_len)[None, :] < jnp.array([[lang_len], [8]])  # (B, L_lang)
    img_mask = jnp.ones((B, img_len), bool)

    fwd = jax.jit(functools.partial(rdt_forward, horizon=horizon,
                                    num_heads=num_heads, out_dim=out_dim))
    out = fwd(params, x, freq, t, lang_c, img_c, lang_mask, img_mask)
    jax.block_until_ready(out)
    assert out.shape == (B, horizon, out_dim)
    assert out.dtype == DTYPE
    assert bool(jnp.all(jnp.isfinite(out.astype(jnp.float32))))
    print("KERNEL_OK")
</pallas_src>

<mosaic_0001>
module attributes {stable_mosaic.version = 11 : i64} {
  func.func @_tmlp_kernel(%arg0: memref<2x2x256xbf16, #tpu.memory_space<vmem>>, %arg1: memref<2x256x128xbf16, #tpu.memory_space<vmem>>, %arg2: memref<2x1x128xbf16, #tpu.memory_space<vmem>>, %arg3: memref<2x128x128xbf16, #tpu.memory_space<vmem>>, %arg4: memref<2x1x128xbf16, #tpu.memory_space<vmem>>, %arg5: memref<2x2x128xbf16, #tpu.memory_space<vmem>>) attributes {dimension_semantics = [], scalar_prefetch = 0 : i64, scratch_operands = 0 : i64, tpu.core_type = #tpu.core_type<tc>} {
    %c0 = arith.constant 0 : index
    %c0_0 = arith.constant 0 : index
    %c0_1 = arith.constant 0 : index
    %0 = vector.load %arg0[%c0, %c0_0, %c0_1] : memref<2x2x256xbf16, #tpu.memory_space<vmem>>, vector<1x2x256xbf16>
    %1 = vector.shape_cast %0 : vector<1x2x256xbf16> to vector<2x256xbf16>
    %c0_2 = arith.constant 0 : index
    %c0_3 = arith.constant 0 : index
    %c0_4 = arith.constant 0 : index
    %2 = vector.load %arg1[%c0_2, %c0_3, %c0_4] : memref<2x256x128xbf16, #tpu.memory_space<vmem>>, vector<1x256x128xbf16>
    %3 = vector.shape_cast %2 : vector<1x256x128xbf16> to vector<256x128xbf16>
    %cst = arith.constant dense<0.000000e+00> : vector<2x128xf32>
    %4 = tpu.matmul %1, %3, %cst {dimension_numbers = #tpu.dot_dimension_numbers<[1], [0], [0], [1], [0, 0, 1, 1], [], []>} : vector<2x256xbf16>, vector<256x128xbf16>, vector<2x128xf32> -> vector<2x128xf32>
    %c0_5 = arith.constant 0 : index
    %c0_6 = arith.constant 0 : index
    %c0_7 = arith.constant 0 : index
    %5 = vector.load %arg2[%c0_5, %c0_6, %c0_7] : memref<2x1x128xbf16, #tpu.memory_space<vmem>>, vector<1x1x128xbf16>
    %6 = vector.shape_cast %5 : vector<1x1x128xbf16> to vector<1x128xbf16>
    %7 = arith.extf %6 : vector<1x128xbf16> to vector<1x128xf32>
    %8 = vector.broadcast %7 : vector<1x128xf32> to vector<2x128xf32>
    %9 = arith.addf %4, %8 : vector<2x128xf32>
    %cst_8 = arith.constant 0.000000e+00 : f32
    %10 = vector.broadcast %cst_8 : f32 to vector<2x128xf32>
    %11 = arith.subf %10, %9 : vector<2x128xf32>
    %12 = math.exp %11 : vector<2x128xf32>
    %cst_9 = arith.constant 1.000000e+00 : f32
    %13 = vector.broadcast %cst_9 : f32 to vector<2x128xf32>
    %14 = arith.addf %13, %12 : vector<2x128xf32>
    %15 = arith.divf %9, %14 : vector<2x128xf32>
    %16 = arith.truncf %15 : vector<2x128xf32> to vector<2x128xbf16>
    %c0_10 = arith.constant 0 : index
    %c0_11 = arith.constant 0 : index
    %c0_12 = arith.constant 0 : index
    %17 = vector.load %arg3[%c0_10, %c0_11, %c0_12] : memref<2x128x128xbf16, #tpu.memory_space<vmem>>, vector<1x128x128xbf16>
    %18 = vector.shape_cast %17 : vector<1x128x128xbf16> to vector<128x128xbf16>
    %cst_13 = arith.constant dense<0.000000e+00> : vector<2x128xf32>
    %19 = tpu.matmul %16, %18, %cst_13 {dimension_numbers = #tpu.dot_dimension_numbers<[1], [0], [0], [1], [0, 0, 1, 1], [], []>} : vector<2x128xbf16>, vector<128x128xbf16>, vector<2x128xf32> -> vector<2x128xf32>
    %c0_14 = arith.constant 0 : index
    %c0_15 = arith.constant 0 : index
    %c0_16 = arith.constant 0 : index
    %20 = vector.load %arg4[%c0_14, %c0_15, %c0_16] : memref<2x1x128xbf16, #tpu.memory_space<vmem>>, vector<1x1x128xbf16>
    %21 = vector.shape_cast %20 : vector<1x1x128xbf16> to vector<1x128xbf16>
    %22 = arith.extf %21 : vector<1x128xbf16> to vector<1x128xf32>
    %23 = vector.broadcast %22 : vector<1x128xf32> to vector<2x128xf32>
    %24 = arith.addf %19, %23 : vector<2x128xf32>
    %25 = arith.truncf %24 : vector<2x128xf32> to vector<2x128xbf16>
    %c0_17 = arith.constant 0 : index
    %c0_18 = arith.constant 0 : index
    %c0_19 = arith.constant 0 : index
    %26 = vector.load %arg5[%c0_17, %c0_18, %c0_19] : memref<2x2x128xbf16, #tpu.memory_space<vmem>>, vector<1x2x128xbf16>
    %27 = vector.shape_cast %26 : vector<1x2x128xbf16> to vector<2x128xbf16>
    %28 = vector.shape_cast %25 : vector<2x128xbf16> to vector<1x2x128xbf16>
    tpu.vector_store %arg5[%c0_17, %c0_18, %c0_19], %28 {strides = array<i32>} : memref<2x2x128xbf16, #tpu.memory_space<vmem>>, vector<1x2x128xbf16>,
    %c1 = arith.constant 1 : index
    %c0_20 = arith.constant 0 : index
    %c0_21 = arith.constant 0 : index
    %29 = vector.load %arg0[%c1, %c0_20, %c0_21] : memref<2x2x256xbf16, #tpu.memory_space<vmem>>, vector<1x2x256xbf16>
    %30 = vector.shape_cast %29 : vector<1x2x256xbf16> to vector<2x256xbf16>
    %c1_22 = arith.constant 1 : index
    %c0_23 = arith.constant 0 : index
    %c0_24 = arith.constant 0 : index
    %31 = vector.load %arg1[%c1_22, %c0_23, %c0_24] : memref<2x256x128xbf16, #tpu.memory_space<vmem>>, vector<1x256x128xbf16>
    %32 = vector.shape_cast %31 : vector<1x256x128xbf16> to vector<256x128xbf16>
    %cst_25 = arith.constant dense<0.000000e+00> : vector<2x128xf32>
    %33 = tpu.matmul %30, %32, %cst_25 {dimension_numbers = #tpu.dot_dimension_numbers<[1], [0], [0], [1], [0, 0, 1, 1], [], []>} : vector<2x256xbf16>, vector<256x128xbf16>, vector<2x128xf32> -> vector<2x128xf32>
    %c1_26 = arith.constant 1 : index
    %c0_27 = arith.constant 0 : index
    %c0_28 = arith.constant 0 : index
    %34 = vector.load %arg2[%c1_26, %c0_27, %c0_28] : memref<2x1x128xbf16, #tpu.memory_space<vmem>>, vector<1x1x128xbf16>
    %35 = vector.shape_cast %34 : vector<1x1x128xbf16> to vector<1x128xbf16>
    %36 = arith.extf %35 : vector<1x128xbf16> to vector<1x128xf32>
    %37 = vector.broadcast %36 : vector<1x128xf32> to vector<2x128xf32>
    %38 = arith.addf %33, %37 : vector<2x128xf32>
    %cst_29 = arith.constant 0.000000e+00 : f32
    %39 = vector.broadcast %cst_29 : f32 to vector<2x128xf32>
    %40 = arith.subf %39, %38 : vector<2x128xf32>
    %41 = math.exp %40 : vector<2x128xf32>
    %cst_30 = arith.constant 1.000000e+00 : f32
    %42 = vector.broadcast %cst_30 : f32 to vector<2x128xf32>
    %43 = arith.addf %42, %41 : vector<2x128xf32>
    %44 = arith.divf %38, %43 : vector<2x128xf32>
    %45 = arith.truncf %44 : vector<2x128xf32> to vector<2x128xbf16>
    %c1_31 = arith.constant 1 : index
    %c0_32 = arith.constant 0 : index
    %c0_33 = arith.constant 0 : index
    %46 = vector.load %arg3[%c1_31, %c0_32, %c0_33] : memref<2x128x128xbf16, #tpu.memory_space<vmem>>, vector<1x128x128xbf16>
    %47 = vector.shape_cast %46 : vector<1x128x128xbf16> to vector<128x128xbf16>
    %cst_34 = arith.constant dense<0.000000e+00> : vector<2x128xf32>
    %48 = tpu.matmul %45, %47, %cst_34 {dimension_numbers = #tpu.dot_dimension_numbers<[1], [0], [0], [1], [0, 0, 1, 1], [], []>} : vector<2x128xbf16>, vector<128x128xbf16>, vector<2x128xf32> -> vector<2x128xf32>
    %c1_35 = arith.constant 1 : index
    %c0_36 = arith.constant 0 : index
    %c0_37 = arith.constant 0 : index
    %49 = vector.load %arg4[%c1_35, %c0_36, %c0_37] : memref<2x1x128xbf16, #tpu.memory_space<vmem>>, vector<1x1x128xbf16>
    %50 = vector.shape_cast %49 : vector<1x1x128xbf16> to vector<1x128xbf16>
    %51 = arith.extf %50 : vector<1x128xbf16> to vector<1x128xf32>
    %52 = vector.broadcast %51 : vector<1x128xf32> to vector<2x128xf32>
    %53 = arith.addf %48, %52 : vector<2x128xf32>
    %54 = arith.truncf %53 : vector<2x128xf32> to vector<2x128xbf16>
    %c1_38 = arith.constant 1 : index
    %c0_39 = arith.constant 0 : index
    %c0_40 = arith.constant 0 : index
    %55 = vector.load %arg5[%c1_38, %c0_39, %c0_40] : memref<2x2x128xbf16, #tpu.memory_space<vmem>>, vector<1x2x128xbf16>
    %56 = vector.shape_cast %55 : vector<1x2x128xbf16> to vector<2x128xbf16>
    %57 = vector.shape_cast %54 : vector<2x128xbf16> to vector<1x2x128xbf16>
    tpu.vector_store %arg5[%c1_38, %c0_39, %c0_40], %57 {strides = array<i32>} : memref<2x2x128xbf16, #tpu.memory_space<vmem>>, vector<1x2x128xbf16>,
    return
  }
}

module attributes {stable_mosaic.version = 11 : i64} {
  func.func @_rdt_fused_kernel(%arg0: i32, %arg1: memref<32x128xbf16, #tpu.memory_space<vmem>>, %arg2: memref<2x32x128xbf16, #tpu.memory_space<vmem>>, %arg3: memref<2x2x16xf32, #tpu.memory_space<vmem>>, %arg4: memref<1x16xf32, #tpu.memory_space<vmem>>, %arg5: memref<128x128xbf16, #tpu.memory_space<vmem>>, %arg6: memref<1x1x128xbf16, #tpu.memory_space<vmem>>, %arg7: memref<1x128x384xbf16, #tpu.memory_space<vmem>>, %arg8: memref<1x1x384xbf16, #tpu.memory_space<vmem>>, %arg9: memref<1x1x128xbf16, #tpu.memory_space<vmem>>, %arg10: memref<1x1x128xbf16, #tpu.memory_space<vmem>>, %arg11: memref<1x128x128xbf16, #tpu.memory_space<vmem>>, %arg12: memref<1x1x128xbf16, #tpu.memory_space<vmem>>, %arg13: memref<1x1x128xbf16, #tpu.memory_space<vmem>>, %arg14: memref<1x128x128xbf16, #tpu.memory_space<vmem>>, %arg15: memref<1x1x128xbf16, #tpu.memory_space<vmem>>, %arg16: memref<1x128x256xbf16, #tpu.memory_space<vmem>>, %arg17: memref<1x1x256xbf16, #tpu.memory_space<vmem>>, %arg18: memref<1x1x128xbf16, #tpu.memory_space<vmem>>, %arg19: memref<1x1x128xbf16, #tpu.memory_space<vmem>>, %arg20: memref<1x128x128xbf16, #tpu.memory_space<vmem>>, %arg21: memref<1x1x128xbf16, #tpu.memory_space<vmem>>, %arg22: memref<1x1x128xbf16, #tpu.memory_space<vmem>>, %arg23: memref<1x128x128xbf16, #tpu.memory_space<vmem>>, %arg24: memref<1x1x128xbf16, #tpu.memory_space<vmem>>, %arg25: memref<1x128x128xbf16, #tpu.memory_space<vmem>>, %arg26: memref<1x1x128xbf16, #tpu.memory_space<vmem>>, %arg27: memref<1x128xbf16, #tpu.memory_space<vmem>>, %arg28: memref<128x128xbf16, #tpu.memory_space<vmem>>, %arg29: memref<1x128xbf16, #tpu.memory_space<vmem>>, %arg30: memref<128x128xbf16, #tpu.memory_space<vmem>>, %arg31: memref<1x128xbf16, #tpu.memory_space<vmem>>, %arg32: memref<32x128xbf16, #tpu.memory_space<vmem>>, %arg33: memref<32x128xf32, #tpu.memory_space<vmem>>) attributes {dimension_semantics = [#tpu.dimension_semantics<arbitrary>], iteration_bounds = array<i64: 2>, scalar_prefetch = 0 : i64, scratch_operands = 1 : i64, tpu.core_type = #tpu.core_type<tc>, window_params = [{pipeline_mode = #tpu.pipeline_mode<synchronous>, transform_indices = @transform_0, window_bounds = array<i64: 32, 128>}, {pipeline_mode = #tpu.pipeline_mode<synchronous>, transform_indices = @transform_1, window_bounds = array<i64: 2, 32, 128>}, {pipeline_mode = #tpu.pipeline_mode<synchronous>, transform_indices = @transform_2, window_bounds = array<i64: 2, 2, 16>}, {pipeline_mode = #tpu.pipeline_mode<synchronous>, transform_indices = @transform_3, window_bounds = array<i64: 1, 16>}, {pipeline_mode = #tpu.pipeline_mode<synchronous>, transform_indices = @transform_4, window_bounds = array<i64: 128, 128>}, {transform_indices = @transform_5, window_bounds = array<i64: 1, 1, 128>}, {transform_indices = @transform_6, window_bounds = array<i64: 1, 128, 384>}, {transform_indices = @transform_7, window_bounds = array<i64: 1, 1, 384>}, {transform_indices = @transform_8, window_bounds = array<i64: 1, 1, 128>}, {transform_indices = @transform_9, window_bounds = array<i64: 1, 1, 128>}, {transform_indices = @transform_10, window_bounds = array<i64: 1, 128, 128>}, {transform_indices = @transform_11, window_bounds = array<i64: 1, 1, 128>}, {transform_indices = @transform_12, window_bounds = array<i64: 1, 1, 128>}, {transform_indices = @transform_13, window_bounds = array<i64: 1, 128, 128>}, {transform_indices = @transform_14, window_bounds = array<i64: 1, 1, 128>}, {transform_indices = @transform_15, window_bounds = array<i64: 1, 128, 256>}, {transform_indices = @transform_16, window_bounds = array<i64: 1, 1, 256>}, {transform_indices = @transform_17, window_bounds = array<i64: 1, 1, 128>}, {transform_indices = @transform_18, window_bounds = array<i64: 1, 1, 128>}, {transform_indices = @transform_19, window_bounds = array<i64: 1, 128, 128>}, {transform_indices = @transform_20, window_bounds = array<i64: 1, 1, 128>}, {transform_indices = @transform_21, window_bounds = array<i64: 1, 1, 128>}, {transform_indices = @transform_22, window_bounds = array<i64: 1, 128, 128>}, {transform_indices = @transform_23, window_bounds = array<i64: 1, 1, 128>}, {transform_indices = @transform_24, window_bounds = array<i64: 1, 128, 128>}, {transform_indices = @transform_25, window_bounds = array<i64: 1, 1, 128>}, {pipeline_mode = #tpu.pipeline_mode<synchronous>, transform_indices = @transform_26, window_bounds = array<i64: 1, 128>}, {pipeline_mode = #tpu.pipeline_mode<synchronous>, transform_indices = @transform_27, window_bounds = array<i64: 128, 128>}, {pipeline_mode = #tpu.pipeline_mode<synchronous>, transform_indices = @transform_28, window_bounds = array<i64: 1, 128>}, {pipeline_mode = #tpu.pipeline_mode<synchronous>, transform_indices = @transform_29, window_bounds = array<i64: 128, 128>}, {pipeline_mode = #tpu.pipeline_mode<synchronous>, transform_indices = @transform_30, window_bounds = array<i64: 1, 128>}, {pipeline_mode = #tpu.pipeline_mode<synchronous>, transform_indices = @transform_31, window_bounds = array<i64: 32, 128>}]} {
    %c2_i32 = arith.constant 2 : i32
    %c0_i32 = arith.constant 0 : i32
    %0 = arith.cmpi eq, %c2_i32, %c0_i32 : i32
    %c1_i32 = arith.constant 1 : i32
    %1 = arith.select %0, %c1_i32, %c2_i32 : i32
    %2 = arith.remsi %arg0, %1 : i32
    %c0_i32_0 = arith.constant 0 : i32
    %3 = arith.cmpi ne, %2, %c0_i32_0 : i32
    %c0_i32_1 = arith.constant 0 : i32
    %4 = arith.cmpi slt, %2, %c0_i32_1 : i32
    %c0_i32_2 = arith.constant 0 : i32
    %5 = arith.cmpi slt, %1, %c0_i32_2 : i32
    %6 = arith.xori %4, %5 : i1
    %7 = arith.andi %6, %3 : i1
    %8 = arith.addi %2, %1 : i32
    %9 = arith.select %7, %8, %2 : i32
    %c0_i32_3 = arith.constant 0 : i32
    %10 = arith.cmpi eq, %arg0, %c0_i32_3 : i32
    %11 = arith.extui %10 : i1 to i32
    %c0_i32_4 = arith.constant 0 : i32
    %12 = arith.cmpi ne, %11, %c0_i32_4 : i32
    scf.if %12 {
      %c0_154 = arith.constant 0 : index
      %c0_155 = arith.constant 0 : index
      %402 = vector.load %arg1[%c0_154, %c0_155] : memref<32x128xbf16, #tpu.memory_space<vmem>>, vector<32x128xbf16>
      %403 = arith.extf %402 : vector<32x128xbf16> to vector<32x128xf32>
      %c0_156 = arith.constant 0 : index
      %c0_157 = arith.constant 0 : index
      %404 = vector.load %arg33[%c0_156, %c0_157] : memref<32x128xf32, #tpu.memory_space<vmem>>, vector<32x128xf32>
      tpu.vector_store %arg33[%c0_156, %c0_157], %403 {strides = array<i32>} : memref<32x128xf32, #tpu.memory_space<vmem>>, vector<32x128xf32>,
    } else {
    }
    %c0 = arith.constant 0 : index
    %c0_5 = arith.constant 0 : index
    %13 = vector.load %arg33[%c0, %c0_5] : memref<32x128xf32, #tpu.memory_space<vmem>>, vector<32x128xf32>
    %14 = arith.index_cast %9 : i32 to index
    %c0_6 = arith.constant 0 : index
    %c0_7 = arith.constant 0 : index
    %15 = vector.load %arg2[%14, %c0_6, %c0_7] : memref<2x32x128xbf16, #tpu.memory_space<vmem>>, vector<1x32x128xbf16>
    %16 = vector.shape_cast %15 : vector<1x32x128xbf16> to vector<32x128xbf16>
    %17 = arith.index_cast %9 : i32 to index
    %c0_8 = arith.constant 0 : index
    %c0_9 = arith.constant 0 : index
    %18 = vector.load %arg3[%17, %c0_8, %c0_9] : memref<2x2x16xf32, #tpu.memory_space<vmem>>, vector<1x2x16xf32>
    %19 = vector.shape_cast %18 : vector<1x2x16xf32> to vector<2x16xf32>
    %c0_10 = arith.constant 0 : index
    %c0_11 = arith.constant 0 : index
    %20 = vector.load %arg4[%c0_10, %c0_11] : memref<1x16xf32, #tpu.memory_space<vmem>>, vector<1x16xf32>
    %c0_12 = arith.constant 0 : index
    %c0_13 = arith.constant 0 : index
    %21 = vector.load %arg5[%c0_12, %c0_13] : memref<128x128xbf16, #tpu.memory_space<vmem>>, vector<128x128xbf16>
    %c0_14 = arith.constant 0 : index
    %c0_15 = arith.constant 0 : index
    %c0_16 = arith.constant 0 : index
    %22 = vector.load %arg6[%c0_14, %c0_15, %c0_16] : memref<1x1x128xbf16, #tpu.memory_space<vmem>>, vector<1x1x128xbf16>
    %23 = vector.shape_cast %22 : vector<1x1x128xbf16> to vector<1x128xbf16>
    %24 = arith.extf %23 : vector<1x128xbf16> to vector<1x128xf32>
    %25 = arith.mulf %13, %13 : vector<32x128xf32>
    %cst = arith.constant dense<0.000000e+00> : vector<32xf32>
    %26 = vector.multi_reduction <add>, %25, %cst [1] : vector<32x128xf32> to vector<32xf32>
    %27 = vector.shape_cast %26 : vector<32xf32> to vector<32x1xf32>
    %cst_17 = arith.constant 1.280000e+02 : f32
    %28 = vector.broadcast %cst_17 : f32 to vector<32x1xf32>
    %29 = arith.divf %27, %28 : vector<32x1xf32>
    %cst_18 = arith.constant 9.99999997E-7 : f32
    %30 = vector.broadcast %cst_18 : f32 to vector<32x1xf32>
    %31 = arith.addf %29, %30 : vector<32x1xf32>
    %32 = math.rsqrt %31 : vector<32x1xf32>
    %33 = vector.broadcast %32 : vector<32x1xf32> to vector<32x128xf32>
    %34 = arith.mulf %13, %33 : vector<32x128xf32>
    %35 = vector.broadcast %24 : vector<1x128xf32> to vector<32x128xf32>
    %36 = arith.mulf %34, %35 : vector<32x128xf32>
    %37 = arith.truncf %36 : vector<32x128xf32> to vector<32x128xbf16>
    %c0_19 = arith.constant 0 : index
    %c0_20 = arith.constant 0 : index
    %c0_21 = arith.constant 0 : index
    %38 = vector.load %arg7[%c0_19, %c0_20, %c0_21] : memref<1x128x384xbf16, #tpu.memory_space<vmem>>, vector<1x128x384xbf16>
    %39 = vector.shape_cast %38 : vector<1x128x384xbf16> to vector<128x384xbf16>
    %cst_22 = arith.constant dense<0.000000e+00> : vector<32x384xf32>
    %40 = tpu.matmul %37, %39, %cst_22 {dimension_numbers = #tpu.dot_dimension_numbers<[1], [0], [0], [1], [0, 0, 1, 1], [], []>} : vector<32x128xbf16>, vector<128x384xbf16>, vector<32x384xf32> -> vector<32x384xf32>
    %c0_23 = arith.constant 0 : index
    %c0_24 = arith.constant 0 : index
    %c0_25 = arith.constant 0 : index
    %41 = vector.load %arg8[%c0_23, %c0_24, %c0_25] : memref<1x1x384xbf16, #tpu.memory_space<vmem>>, vector<1x1x384xbf16>
    %42 = vector.shape_cast %41 : vector<1x1x384xbf16> to vector<1x384xbf16>
    %43 = arith.extf %42 : vector<1x384xbf16> to vector<1x384xf32>
    %44 = vector.broadcast %43 : vector<1x384xf32> to vector<32x384xf32>
    %45 = arith.addf %40, %44 : vector<32x384xf32>
    %46 = vector.extract_strided_slice %45 {offsets = [0, 0], sizes = [32, 128], strides = [1, 1]} : vector<32x384xf32> to vector<32x128xf32>
    %c0_26 = arith.constant 0 : index
    %c0_27 = arith.constant 0 : index
    %c0_28 = arith.constant 0 : index
    %47 = vector.load %arg9[%c0_26, %c0_27, %c0_28] : memref<1x1x128xbf16, #tpu.memory_space<vmem>>, vector<1x1x128xbf16>
    %48 = vector.shape_cast %47 : vector<1x1x128xbf16> to vector<1x128xbf16>
    %49 = arith.extf %48 : vector<1x128xbf16> to vector<1x128xf32>
    %50 = arith.mulf %46, %46 : vector<32x128xf32>
    %51 = arith.truncf %50 : vector<32x128xf32> to vector<32x128xbf16>
    %cst_29 = arith.constant dense<0.000000e+00> : vector<32x128xf32>
    %52 = tpu.matmul %51, %21, %cst_29 {dimension_numbers = #tpu.dot_dimension_numbers<[1], [0], [0], [1], [0, 0, 1, 1], [], []>} : vector<32x128xbf16>, vector<128x128xbf16>, vector<32x128xf32> -> vector<32x128xf32>
    %cst_30 = arith.constant 9.99999997E-7 : f32
    %53 = vector.broadcast %cst_30 : f32 to vector<32x128xf32>
    %54 = arith.addf %52, %53 : vector<32x128xf32>
    %55 = math.rsqrt %54 : vector<32x128xf32>
    %56 = arith.mulf %46, %55 : vector<32x128xf32>
    %57 = vector.broadcast %49 : vector<1x128xf32> to vector<32x128xf32>
    %58 = arith.mulf %56, %57 : vector<32x128xf32>
    %59 = vector.extract_strided_slice %45 {offsets = [0, 128], sizes = [32, 128], strides = [1, 1]} : vector<32x384xf32> to vector<32x128xf32>
    %c0_31 = arith.constant 0 : index
    %c0_32 = arith.constant 0 : index
    %c0_33 = arith.constant 0 : index
    %60 = vector.load %arg10[%c0_31, %c0_32, %c0_33] : memref<1x1x128xbf16, #tpu.memory_space<vmem>>, vector<1x1x128xbf16>
    %61 = vector.shape_cast %60 : vector<1x1x128xbf16> to vector<1x128xbf16>
    %62 = arith.extf %61 : vector<1x128xbf16> to vector<1x128xf32>
    %63 = arith.mulf %59, %59 : vector<32x128xf32>
    %64 = arith.truncf %63 : vector<32x128xf32> to vector<32x128xbf16>
    %cst_34 = arith.constant dense<0.000000e+00> : vector<32x128xf32>
    %65 = tpu.matmul %64, %21, %cst_34 {dimension_numbers = #tpu.dot_dimension_numbers<[1], [0], [0], [1], [0, 0, 1, 1], [], []>} : vector<32x128xbf16>, vector<128x128xbf16>, vector<32x128xf32> -> vector<32x128xf32>
    %cst_35 = arith.constant 9.99999997E-7 : f32
    %66 = vector.broadcast %cst_35 : f32 to vector<32x128xf32>
    %67 = arith.addf %65, %66 : vector<32x128xf32>
    %68 = math.rsqrt %67 : vector<32x128xf32>
    %69 = arith.mulf %59, %68 : vector<32x128xf32>
    %70 = vector.broadcast %62 : vector<1x128xf32> to vector<32x128xf32>
    %71 = arith.mulf %69, %70 : vector<32x128xf32>
    %72 = vector.extract_strided_slice %45 {offsets = [0, 256], sizes = [32, 128], strides = [1, 1]} : vector<32x384xf32> to vector<32x128xf32>
    %73 = vector.shape_cast %20 : vector<1x16xf32> to vector<1x1x16xf32>
    %c0_36 = arith.constant 0 : index
    %c0_37 = arith.constant 0 : index
    %c0_38 = arith.constant 0 : index
    %74 = vector.load %arg11[%c0_36, %c0_37, %c0_38] : memref<1x128x128xbf16, #tpu.memory_space<vmem>>, vector<1x128x128xbf16>
    %75 = vector.shape_cast %74 : vector<1x128x128xbf16> to vector<128x128xbf16>
    %c0_39 = arith.constant 0 : index
    %c0_40 = arith.constant 0 : index
    %c0_41 = arith.constant 0 : index
    %76 = vector.load %arg12[%c0_39, %c0_40, %c0_41] : memref<1x1x128xbf16, #tpu.memory_space<vmem>>, vector<1x1x128xbf16>
    %77 = vector.shape_cast %76 : vector<1x1x128xbf16> to vector<1x128xbf16>
    %78 = arith.extf %77 : vector<1x128xbf16> to vector<1x128xf32>
    %79 = arith.truncf %58 : vector<32x128xf32> to vector<32x128xbf16>
    %80 = vector.shape_cast %79 : vector<32x128xbf16> to vector<2x16x128xbf16>
    %81 = arith.truncf %71 : vector<32x128xf32> to vector<32x128xbf16>
    %82 = vector.shape_cast %81 : vector<32x128xbf16> to vector<2x16x128xbf16>
    %83 = arith.truncf %72 : vector<32x128xf32> to vector<32x128xbf16>
    %84 = vector.shape_cast %83 : vector<32x128xbf16> to vector<2x16x128xbf16>
    %85 = vector.extract_strided_slice %80 {offsets = [0, 0, 0], sizes = [2, 16, 32], strides = [1, 1, 1]} : vector<2x16x128xbf16> to vector<2x16x32xbf16>
    %86 = vector.extract_strided_slice %82 {offsets = [0, 0, 0], sizes = [2, 16, 32], strides = [1, 1, 1]} : vector<2x16x128xbf16> to vector<2x16x32xbf16>
    "tpu.trace_start"() <{level = 10 : i32, message = "bqd,bkd->bqk"}> : () -> ()
    %cst_42 = arith.constant dense<0.000000e+00> : vector<2x16x16xf32>
    %87 = tpu.matmul %85, %86, %cst_42 {dimension_numbers = #tpu.dot_dimension_numbers<[2], [2], [1], [1], [0, 0, 0, 1, 1, 1], [0], [0]>} : vector<2x16x32xbf16>, vector<2x16x32xbf16>, vector<2x16x16xf32> -> vector<2x16x16xf32>
    "tpu.trace_stop"() : () -> ()
    %cst_43 = arith.constant 0.176776692 : f32
    %88 = vector.broadcast %cst_43 : f32 to vector<2x16x16xf32>
    %89 = arith.mulf %87, %88 : vector<2x16x16xf32>
    %90 = vector.broadcast %73 : vector<1x1x16xf32> to vector<2x16x16xf32>
    %91 = arith.addf %89, %90 : vector<2x16x16xf32>
    %cst_44 = arith.constant dense<0xFF800000> : vector<2x16xf32>
    %92 = vector.multi_reduction <maximumf>, %91, %cst_44 [2] : vector<2x16x16xf32> to vector<2x16xf32>
    %93 = vector.shape_cast %92 : vector<2x16xf32> to vector<2x16x1xf32>
    %94 = vector.broadcast %93 : vector<2x16x1xf32> to vector<2x16x16xf32>
    %95 = arith.subf %91, %94 : vector<2x16x16xf32>
    %96 = math.exp %95 : vector<2x16x16xf32>
    %cst_45 = arith.constant dense<0.000000e+00> : vector<2x16xf32>
    %97 = vector.multi_reduction <add>, %96, %cst_45 [2] : vector<2x16x16xf32> to vector<2x16xf32>
    %98 = vector.shape_cast %97 : vector<2x16xf32> to vector<2x16x1xf32>
    %99 = vector.broadcast %98 : vector<2x16x1xf32> to vector<2x16x16xf32>
    %100 = arith.divf %96, %99 : vector<2x16x16xf32>
    %101 = arith.truncf %100 : vector<2x16x16xf32> to vector<2x16x16xbf16>
    %102 = vector.extract_strided_slice %84 {offsets = [0, 0, 0], sizes = [2, 16, 32], strides = [1, 1, 1]} : vector<2x16x128xbf16> to vector<2x16x32xbf16>
    "tpu.trace_start"() <{level = 10 : i32, message = "bqk,bkd->bqd"}> : () -> ()
    %cst_46 = arith.constant dense<0.000000e+00> : vector<2x16x32xf32>
    %103 = tpu.matmul %101, %102, %cst_46 {dimension_numbers = #tpu.dot_dimension_numbers<[2], [1], [1], [2], [0, 0, 0, 1, 1, 2], [0], [0]>} : vector<2x16x16xbf16>, vector<2x16x32xbf16>, vector<2x16x32xf32> -> vector<2x16x32xf32>
    "tpu.trace_stop"() : () -> ()
    %104 = vector.shape_cast %103 : vector<2x16x32xf32> to vector<32x32xf32>
    %105 = arith.truncf %104 : vector<32x32xf32> to vector<32x32xbf16>
    %106 = vector.extract_strided_slice %75 {offsets = [0, 0], sizes = [32, 128], strides = [1, 1]} : vector<128x128xbf16> to vector<32x128xbf16>
    %cst_47 = arith.constant dense<0.000000e+00> : vector<32x128xf32>
    %107 = tpu.matmul %105, %106, %cst_47 {dimension_numbers = #tpu.dot_dimension_numbers<[1], [0], [0], [1], [0, 0, 1, 1], [], []>} : vector<32x32xbf16>, vector<32x128xbf16>, vector<32x128xf32> -> vector<32x128xf32>
    %108 = vector.extract_strided_slice %80 {offsets = [0, 0, 32], sizes = [2, 16, 32], strides = [1, 1, 1]} : vector<2x16x128xbf16> to vector<2x16x32xbf16>
    %109 = vector.extract_strided_slice %82 {offsets = [0, 0, 32], sizes = [2, 16, 32], strides = [1, 1, 1]} : vector<2x16x128xbf16> to vector<2x16x32xbf16>
    "tpu.trace_start"() <{level = 10 : i32, message = "bqd,bkd->bqk"}> : () -> ()
    %cst_48 = arith.constant dense<0.000000e+00> : vector<2x16x16xf32>
    %110 = tpu.matmul %108, %109, %cst_48 {dimension_numbers = #tpu.dot_dimension_numbers<[2], [2], [1], [1], [0, 0, 0, 1, 1, 1], [0], [0]>} : vector<2x16x32xbf16>, vector<2x16x32xbf16>, vector<2x16x16xf32> -> vector<2x16x16xf32>
    "tpu.trace_stop"() : () -> ()
    %cst_49 = arith.constant 0.176776692 : f32
    %111 = vector.broadcast %cst_49 : f32 to vector<2x16x16xf32>
    %112 = arith.mulf %110, %111 : vector<2x16x16xf32>
    %113 = vector.broadcast %73 : vector<1x1x16xf32> to vector<2x16x16xf32>
    %114 = arith.addf %112, %113 : vector<2x16x16xf32>
    %cst_50 = arith.constant dense<0xFF800000> : vector<2x16xf32>
    %115 = vector.multi_reduction <maximumf>, %114, %cst_50 [2] : vector<2x16x16xf32> to vector<2x16xf32>
    %116 = vector.shape_cast %115 : vector<2x16xf32> to vector<2x16x1xf32>
    %117 = vector.broadcast %116 : vector<2x16x1xf32> to vector<2x16x16xf32>
    %118 = arith.subf %114, %117 : vector<2x16x16xf32>
    %119 = math.exp %118 : vector<2x16x16xf32>
    %cst_51 = arith.constant dense<0.000000e+00> : vector<2x16xf32>
    %120 = vector.multi_reduction <add>, %119, %cst_51 [2] : vector<2x16x16xf32> to vector<2x16xf32>
    %121 = vector.shape_cast %120 : vector<2x16xf32> to vector<2x16x1xf32>
    %122 = vector.broadcast %121 : vector<2x16x1xf32> to vector<2x16x16xf32>
    %123 = arith.divf %119, %122 : vector<2x16x16xf32>
    %124 = arith.truncf %123 : vector<2x16x16xf32> to vector<2x16x16xbf16>
    %125 = vector.extract_strided_slice %84 {offsets = [0, 0, 32], sizes = [2, 16, 32], strides = [1, 1, 1]} : vector<2x16x128xbf16> to vector<2x16x32xbf16>
    "tpu.trace_start"() <{level = 10 : i32, message = "bqk,bkd->bqd"}> : () -> ()
    %cst_52 = arith.constant dense<0.000000e+00> : vector<2x16x32xf32>
    %126 = tpu.matmul %124, %125, %cst_52 {dimension_numbers = #tpu.dot_dimension_numbers<[2], [1], [1], [2], [0, 0, 0, 1, 1, 2], [0], [0]>} : vector<2x16x16xbf16>, vector<2x16x32xbf16>, vector<2x16x32xf32> -> vector<2x16x32xf32>
    "tpu.trace_stop"() : () -> ()
    %127 = vector.shape_cast %126 : vector<2x16x32xf32> to vector<32x32xf32>
    %128 = arith.truncf %127 : vector<32x32xf32> to vector<32x32xbf16>
    %129 = vector.extract_strided_slice %75 {offsets = [32, 0], sizes = [32, 128], strides = [1, 1]} : vector<128x128xbf16> to vector<32x128xbf16>
    %cst_53 = arith.constant dense<0.000000e+00> : vector<32x128xf32>
    %130 = tpu.matmul %128, %129, %cst_53 {dimension_numbers = #tpu.dot_dimension_numbers<[1], [0], [0], [1], [0, 0, 1, 1], [], []>} : vector<32x32xbf16>, vector<32x128xbf16>, vector<32x128xf32> -> vector<32x128xf32>
    %131 = arith.addf %107, %130 : vector<32x128xf32>
    %132 = vector.extract_strided_slice %80 {offsets = [0, 0, 64], sizes = [2, 16, 32], strides = [1, 1, 1]} : vector<2x16x128xbf16> to vector<2x16x32xbf16>
    %133 = vector.extract_strided_slice %82 {offsets = [0, 0, 64], sizes = [2, 16, 32], strides = [1, 1, 1]} : vector<2x16x128xbf16> to vector<2x16x32xbf16>
    "tpu.trace_start"() <{level = 10 : i32, message = "bqd,bkd->bqk"}> : () -> ()
    %cst_54 = arith.constant dense<0.000000e+00> : vector<2x16x16xf32>
    %134 = tpu.matmul %132, %133, %cst_54 {dimension_numbers = #tpu.dot_dimension_numbers<[2], [2], [1], [1], [0, 0, 0, 1, 1, 1], [0], [0]>} : vector<2x16x32xbf16>, vector<2x16x32xbf16>, vector<2x16x16xf32> -> vector<2x16x16xf32>
    "tpu.trace_stop"() : () -> ()
    %cst_55 = arith.constant 0.176776692 : f32
    %135 = vector.broadcast %cst_55 : f32 to vector<2x16x16xf32>
    %136 = arith.mulf %134, %135 : vector<2x16x16xf32>
    %137 = vector.broadcast %73 : vector<1x1x16xf32> to vector<2x16x16xf32>
    %138 = arith.addf %136, %137 : vector<2x16x16xf32>
    %cst_56 = arith.constant dense<0xFF800000> : vector<2x16xf32>
    %139 = vector.multi_reduction <maximumf>, %138, %cst_56 [2] : vector<2x16x16xf32> to vector<2x16xf32>
    %140 = vector.shape_cast %139 : vector<2x16xf32> to vector<2x16x1xf32>
    %141 = vector.broadcast %140 : vector<2x16x1xf32> to vector<2x16x16xf32>
    %142 = arith.subf %138, %141 : vector<2x16x16xf32>
    %143 = math.exp %142 : vector<2x16x16xf32>
    %cst_57 = arith.constant dense<0.000000e+00> : vector<2x16xf32>
    %144 = vector.multi_reduction <add>, %143, %cst_57 [2] : vector<2x16x16xf32> to vector<2x16xf32>
    %145 = vector.shape_cast %144 : vector<2x16xf32> to vector<2x16x1xf32>
    %146 = vector.broadcast %145 : vector<2x16x1xf32> to vector<2x16x16xf32>
    %147 = arith.divf %143, %146 : vector<2x16x16xf32>
    %148 = arith.truncf %147 : vector<2x16x16xf32> to vector<2x16x16xbf16>
    %149 = vector.extract_strided_slice %84 {offsets = [0, 0, 64], sizes = [2, 16, 32], strides = [1, 1, 1]} : vector<2x16x128xbf16> to vector<2x16x32xbf16>
    "tpu.trace_start"() <{level = 10 : i32, message = "bqk,bkd->bqd"}> : () -> ()
    %cst_58 = arith.constant dense<0.000000e+00> : vector<2x16x32xf32>
    %150 = tpu.matmul %148, %149, %cst_58 {dimension_numbers = #tpu.dot_dimension_numbers<[2], [1], [1], [2], [0, 0, 0, 1, 1, 2], [0], [0]>} : vector<2x16x16xbf16>, vector<2x16x32xbf16>, vector<2x16x32xf32> -> vector<2x16x32xf32>
    "tpu.trace_stop"() : () -> ()
    %151 = vector.shape_cast %150 : vector<2x16x32xf32> to vector<32x32xf32>
    %152 = arith.truncf %151 : vector<32x32xf32> to vector<32x32xbf16>
    %153 = vector.extract_strided_slice %75 {offsets = [64, 0], sizes = [32, 128], strides = [1, 1]} : vector<128x128xbf16> to vector<32x128xbf16>
    %cst_59 = arith.constant dense<0.000000e+00> : vector<32x128xf32>
    %154 = tpu.matmul %152, %153, %cst_59 {dimension_numbers = #tpu.dot_dimension_numbers<[1], [0], [0], [1], [0, 0, 1, 1], [], []>} : vector<32x32xbf16>, vector<32x128xbf16>, vector<32x128xf32> -> vector<32x128xf32>
    %155 = arith.addf %131, %154 : vector<32x128xf32>
    %156 = vector.extract_strided_slice %80 {offsets = [0, 0, 96], sizes = [2, 16, 32], strides = [1, 1, 1]} : vector<2x16x128xbf16> to vector<2x16x32xbf16>
    %157 = vector.extract_strided_slice %82 {offsets = [0, 0, 96], sizes = [2, 16, 32], strides = [1, 1, 1]} : vector<2x16x128xbf16> to vector<2x16x32xbf16>
    "tpu.trace_start"() <{level = 10 : i32, message = "bqd,bkd->bqk"}> : () -> ()
    %cst_60 = arith.constant dense<0.000000e+00> : vector<2x16x16xf32>
    %158 = tpu.matmul %156, %157, %cst_60 {dimension_numbers = #tpu.dot_dimension_numbers<[2], [2], [1], [1], [0, 0, 0, 1, 1, 1], [0], [0]>} : vector<2x16x32xbf16>, vector<2x16x32xbf16>, vector<2x16x16xf32> -> vector<2x16x16xf32>
    "tpu.trace_stop"() : () -> ()
    %cst_61 = arith.constant 0.176776692 : f32
    %159 = vector.broadcast %cst_61 : f32 to vector<2x16x16xf32>
    %160 = arith.mulf %158, %159 : vector<2x16x16xf32>
    %161 = vector.broadcast %73 : vector<1x1x16xf32> to vector<2x16x16xf32>
    %162 = arith.addf %160, %161 : vector<2x16x16xf32>
    %cst_62 = arith.constant dense<0xFF800000> : vector<2x16xf32>
    %163 = vector.multi_reduction <maximumf>, %162, %cst_62 [2] : vector<2x16x16xf32> to vector<2x16xf32>
    %164 = vector.shape_cast %163 : vector<2x16xf32> to vector<2x16x1xf32>
    %165 = vector.broadcast %164 : vector<2x16x1xf32> to vector<2x16x16xf32>
    %166 = arith.subf %162, %165 : vector<2x16x16xf32>
    %167 = math.exp %166 : vector<2x16x16xf32>
    %cst_63 = arith.constant dense<0.000000e+00> : vector<2x16xf32>
    %168 = vector.multi_reduction <add>, %167, %cst_63 [2] : vector<2x16x16xf32> to vector<2x16xf32>
    %169 = vector.shape_cast %168 : vector<2x16xf32> to vector<2x16x1xf32>
    %170 = vector.broadcast %169 : vector<2x16x1xf32> to vector<2x16x16xf32>
    %171 = arith.divf %167, %170 : vector<2x16x16xf32>
    %172 = arith.truncf %171 : vector<2x16x16xf32> to vector<2x16x16xbf16>
    %173 = vector.extract_strided_slice %84 {offsets = [0, 0, 96], sizes = [2, 16, 32], strides = [1, 1, 1]} : vector<2x16x128xbf16> to vector<2x16x32xbf16>
    "tpu.trace_start"() <{level = 10 : i32, message = "bqk,bkd->bqd"}> : () -> ()
    %cst_64 = arith.constant dense<0.000000e+00> : vector<2x16x32xf32>
    %174 = tpu.matmul %172, %173, %cst_64 {dimension_numbers = #tpu.dot_dimension_numbers<[2], [1], [1], [2], [0, 0, 0, 1, 1, 2], [0], [0]>} : vector<2x16x16xbf16>, vector<2x16x32xbf16>, vector<2x16x32xf32> -> vector<2x16x32xf32>
    "tpu.trace_stop"() : () -> ()
    %175 = vector.shape_cast %174 : vector<2x16x32xf32> to vector<32x32xf32>
    %176 = arith.truncf %175 : vector<32x32xf32> to vector<32x32xbf16>
    %177 = vector.extract_strided_slice %75 {offsets = [96, 0], sizes = [32, 128], strides = [1, 1]} : vector<128x128xbf16> to vector<32x128xbf16>
    %cst_65 = arith.constant dense<0.000000e+00> : vector<32x128xf32>
    %178 = tpu.matmul %176, %177, %cst_65 {dimension_numbers = #tpu.dot_dimension_numbers<[1], [0], [0], [1], [0, 0, 1, 1], [], []>} : vector<32x32xbf16>, vector<32x128xbf16>, vector<32x128xf32> -> vector<32x128xf32>
    %179 = arith.addf %155, %178 : vector<32x128xf32>
    %180 = vector.broadcast %78 : vector<1x128xf32> to vector<32x128xf32>
    %181 = arith.addf %179, %180 : vector<32x128xf32>
    %182 = arith.addf %13, %181 : vector<32x128xf32>
    %c0_66 = arith.constant 0 : index
    %c0_67 = arith.constant 0 : index
    %c0_68 = arith.constant 0 : index
    %183 = vector.load %arg13[%c0_66, %c0_67, %c0_68] : memref<1x1x128xbf16, #tpu.memory_space<vmem>>, vector<1x1x128xbf16>
    %184 = vector.shape_cast %183 : vector<1x1x128xbf16> to vector<1x128xbf16>
    %185 = arith.extf %184 : vector<1x128xbf16> to vector<1x128xf32>
    %186 = arith.mulf %182, %182 : vector<32x128xf32>
    %cst_69 = arith.constant dense<0.000000e+00> : vector<32xf32>
    %187 = vector.multi_reduction <add>, %186, %cst_69 [1] : vector<32x128xf32> to vector<32xf32>
    %188 = vector.shape_cast %187 : vector<32xf32> to vector<32x1xf32>
    %cst_70 = arith.constant 1.280000e+02 : f32
    %189 = vector.broadcast %cst_70 : f32 to vector<32x1xf32>
    %190 = arith.divf %188, %189 : vector<32x1xf32>
    %cst_71 = arith.constant 9.99999997E-7 : f32
    %191 = vector.broadcast %cst_71 : f32 to vector<32x1xf32>
    %192 = arith.addf %190, %191 : vector<32x1xf32>
    %193 = math.rsqrt %192 : vector<32x1xf32>
    %194 = vector.broadcast %193 : vector<32x1xf32> to vector<32x128xf32>
    %195 = arith.mulf %182, %194 : vector<32x128xf32>
    %196 = vector.broadcast %185 : vector<1x128xf32> to vector<32x128xf32>
    %197 = arith.mulf %195, %196 : vector<32x128xf32>
    %198 = arith.truncf %197 : vector<32x128xf32> to vector<32x128xbf16>
    %c0_72 = arith.constant 0 : index
    %c0_73 = arith.constant 0 : index
    %c0_74 = arith.constant 0 : index
    %199 = vector.load %arg14[%c0_72, %c0_73, %c0_74] : memref<1x128x128xbf16, #tpu.memory_space<vmem>>, vector<1x128x128xbf16>
    %200 = vector.shape_cast %199 : vector<1x128x128xbf16> to vector<128x128xbf16>
    %cst_75 = arith.constant dense<0.000000e+00> : vector<32x128xf32>
    %201 = tpu.matmul %198, %200, %cst_75 {dimension_numbers = #tpu.dot_dimension_numbers<[1], [0], [0], [1], [0, 0, 1, 1], [], []>} : vector<32x128xbf16>, vector<128x128xbf16>, vector<32x128xf32> -> vector<32x128xf32>
    %c0_76 = arith.constant 0 : index
    %c0_77 = arith.constant 0 : index
    %c0_78 = arith.constant 0 : index
    %202 = vector.load %arg15[%c0_76, %c0_77, %c0_78] : memref<1x1x128xbf16, #tpu.memory_space<vmem>>, vector<1x1x128xbf16>
    %203 = vector.shape_cast %202 : vector<1x1x128xbf16> to vector<1x128xbf16>
    %204 = arith.extf %203 : vector<1x128xbf16> to vector<1x128xf32>
    %205 = vector.broadcast %204 : vector<1x128xf32> to vector<32x128xf32>
    %206 = arith.addf %201, %205 : vector<32x128xf32>
    %c0_79 = arith.constant 0 : index
    %c0_80 = arith.constant 0 : index
    %c0_81 = arith.constant 0 : index
    %207 = vector.load %arg16[%c0_79, %c0_80, %c0_81] : memref<1x128x256xbf16, #tpu.memory_space<vmem>>, vector<1x128x256xbf16>
    %208 = vector.shape_cast %207 : vector<1x128x256xbf16> to vector<128x256xbf16>
    %cst_82 = arith.constant dense<0.000000e+00> : vector<32x256xf32>
    %209 = tpu.matmul %16, %208, %cst_82 {dimension_numbers = #tpu.dot_dimension_numbers<[1], [0], [0], [1], [0, 0, 1, 1], [], []>} : vector<32x128xbf16>, vector<128x256xbf16>, vector<32x256xf32> -> vector<32x256xf32>
    %c0_83 = arith.constant 0 : index
    %c0_84 = arith.constant 0 : index
    %c0_85 = arith.constant 0 : index
    %210 = vector.load %arg17[%c0_83, %c0_84, %c0_85] : memref<1x1x256xbf16, #tpu.memory_space<vmem>>, vector<1x1x256xbf16>
    %211 = vector.shape_cast %210 : vector<1x1x256xbf16> to vector<1x256xbf16>
    %212 = arith.extf %211 : vector<1x256xbf16> to vector<1x256xf32>
    %213 = vector.broadcast %212 : vector<1x256xf32> to vector<32x256xf32>
    %214 = arith.addf %209, %213 : vector<32x256xf32>
    %c0_86 = arith.constant 0 : index
    %c0_87 = arith.constant 0 : index
    %c0_88 = arith.constant 0 : index
    %215 = vector.load %arg18[%c0_86, %c0_87, %c0_88] : memref<1x1x128xbf16, #tpu.memory_space<vmem>>, vector<1x1x128xbf16>
    %216 = vector.shape_cast %215 : vector<1x1x128xbf16> to vector<1x128xbf16>
    %217 = arith.extf %216 : vector<1x128xbf16> to vector<1x128xf32>
    %218 = arith.mulf %206, %206 : vector<32x128xf32>
    %219 = arith.truncf %218 : vector<32x128xf32> to vector<32x128xbf16>
    %cst_89 = arith.constant dense<0.000000e+00> : vector<32x128xf32>
    %220 = tpu.matmul %219, %21, %cst_89 {dimension_numbers = #tpu.dot_dimension_numbers<[1], [0], [0], [1], [0, 0, 1, 1], [], []>} : vector<32x128xbf16>, vector<128x128xbf16>, vector<32x128xf32> -> vector<32x128xf32>
    %cst_90 = arith.constant 9.99999997E-7 : f32
    %221 = vector.broadcast %cst_90 : f32 to vector<32x128xf32>
    %222 = arith.addf %220, %221 : vector<32x128xf32>
    %223 = math.rsqrt %222 : vector<32x128xf32>
    %224 = arith.mulf %206, %223 : vector<32x128xf32>
    %225 = vector.broadcast %217 : vector<1x128xf32> to vector<32x128xf32>
    %226 = arith.mulf %224, %225 : vector<32x128xf32>
    %227 = vector.extract_strided_slice %214 {offsets = [0, 0], sizes = [32, 128], strides = [1, 1]} : vector<32x256xf32> to vector<32x128xf32>
    %c0_91 = arith.constant 0 : index
    %c0_92 = arith.constant 0 : index
    %c0_93 = arith.constant 0 : index
    %228 = vector.load %arg19[%c0_91, %c0_92, %c0_93] : memref<1x1x128xbf16, #tpu.memory_space<vmem>>, vector<1x1x128xbf16>
    %229 = vector.shape_cast %228 : vector<1x1x128xbf16> to vector<1x128xbf16>
    %230 = arith.extf %229 : vector<1x128xbf16> to vector<1x128xf32>
    %231 = arith.mulf %227, %227 : vector<32x128xf32>
    %232 = arith.truncf %231 : vector<32x128xf32> to vector<32x128xbf16>
    %cst_94 = arith.constant dense<0.000000e+00> : vector<32x128xf32>
    %233 = tpu.matmul %232, %21, %cst_94 {dimension_numbers = #tpu.dot_dimension_numbers<[1], [0], [0], [1], [0, 0, 1, 1], [], []>} : vector<32x128xbf16>, vector<128x128xbf16>, vector<32x128xf32> -> vector<32x128xf32>
    %cst_95 = arith.constant 9.99999997E-7 : f32
    %234 = vector.broadcast %cst_95 : f32 to vector<32x128xf32>
    %235 = arith.addf %233, %234 : vector<32x128xf32>
    %236 = math.rsqrt %235 : vector<32x128xf32>
    %237 = arith.mulf %227, %236 : vector<32x128xf32>
    %238 = vector.broadcast %230 : vector<1x128xf32> to vector<32x128xf32>
    %239 = arith.mulf %237, %238 : vector<32x128xf32>
    %240 = vector.extract_strided_slice %214 {offsets = [0, 128], sizes = [32, 128], strides = [1, 1]} : vector<32x256xf32> to vector<32x128xf32>
    %241 = vector.shape_cast %19 : vector<2x16xf32> to vector<2x1x16xf32>
    %c0_96 = arith.constant 0 : index
    %c0_97 = arith.constant 0 : index
    %c0_98 = arith.constant 0 : index
    %242 = vector.load %arg20[%c0_96, %c0_97, %c0_98] : memref<1x128x128xbf16, #tpu.memory_space<vmem>>, vector<1x128x128xbf16>
    %243 = vector.shape_cast %242 : vector<1x128x128xbf16> to vector<128x128xbf16>
    %c0_99 = arith.constant 0 : index
    %c0_100 = arith.constant 0 : index
    %c0_101 = arith.constant 0 : index
    %244 = vector.load %arg21[%c0_99, %c0_100, %c0_101] : memref<1x1x128xbf16, #tpu.memory_space<vmem>>, vector<1x1x128xbf16>
    %245 = vector.shape_cast %244 : vector<1x1x128xbf16> to vector<1x128xbf16>
    %246 = arith.extf %245 : vector<1x128xbf16> to vector<1x128xf32>
    %247 = arith.truncf %226 : vector<32x128xf32> to vector<32x128xbf16>
    %248 = vector.shape_cast %247 : vector<32x128xbf16> to vector<2x16x128xbf16>
    %249 = arith.truncf %239 : vector<32x128xf32> to vector<32x128xbf16>
    %250 = vector.shape_cast %249 : vector<32x128xbf16> to vector<2x16x128xbf16>
    %251 = arith.truncf %240 : vector<32x128xf32> to vector<32x128xbf16>
    %252 = vector.shape_cast %251 : vector<32x128xbf16> to vector<2x16x128xbf16>
    %253 = vector.extract_strided_slice %248 {offsets = [0, 0, 0], sizes = [2, 16, 32], strides = [1, 1, 1]} : vector<2x16x128xbf16> to vector<2x16x32xbf16>
    %254 = vector.extract_strided_slice %250 {offsets = [0, 0, 0], sizes = [2, 16, 32], strides = [1, 1, 1]} : vector<2x16x128xbf16> to vector<2x16x32xbf16>
    "tpu.trace_start"() <{level = 10 : i32, message = "bqd,bkd->bqk"}> : () -> ()
    %cst_102 = arith.constant dense<0.000000e+00> : vector<2x16x16xf32>
    %255 = tpu.matmul %253, %254, %cst_102 {dimension_numbers = #tpu.dot_dimension_numbers<[2], [2], [1], [1], [0, 0, 0, 1, 1, 1], [0], [0]>} : vector<2x16x32xbf16>, vector<2x16x32xbf16>, vector<2x16x16xf32> -> vector<2x16x16xf32>
    "tpu.trace_stop"() : () -> ()
    %cst_103 = arith.constant 0.176776692 : f32
    %256 = vector.broadcast %cst_103 : f32 to vector<2x16x16xf32>
    %257 = arith.mulf %255, %256 : vector<2x16x16xf32>
    %258 = vector.broadcast %241 : vector<2x1x16xf32> to vector<2x16x16xf32>
    %259 = arith.addf %257, %258 : vector<2x16x16xf32>
    %cst_104 = arith.constant dense<0xFF800000> : vector<2x16xf32>
    %260 = vector.multi_reduction <maximumf>, %259, %cst_104 [2] : vector<2x16x16xf32> to vector<2x16xf32>
    %261 = vector.shape_cast %260 : vector<2x16xf32> to vector<2x16x1xf32>
    %262 = vector.broadcast %261 : vector<2x16x1xf32> to vector<2x16x16xf32>
    %263 = arith.subf %259, %262 : vector<2x16x16xf32>
    %264 = math.exp %263 : vector<2x16x16xf32>
    %cst_105 = arith.constant dense<0.000000e+00> : vector<2x16xf32>
    %265 = vector.multi_reduction <add>, %264, %cst_105 [2] : vector<2x16x16xf32> to vector<2x16xf32>
    %266 = vector.shape_cast %265 : vector<2x16xf32> to vector<2x16x1xf32>
    %267 = vector.broadcast %266 : vector<2x16x1xf32> to vector<2x16x16xf32>
    %268 = arith.divf %264, %267 : vector<2x16x16xf32>
    %269 = arith.truncf %268 : vector<2x16x16xf32> to vector<2x16x16xbf16>
    %270 = vector.extract_strided_slice %252 {offsets = [0, 0, 0], sizes = [2, 16, 32], strides = [1, 1, 1]} : vector<2x16x128xbf16> to vector<2x16x32xbf16>
    "tpu.trace_start"() <{level = 10 : i32, message = "bqk,bkd->bqd"}> : () -> ()
    %cst_106 = arith.constant dense<0.000000e+00> : vector<2x16x32xf32>
    %271 = tpu.matmul %269, %270, %cst_106 {dimension_numbers = #tpu.dot_dimension_numbers<[2], [1], [1], [2], [0, 0, 0, 1, 1, 2], [0], [0]>} : vector<2x16x16xbf16>, vector<2x16x32xbf16>, vector<2x16x32xf32> -> vector<2x16x32xf32>
    "tpu.trace_stop"() : () -> ()
    %272 = vector.shape_cast %271 : vector<2x16x32xf32> to vector<32x32xf32>
    %273 = arith.truncf %272 : vector<32x32xf32> to vector<32x32xbf16>
    %274 = vector.extract_strided_slice %243 {offsets = [0, 0], sizes = [32, 128], strides = [1, 1]} : vector<128x128xbf16> to vector<32x128xbf16>
    %cst_107 = arith.constant dense<0.000000e+00> : vector<32x128xf32>
    %275 = tpu.matmul %273, %274, %cst_107 {dimension_numbers = #tpu.dot_dimension_numbers<[1], [0], [0], [1], [0, 0, 1, 1], [], []>} : vector<32x32xbf16>, vector<32x128xbf16>, vector<32x128xf32> -> vector<32x128xf32>
    %276 = vector.extract_strided_slice %248 {offsets = [0, 0, 32], sizes = [2, 16, 32], strides = [1, 1, 1]} : vector<2x16x128xbf16> to vector<2x16x32xbf16>
    %277 = vector.extract_strided_slice %250 {offsets = [0, 0, 32], sizes = [2, 16, 32], strides = [1, 1, 1]} : vector<2x16x128xbf16> to vector<2x16x32xbf16>
    "tpu.trace_start"() <{level = 10 : i32, message = "bqd,bkd->bqk"}> : () -> ()
    %cst_108 = arith.constant dense<0.000000e+00> : vector<2x16x16xf32>
    %278 = tpu.matmul %276, %277, %cst_108 {dimension_numbers = #tpu.dot_dimension_numbers<[2], [2], [1], [1], [0, 0, 0, 1, 1, 1], [0], [0]>} : vector<2x16x32xbf16>, vector<2x16x32xbf16>, vector<2x16x16xf32> -> vector<2x16x16xf32>
    "tpu.trace_stop"() : () -> ()
    %cst_109 = arith.constant 0.176776692 : f32
    %279 = vector.broadcast %cst_109 : f32 to vector<2x16x16xf32>
    %280 = arith.mulf %278, %279 : vector<2x16x16xf32>
    %281 = vector.broadcast %241 : vector<2x1x16xf32> to vector<2x16x16xf32>
    %282 = arith.addf %280, %281 : vector<2x16x16xf32>
    %cst_110 = arith.constant dense<0xFF800000> : vector<2x16xf32>
    %283 = vector.multi_reduction <maximumf>, %282, %cst_110 [2] : vector<2x16x16xf32> to vector<2x16xf32>
    %284 = vector.shape_cast %283 : vector<2x16xf32> to vector<2x16x1xf32>
    %285 = vector.broadcast %284 : vector<2x16x1xf32> to vector<2x16x16xf32>
    %286 = arith.subf %282, %285 : vector<2x16x16xf32>
    %287 = math.exp %286 : vector<2x16x16xf32>
    %cst_111 = arith.constant dense<0.000000e+00> : vector<2x16xf32>
    %288 = vector.multi_reduction <add>, %287, %cst_111 [2] : vector<2x16x16xf32> to vector<2x16xf32>
    %289 = vector.shape_cast %288 : vector<2x16xf32> to vector<2x16x1xf32>
    %290 = vector.broadcast %289 : vector<2x16x1xf32> to vector<2x16x16xf32>
    %291 = arith.divf %287, %290 : vector<2x16x16xf32>
    %292 = arith.truncf %291 : vector<2x16x16xf32> to vector<2x16x16xbf16>
    %293 = vector.extract_strided_slice %252 {offsets = [0, 0, 32], sizes = [2, 16, 32], strides = [1, 1, 1]} : vector<2x16x128xbf16> to vector<2x16x32xbf16>
    "tpu.trace_start"() <{level = 10 : i32, message = "bqk,bkd->bqd"}> : () -> ()
    %cst_112 = arith.constant dense<0.000000e+00> : vector<2x16x32xf32>
    %294 = tpu.matmul %292, %293, %cst_112 {dimension_numbers = #tpu.dot_dimension_numbers<[2], [1], [1], [2], [0, 0, 0, 1, 1, 2], [0], [0]>} : vector<2x16x16xbf16>, vector<2x16x32xbf16>, vector<2x16x32xf32> -> vector<2x16x32xf32>
    "tpu.trace_stop"() : () -> ()
    %295 = vector.shape_cast %294 : vector<2x16x32xf32> to vector<32x32xf32>
    %296 = arith.truncf %295 : vector<32x32xf32> to vector<32x32xbf16>
    %297 = vector.extract_strided_slice %243 {offsets = [32, 0], sizes = [32, 128], strides = [1, 1]} : vector<128x128xbf16> to vector<32x128xbf16>
    %cst_113 = arith.constant dense<0.000000e+00> : vector<32x128xf32>
    %298 = tpu.matmul %296, %297, %cst_113 {dimension_numbers = #tpu.dot_dimension_numbers<[1], [0], [0], [1], [0, 0, 1, 1], [], []>} : vector<32x32xbf16>, vector<32x128xbf16>, vector<32x128xf32> -> vector<32x128xf32>
    %299 = arith.addf %275, %298 : vector<32x128xf32>
    %300 = vector.extract_strided_slice %248 {offsets = [0, 0, 64], sizes = [2, 16, 32], strides = [1, 1, 1]} : vector<2x16x128xbf16> to vector<2x16x32xbf16>
    %301 = vector.extract_strided_slice %250 {offsets = [0, 0, 64], sizes = [2, 16, 32], strides = [1, 1, 1]} : vector<2x16x128xbf16> to vector<2x16x32xbf16>
    "tpu.trace_start"() <{level = 10 : i32, message = "bqd,bkd->bqk"}> : () -> ()
    %cst_114 = arith.constant dense<0.000000e+00> : vector<2x16x16xf32>
    %302 = tpu.matmul %300, %301, %cst_114 {dimension_numbers = #tpu.dot_dimension_numbers<[2], [2], [1], [1], [0, 0, 0, 1, 1, 1], [0], [0]>} : vector<2x16x32xbf16>, vector<2x16x32xbf16>, vector<2x16x16xf32> -> vector<2x16x16xf32>
    "tpu.trace_stop"() : () -> ()
    %cst_115 = arith.constant 0.176776692 : f32
    %303 = vector.broadcast %cst_115 : f32 to vector<2x16x16xf32>
    %304 = arith.mulf %302, %303 : vector<2x16x16xf32>
    %305 = vector.broadcast %241 : vector<2x1x16xf32> to vector<2x16x16xf32>
    %306 = arith.addf %304, %305 : vector<2x16x16xf32>
    %cst_116 = arith.constant dense<0xFF800000> : vector<2x16xf32>
    %307 = vector.multi_reduction <maximumf>, %306, %cst_116 [2] : vector<2x16x16xf32> to vector<2x16xf32>
    %308 = vector.shape_cast %307 : vector<2x16xf32> to vector<2x16x1xf32>
    %309 = vector.broadcast %308 : vector<2x16x1xf32> to vector<2x16x16xf32>
    %310 = arith.subf %306, %309 : vector<2x16x16xf32>
    %311 = math.exp %310 : vector<2x16x16xf32>
    %cst_117 = arith.constant dense<0.000000e+00> : vector<2x16xf32>
    %312 = vector.multi_reduction <add>, %311, %cst_117 [2] : vector<2x16x16xf32> to vector<2x16xf32>
    %313 = vector.shape_cast %312 : vector<2x16xf32> to vector<2x16x1xf32>
    %314 = vector.broadcast %313 : vector<2x16x1xf32> to vector<2x16x16xf32>
    %315 = arith.divf %311, %314 : vector<2x16x16xf32>
    %316 = arith.truncf %315 : vector<2x16x16xf32> to vector<2x16x16xbf16>
    %317 = vector.extract_strided_slice %252 {offsets = [0, 0, 64], sizes = [2, 16, 32], strides = [1, 1, 1]} : vector<2x16x128xbf16> to vector<2x16x32xbf16>
    "tpu.trace_start"() <{level = 10 : i32, message = "bqk,bkd->bqd"}> : () -> ()
    %cst_118 = arith.constant dense<0.000000e+00> : vector<2x16x32xf32>
    %318 = tpu.matmul %316, %317, %cst_118 {dimension_numbers = #tpu.dot_dimension_numbers<[2], [1], [1], [2], [0, 0, 0, 1, 1, 2], [0], [0]>} : vector<2x16x16xbf16>, vector<2x16x32xbf16>, vector<2x16x32xf32> -> vector<2x16x32xf32>
    "tpu.trace_stop"() : () -> ()
    %319 = vector.shape_cast %318 : vector<2x16x32xf32> to vector<32x32xf32>
    %320 = arith.truncf %319 : vector<32x32xf32> to vector<32x32xbf16>
    %321 = vector.extract_strided_slice %243 {offsets = [64, 0], sizes = [32, 128], strides = [1, 1]} : vector<128x128xbf16> to vector<32x128xbf16>
    %cst_119 = arith.constant dense<0.000000e+00> : vector<32x128xf32>
    %322 = tpu.matmul %320, %321, %cst_119 {dimension_numbers = #tpu.dot_dimension_numbers<[1], [0], [0], [1], [0, 0, 1, 1], [], []>} : vector<32x32xbf16>, vector<32x128xbf16>, vector<32x128xf32> -> vector<32x128xf32>
    %323 = arith.addf %299, %322 : vector<32x128xf32>
    %324 = vector.extract_strided_slice %248 {offsets = [0, 0, 96], sizes = [2, 16, 32], strides = [1, 1, 1]} : vector<2x16x128xbf16> to vector<2x16x32xbf16>
    %325 = vector.extract_strided_slice %250 {offsets = [0, 0, 96], sizes = [2, 16, 32], strides = [1, 1, 1]} : vector<2x16x128xbf16> to vector<2x16x32xbf16>
    "tpu.trace_start"() <{level = 10 : i32, message = "bqd,bkd->bqk"}> : () -> ()
    %cst_120 = arith.constant dense<0.000000e+00> : vector<2x16x16xf32>
    %326 = tpu.matmul %324, %325, %cst_120 {dimension_numbers = #tpu.dot_dimension_numbers<[2], [2], [1], [1], [0, 0, 0, 1, 1, 1], [0], [0]>} : vector<2x16x32xbf16>, vector<2x16x32xbf16>, vector<2x16x16xf32> -> vector<2x16x16xf32>
    "tpu.trace_stop"() : () -> ()
    %cst_121 = arith.constant 0.176776692 : f32
    %327 = vector.broadcast %cst_121 : f32 to vector<2x16x16xf32>
    %328 = arith.mulf %326, %327 : vector<2x16x16xf32>
    %329 = vector.broadcast %241 : vector<2x1x16xf32> to vector<2x16x16xf32>
    %330 = arith.addf %328, %329 : vector<2x16x16xf32>
    %cst_122 = arith.constant dense<0xFF800000> : vector<2x16xf32>
    %331 = vector.multi_reduction <maximumf>, %330, %cst_122 [2] : vector<2x16x16xf32> to vector<2x16xf32>
    %332 = vector.shape_cast %331 : vector<2x16xf32> to vector<2x16x1xf32>
    %333 = vector.broadcast %332 : vector<2x16x1xf32> to vector<2x16x16xf32>
    %334 = arith.subf %330, %333 : vector<2x16x16xf32>
    %335 = math.exp %334 : vector<2x16x16xf32>
    %cst_123 = arith.constant dense<0.000000e+00> : vector<2x16xf32>
    %336 = vector.multi_reduction <add>, %335, %cst_123 [2] : vector<2x16x16xf32> to vector<2x16xf32>
    %337 = vector.shape_cast %336 : vector<2x16xf32> to vector<2x16x1xf32>
    %338 = vector.broadcast %337 : vector<2x16x1xf32> to vector<2x16x16xf32>
    %339 = arith.divf %335, %338 : vector<2x16x16xf32>
    %340 = arith.truncf %339 : vector<2x16x16xf32> to vector<2x16x16xbf16>
    %341 = vector.extract_strided_slice %252 {offsets = [0, 0, 96], sizes = [2, 16, 32], strides = [1, 1, 1]} : vector<2x16x128xbf16> to vector<2x16x32xbf16>
    "tpu.trace_start"() <{level = 10 : i32, message = "bqk,bkd->bqd"}> : () -> ()
    %cst_124 = arith.constant dense<0.000000e+00> : vector<2x16x32xf32>
    %342 = tpu.matmul %340, %341, %cst_124 {dimension_numbers = #tpu.dot_dimension_numbers<[2], [1], [1], [2], [0, 0, 0, 1, 1, 2], [0], [0]>} : vector<2x16x16xbf16>, vector<2x16x32xbf16>, vector<2x16x32xf32> -> vector<2x16x32xf32>
    "tpu.trace_stop"() : () -> ()
    %343 = vector.shape_cast %342 : vector<2x16x32xf32> to vector<32x32xf32>
    %344 = arith.truncf %343 : vector<32x32xf32> to vector<32x32xbf16>
    %345 = vector.extract_strided_slice %243 {offsets = [96, 0], sizes = [32, 128], strides = [1, 1]} : vector<128x128xbf16> to vector<32x128xbf16>
    %cst_125 = arith.constant dense<0.000000e+00> : vector<32x128xf32>
    %346 = tpu.matmul %344, %345, %cst_125 {dimension_numbers = #tpu.dot_dimension_numbers<[1], [0], [0], [1], [0, 0, 1, 1], [], []>} : vector<32x32xbf16>, vector<32x128xbf16>, vector<32x128xf32> -> vector<32x128xf32>
    %347 = arith.addf %323, %346 : vector<32x128xf32>
    %348 = vector.broadcast %246 : vector<1x128xf32> to vector<32x128xf32>
    %349 = arith.addf %347, %348 : vector<32x128xf32>
    %350 = arith.addf %182, %349 : vector<32x128xf32>
    %c0_126 = arith.constant 0 : index
    %c0_127 = arith.constant 0 : index
    %c0_128 = arith.constant 0 : index
    %351 = vector.load %arg22[%c0_126, %c0_127, %c0_128] : memref<1x1x128xbf16, #tpu.memory_space<vmem>>, vector<1x1x128xbf16>
    %352 = vector.shape_cast %351 : vector<1x1x128xbf16> to vector<1x128xbf16>
    %353 = arith.extf %352 : vector<1x128xbf16> to vector<1x128xf32>
    %354 = arith.mulf %350, %350 : vector<32x128xf32>
    %cst_129 = arith.constant dense<0.000000e+00> : vector<32xf32>
    %355 = vector.multi_reduction <add>, %354, %cst_129 [1] : vector<32x128xf32> to vector<32xf32>
    %356 = vector.shape_cast %355 : vector<32xf32> to vector<32x1xf32>
    %cst_130 = arith.constant 1.280000e+02 : f32
    %357 = vector.broadcast %cst_130 : f32 to vector<32x1xf32>
    %358 = arith.divf %356, %357 : vector<32x1xf32>
    %cst_131 = arith.constant 9.99999997E-7 : f32
    %359 = vector.broadcast %cst_131 : f32 to vector<32x1xf32>
    %360 = arith.addf %358, %359 : vector<32x1xf32>
    %361 = math.rsqrt %360 : vector<32x1xf32>
    %362 = vector.broadcast %361 : vector<32x1xf32> to vector<32x128xf32>
    %363 = arith.mulf %350, %362 : vector<32x128xf32>
    %364 = vector.broadcast %353 : vector<1x128xf32> to vector<32x128xf32>
    %365 = arith.mulf %363, %364 : vector<32x128xf32>
    %366 = arith.truncf %365 : vector<32x128xf32> to vector<32x128xbf16>
    %c0_132 = arith.constant 0 : index
    %c0_133 = arith.constant 0 : index
    %c0_134 = arith.constant 0 : index
    %367 = vector.load %arg23[%c0_132, %c0_133, %c0_134] : memref<1x128x128xbf16, #tpu.memory_space<vmem>>, vector<1x128x128xbf16>
    %368 = vector.shape_cast %367 : vector<1x128x128xbf16> to vector<128x128xbf16>
    %cst_135 = arith.constant dense<0.000000e+00> : vector<32x128xf32>
    %369 = tpu.matmul %366, %368, %cst_135 {dimension_numbers = #tpu.dot_dimension_numbers<[1], [0], [0], [1], [0, 0, 1, 1], [], []>} : vector<32x128xbf16>, vector<128x128xbf16>, vector<32x128xf32> -> vector<32x128xf32>
    %c0_136 = arith.constant 0 : index
    %c0_137 = arith.constant 0 : index
    %c0_138 = arith.constant 0 : index
    %370 = vector.load %arg24[%c0_136, %c0_137, %c0_138] : memref<1x1x128xbf16, #tpu.memory_space<vmem>>, vector<1x1x128xbf16>
    %371 = vector.shape_cast %370 : vector<1x1x128xbf16> to vector<1x128xbf16>
    %372 = arith.extf %371 : vector<1x128xbf16> to vector<1x128xf32>
    %373 = vector.broadcast %372 : vector<1x128xf32> to vector<32x128xf32>
    %374 = arith.addf %369, %373 : vector<32x128xf32>
    %cst_139 = arith.constant 5.000000e-01 : f32
    %375 = vector.broadcast %cst_139 : f32 to vector<32x128xf32>
    %376 = arith.mulf %375, %374 : vector<32x128xf32>
    %cst_140 = arith.constant 4.471500e-02 : f32
    %377 = vector.broadcast %cst_140 : f32 to vector<32x128xf32>
    %378 = arith.mulf %377, %374 : vector<32x128xf32>
    %379 = arith.mulf %378, %374 : vector<32x128xf32>
    %380 = arith.mulf %379, %374 : vector<32x128xf32>
    %381 = arith.addf %374, %380 : vector<32x128xf32>
    %cst_141 = arith.constant 0.797884583 : f32
    %382 = vector.broadcast %cst_141 : f32 to vector<32x128xf32>
    %383 = arith.mulf %382, %381 : vector<32x128xf32>
    %384 = math.tanh %383 : vector<32x128xf32>
    %cst_142 = arith.constant 1.000000e+00 : f32
    %385 = vector.broadcast %cst_142 : f32 to vector<32x128xf32>
    %386 = arith.addf %385, %384 : vector<32x128xf32>
    %387 = arith.mulf %376, %386 : vector<32x128xf32>
    %388 = arith.truncf %387 : vector<32x128xf32> to vector<32x128xbf16>
    %c0_143 = arith.constant 0 : index
    %c0_144 = arith.constant 0 : index
    %c0_145 = arith.constant 0 : index
    %389 = vector.load %arg25[%c0_143, %c0_144, %c0_145] : memref<1x128x128xbf16, #tpu.memory_space<vmem>>, vector<1x128x128xbf16>
    %390 = vector.shape_cast %389 : vector<1x128x128xbf16> to vector<128x128xbf16>
    %cst_146 = arith.constant dense<0.000000e+00> : vector<32x128xf32>
    %391 = tpu.matmul %388, %390, %cst_146 {dimension_numbers = #tpu.dot_dimension_numbers<[1], [0], [0], [1], [0, 0, 1, 1], [], []>} : vector<32x128xbf16>, vector<128x128xbf16>, vector<32x128xf32> -> vector<32x128xf32>
    %c0_147 = arith.constant 0 : index
    %c0_148 = arith.constant 0 : index
    %c0_149 = arith.constant 0 : index
    %392 = vector.load %arg26[%c0_147, %c0_148, %c0_149] : memref<1x1x128xbf16, #tpu.memory_space<vmem>>, vector<1x1x128xbf16>
    %393 = vector.shape_cast %392 : vector<1x1x128xbf16> to vector<1x128xbf16>
    %394 = arith.extf %393 : vector<1x128xbf16> to vector<1x128xf32>
    %395 = vector.broadcast %394 : vector<1x128xf32> to vector<32x128xf32>
    %396 = arith.addf %391, %395 : vector<32x128xf32>
    %397 = arith.addf %350, %396 : vector<32x128xf32>
    %c0_150 = arith.constant 0 : index
    %c0_151 = arith.constant 0 : index
    %398 = vector.load %arg33[%c0_150, %c0_151] : memref<32x128xf32, #tpu.memory_space<vmem>>, vector<32x128xf32>
    tpu.vector_store %arg33[%c0_150, %c0_151], %397 {strides = array<i32>} : memref<32x128xf32, #tpu.memory_space<vmem>>, vector<32x128xf32>,
    %c1_i32_152 = arith.constant 1 : i32
    %399 = arith.cmpi eq, %arg0, %c1_i32_152 : i32
    %400 = arith.extui %399 : i1 to i32
    %c0_i32_153 = arith.constant 0 : i32
    %401 = arith.cmpi ne, %400, %c0_i32_153 : i32
    scf.if %401 {
      %c0_154 = arith.constant 0 : index
      %c0_155 = arith.constant 0 : index
      %402 = vector.load %arg27[%c0_154, %c0_155] : memref<1x128xbf16, #tpu.memory_space<vmem>>, vector<1x128xbf16>
      %403 = arith.extf %402 : vector<1x128xbf16> to vector<1x128xf32>
      %404 = arith.mulf %397, %397 : vector<32x128xf32>
      %cst_156 = arith.constant dense<0.000000e+00> : vector<32xf32>
      %405 = vector.multi_reduction <add>, %404, %cst_156 [1] : vector<32x128xf32> to vector<32xf32>
      %406 = vector.shape_cast %405 : vector<32xf32> to vector<32x1xf32>
      %cst_157 = arith.constant 1.280000e+02 : f32
      %407 = vector.broadcast %cst_157 : f32 to vector<32x1xf32>
      %408 = arith.divf %406, %407 : vector<32x1xf32>
      %cst_158 = arith.constant 9.99999997E-7 : f32
      %409 = vector.broadcast %cst_158 : f32 to vector<32x1xf32>
      %410 = arith.addf %408, %409 : vector<32x1xf32>
      %411 = math.rsqrt %410 : vector<32x1xf32>
      %412 = vector.broadcast %411 : vector<32x1xf32> to vector<32x128xf32>
      %413 = arith.mulf %397, %412 : vector<32x128xf32>
      %414 = vector.broadcast %403 : vector<1x128xf32> to vector<32x128xf32>
      %415 = arith.mulf %413, %414 : vector<32x128xf32>
      %416 = arith.truncf %415 : vector<32x128xf32> to vector<32x128xbf16>
      %c0_159 = arith.constant 0 : index
      %c0_160 = arith.constant 0 : index
      %417 = vector.load %arg28[%c0_159, %c0_160] : memref<128x128xbf16, #tpu.memory_space<vmem>>, vector<128x128xbf16>
      %cst_161 = arith.constant dense<0.000000e+00> : vector<32x128xf32>
      %418 = tpu.matmul %416, %417, %cst_161 {dimension_numbers = #tpu.dot_dimension_numbers<[1], [0], [0], [1], [0, 0, 1, 1], [], []>} : vector<32x128xbf16>, vector<128x128xbf16>, vector<32x128xf32> -> vector<32x128xf32>
      %c0_162 = arith.constant 0 : index
      %c0_163 = arith.constant 0 : index
      %419 = vector.load %arg29[%c0_162, %c0_163] : memref<1x128xbf16, #tpu.memory_space<vmem>>, vector<1x128xbf16>
      %420 = arith.extf %419 : vector<1x128xbf16> to vector<1x128xf32>
      %421 = vector.broadcast %420 : vector<1x128xf32> to vector<32x128xf32>
      %422 = arith.addf %418, %421 : vector<32x128xf32>
      %cst_164 = arith.constant 5.000000e-01 : f32
      %423 = vector.broadcast %cst_164 : f32 to vector<32x128xf32>
      %424 = arith.mulf %423, %422 : vector<32x128xf32>
      %cst_165 = arith.constant 4.471500e-02 : f32
      %425 = vector.broadcast %cst_165 : f32 to vector<32x128xf32>
      %426 = arith.mulf %425, %422 : vector<32x128xf32>
      %427 = arith.mulf %426, %422 : vector<32x128xf32>
      %428 = arith.mulf %427, %422 : vector<32x128xf32>
      %429 = arith.addf %422, %428 : vector<32x128xf32>
      %cst_166 = arith.constant 0.797884583 : f32
      %430 = vector.broadcast %cst_166 : f32 to vector<32x128xf32>
      %431 = arith.mulf %430, %429 : vector<32x128xf32>
      %432 = math.tanh %431 : vector<32x128xf32>
      %cst_167 = arith.constant 1.000000e+00 : f32
      %433 = vector.broadcast %cst_167 : f32 to vector<32x128xf32>
      %434 = arith.addf %433, %432 : vector<32x128xf32>
      %435 = arith.mulf %424, %434 : vector<32x128xf32>
      %436 = arith.truncf %435 : vector<32x128xf32> to vector<32x128xbf16>
      %c0_168 = arith.constant 0 : index
      %c0_169 = arith.constant 0 : index
      %437 = vector.load %arg30[%c0_168, %c0_169] : memref<128x128xbf16, #tpu.memory_space<vmem>>, vector<128x128xbf16>
      %cst_170 = arith.constant dense<0.000000e+00> : vector<32x128xf32>
      %438 = tpu.matmul %436, %437, %cst_170 {dimension_numbers = #tpu.dot_dimension_numbers<[1], [0], [0], [1], [0, 0, 1, 1], [], []>} : vector<32x128xbf16>, vector<128x128xbf16>, vector<32x128xf32> -> vector<32x128xf32>
      %c0_171 = arith.constant 0 : index
      %c0_172 = arith.constant 0 : index
      %439 = vector.load %arg31[%c0_171, %c0_172] : memref<1x128xbf16, #tpu.memory_space<vmem>>, vector<1x128xbf16>
      %440 = arith.extf %439 : vector<1x128xbf16> to vector<1x128xf32>
      %441 = vector.broadcast %440 : vector<1x128xf32> to vector<32x128xf32>
      %442 = arith.addf %438, %441 : vector<32x128xf32>
      %443 = arith.truncf %442 : vector<32x128xf32> to vector<32x128xbf16>
      %c0_173 = arith.constant 0 : index
      %c0_174 = arith.constant 0 : index
      %444 = vector.load %arg32[%c0_173, %c0_174] : memref<32x128xbf16, #tpu.memory_space<vmem>>, vector<32x128xbf16>
      tpu.vector_store %arg32[%c0_173, %c0_174], %443 {strides = array<i32>} : memref<32x128xbf16, #tpu.memory_space<vmem>>, vector<32x128xbf16>,
    } else {
    }
    return
  }
  func.func @transform_0(%arg0: i32) -> (i32, i32) {
    %c0_i32 = arith.constant 0 : i32
    %c0_i32_0 = arith.constant 0 : i32
    %c0_i32_1 = arith.constant 0 : i32
    return %c0_i32, %c0_i32_0 : i32, i32
  }
  func.func @transform_1(%arg0: i32) -> (i32, i32, i32) {
    %c0_i32 = arith.constant 0 : i32
    %c0_i32_0 = arith.constant 0 : i32
    %c0_i32_1 = arith.constant 0 : i32
    %c0_i32_2 = arith.constant 0 : i32
    return %c0_i32, %c0_i32_0, %c0_i32_1 : i32, i32, i32
  }
  func.func @transform_2(%arg0: i32) -> (i32, i32, i32) {
    %c0_i32 = arith.constant 0 : i32
    %c0_i32_0 = arith.constant 0 : i32
    %c0_i32_1 = arith.constant 0 : i32
    %c0_i32_2 = arith.constant 0 : i32
    return %c0_i32, %c0_i32_0, %c0_i32_1 : i32, i32, i32
  }
  func.func @transform_3(%arg0: i32) -> (i32, i32) {
    %c0_i32 = arith.constant 0 : i32
    %c0_i32_0 = arith.constant 0 : i32
    %c0_i32_1 = arith.constant 0 : i32
    return %c0_i32, %c0_i32_0 : i32, i32
  }
  func.func @transform_4(%arg0: i32) -> (i32, i32) {
    %c0_i32 = arith.constant 0 : i32
    %c0_i32_0 = arith.constant 0 : i32
    %c0_i32_1 = arith.constant 0 : i32
    return %c0_i32, %c0_i32_0 : i32, i32
  }
  func.func @transform_5(%arg0: i32) -> (i32, i32, i32) {
    %c0_i32 = arith.constant 0 : i32
    %c0_i32_0 = arith.constant 0 : i32
    %c0_i32_1 = arith.constant 0 : i32
    return %arg0, %c0_i32, %c0_i32_0 : i32, i32, i32
  }
  func.func @transform_6(%arg0: i32) -> (i32, i32, i32) {
    %c0_i32 = arith.constant 0 : i32
    %c0_i32_0 = arith.constant 0 : i32
    %c0_i32_1 = arith.constant 0 : i32
    return %arg0, %c0_i32, %c0_i32_0 : i32, i32, i32
  }
  func.func @transform_7(%arg0: i32) -> (i32, i32, i32) {
    %c0_i32 = arith.constant 0 : i32
    %c0_i32_0 = arith.constant 0 : i32
    %c0_i32_1 = arith.constant 0 : i32
    return %arg0, %c0_i32, %c0_i32_0 : i32, i32, i32
  }
  func.func @transform_8(%arg0: i32) -> (i32, i32, i32) {
    %c0_i32 = arith.constant 0 : i32
    %c0_i32_0 = arith.constant 0 : i32
    %c0_i32_1 = arith.constant 0 : i32
    return %arg0, %c0_i32, %c0_i32_0 : i32, i32, i32
  }
  func.func @transform_9(%arg0: i32) -> (i32, i32, i32) {
    %c0_i32 = arith.constant 0 : i32
    %c0_i32_0 = arith.constant 0 : i32
    %c0_i32_1 = arith.constant 0 : i32
    return %arg0, %c0_i32, %c0_i32_0 : i32, i32, i32
  }
  func.func @transform_10(%arg0: i32) -> (i32, i32, i32) {
    %c0_i32 = arith.constant 0 : i32
    %c0_i32_0 = arith.constant 0 : i32
    %c0_i32_1 = arith.constant 0 : i32
    return %arg0, %c0_i32, %c0_i32_0 : i32, i32, i32
  }
  func.func @transform_11(%arg0: i32) -> (i32, i32, i32) {
    %c0_i32 = arith.constant 0 : i32
    %c0_i32_0 = arith.constant 0 : i32
    %c0_i32_1 = arith.constant 0 : i32
    return %arg0, %c0_i32, %c0_i32_0 : i32, i32, i32
  }
  func.func @transform_12(%arg0: i32) -> (i32, i32, i32) {
    %c0_i32 = arith.constant 0 : i32
    %c0_i32_0 = arith.constant 0 : i32
    %c0_i32_1 = arith.constant 0 : i32
    return %arg0, %c0_i32, %c0_i32_0 : i32, i32, i32
  }
  func.func @transform_13(%arg0: i32) -> (i32, i32, i32) {
    %c0_i32 = arith.constant 0 : i32
    %c0_i32_0 = arith.constant 0 : i32
    %c0_i32_1 = arith.constant 0 : i32
    return %arg0, %c0_i32, %c0_i32_0 : i32, i32, i32
  }
  func.func @transform_14(%arg0: i32) -> (i32, i32, i32) {
    %c0_i32 = arith.constant 0 : i32
    %c0_i32_0 = arith.constant 0 : i32
    %c0_i32_1 = arith.constant 0 : i32
    return %arg0, %c0_i32, %c0_i32_0 : i32, i32, i32
  }
  func.func @transform_15(%arg0: i32) -> (i32, i32, i32) {
    %c0_i32 = arith.constant 0 : i32
    %c0_i32_0 = arith.constant 0 : i32
    %c0_i32_1 = arith.constant 0 : i32
    return %arg0, %c0_i32, %c0_i32_0 : i32, i32, i32
  }
  func.func @transform_16(%arg0: i32) -> (i32, i32, i32) {
    %c0_i32 = arith.constant 0 : i32
    %c0_i32_0 = arith.constant 0 : i32
    %c0_i32_1 = arith.constant 0 : i32
    return %arg0, %c0_i32, %c0_i32_0 : i32, i32, i32
  }
  func.func @transform_17(%arg0: i32) -> (i32, i32, i32) {
    %c0_i32 = arith.constant 0 : i32
    %c0_i32_0 = arith.constant 0 : i32
    %c0_i32_1 = arith.constant 0 : i32
    return %arg0, %c0_i32, %c0_i32_0 : i32, i32, i32
  }
  func.func @transform_18(%arg0: i32) -> (i32, i32, i32) {
    %c0_i32 = arith.constant 0 : i32
    %c0_i32_0 = arith.constant 0 : i32
    %c0_i32_1 = arith.constant 0 : i32
    return %arg0, %c0_i32, %c0_i32_0 : i32, i32, i32
  }
  func.func @transform_19(%arg0: i32) -> (i32, i32, i32) {
    %c0_i32 = arith.constant 0 : i32
    %c0_i32_0 = arith.constant 0 : i32
    %c0_i32_1 = arith.constant 0 : i32
    return %arg0, %c0_i32, %c0_i32_0 : i32, i32, i32
  }
  func.func @transform_20(%arg0: i32) -> (i32, i32, i32) {
    %c0_i32 = arith.constant 0 : i32
    %c0_i32_0 = arith.constant 0 : i32
    %c0_i32_1 = arith.constant 0 : i32
    return %arg0, %c0_i32, %c0_i32_0 : i32, i32, i32
  }
  func.func @transform_21(%arg0: i32) -> (i32, i32, i32) {
    %c0_i32 = arith.constant 0 : i32
    %c0_i32_0 = arith.constant 0 : i32
    %c0_i32_1 = arith.constant 0 : i32
    return %arg0, %c0_i32, %c0_i32_0 : i32, i32, i32
  }
  func.func @transform_22(%arg0: i32) -> (i32, i32, i32) {
    %c0_i32 = arith.constant 0 : i32
    %c0_i32_0 = arith.constant 0 : i32
    %c0_i32_1 = arith.constant 0 : i32
    return %arg0, %c0_i32, %c0_i32_0 : i32, i32, i32
  }
  func.func @transform_23(%arg0: i32) -> (i32, i32, i32) {
    %c0_i32 = arith.constant 0 : i32
    %c0_i32_0 = arith.constant 0 : i32
    %c0_i32_1 = arith.constant 0 : i32
    return %arg0, %c0_i32, %c0_i32_0 : i32, i32, i32
  }
  func.func @transform_24(%arg0: i32) -> (i32, i32, i32) {
    %c0_i32 = arith.constant 0 : i32
    %c0_i32_0 = arith.constant 0 : i32
    %c0_i32_1 = arith.constant 0 : i32
    return %arg0, %c0_i32, %c0_i32_0 : i32, i32, i32
  }
  func.func @transform_25(%arg0: i32) -> (i32, i32, i32) {
    %c0_i32 = arith.constant 0 : i32
    %c0_i32_0 = arith.constant 0 : i32
    %c0_i32_1 = arith.constant 0 : i32
    return %arg0, %c0_i32, %c0_i32_0 : i32, i32, i32
  }
  func.func @transform_26(%arg0: i32) -> (i32, i32) {
    %c0_i32 = arith.constant 0 : i32
    %c0_i32_0 = arith.constant 0 : i32
    %c0_i32_1 = arith.constant 0 : i32
    return %c0_i32, %c0_i32_0 : i32, i32
  }
  func.func @transform_27(%arg0: i32) -> (i32, i32) {
    %c0_i32 = arith.constant 0 : i32
    %c0_i32_0 = arith.constant 0 : i32
    %c0_i32_1 = arith.constant 0 : i32
    return %c0_i32, %c0_i32_0 : i32, i32
  }
  func.func @transform_28(%arg0: i32) -> (i32, i32) {
    %c0_i32 = arith.constant 0 : i32
    %c0_i32_0 = arith.constant 0 : i32
    %c0_i32_1 = arith.constant 0 : i32
    return %c0_i32, %c0_i32_0 : i32, i32
  }
  func.func @transform_29(%arg0: i32) -> (i32, i32) {
    %c0_i32 = arith.constant 0 : i32
    %c0_i32_0 = arith.constant 0 : i32
    %c0_i32_1 = arith.constant 0 : i32
    return %c0_i32, %c0_i32_0 : i32, i32
  }
  func.func @transform_30(%arg0: i32) -> (i32, i32) {
    %c0_i32 = arith.constant 0 : i32
    %c0_i32_0 = arith.constant 0 : i32
    %c0_i32_1 = arith.constant 0 : i32
    return %c0_i32, %c0_i32_0 : i32, i32
  }
  func.func @transform_31(%arg0: i32) -> (i32, i32) {
    %c0_i32 = arith.constant 0 : i32
    %c0_i32_0 = arith.constant 0 : i32
    %c0_i32_1 = arith.constant 0 : i32
    return %c0_i32, %c0_i32_0 : i32, i32
  }
}

</mosaic_0001>

<bundles_post_ra>
// kernel: rdt_forward.2
= control target key start
LH: loop header
LB: loop body
LE: loop exit
PB: predicated region body
PF: predicated region fallthrough
CT: control target
= control target key end

     0   :  { %10 = vsyncpa [#allocation3], 0  ;;  %s1059_s0 = inlined_call_operand.vmem [shape: bf16[2,2,256], index: 0, kind: input, shape index: {}]   ;;  %s1060_s1 = inlined_call_operand.hbm [shape: bf16[2,256,128], index: 1, kind: input, shape index: {}]   ;;  %s1061_s2 = inlined_call_operand.vmem [shape: bf16[2,1,128], index: 2, kind: input, shape index: {}]   ;;  %s1062_s3 = inlined_call_operand.hbm [shape: bf16[2,128,128], index: 3, kind: input, shape index: {}]   ;;  %s1063_s4 = inlined_call_operand.vmem [shape: bf16[2,1,128], index: 4, kind: input, shape index: {}]   ;;  %s1064_s5 = inlined_call_operand.vmem [shape: bf16[2,2,128], index: 5, kind: output, shape index: {}]  }
   0x1   :  { %11 = vsyncpa [#allocation5], 0  ;;  %s962_s18 = smov [#allocation2]  }
   0x2   :  { %s19_s19 = sshll.u32 %s962_s18, 4  ;;  %s20_s19 = int_to_ptr.vmem [resolvable:$true] %s19_s19 }
   0x3   :  { %s926_s20 = scalar_lea.vmem %s20_s19, 4096  ;;  %p931_p1 = scmp.lt.s32.totalorder %s20_s19, %s20_s19 }
   0x4   :  { %p927_p0 = scmp.ne.s32.totalorder %s20_s19, %s926_s20  ;;  %p932_p2 = scmp.lt.s32.totalorder %s926_s20, %s926_s20 }
   0x6   :  { %p933_p3 = por %p932_p2, %p931_p1 }
   0x8   :  { %p934_p4 = pnand %p933_p3, %p927_p0 }
   0xa   :  { %937 = shalt.err (!%p934_p4)
}
   0xb   :  { %s963_s21 = smov 64   ;;  %s964_s22 = smov 4  }
   0xc   :  { %25 = dma.hbm_to_vmem [thread:$0]  %s1060_s1, 4096, %s20_s19, [#allocation3], %s963_s21, %s963_s21, %s964_s22  }
   0xd   :  { %s965_s25 = smov [#allocation4]  }
   0xe   :  { %s33_s26 = sshll.u32 %s965_s25, 4  ;;  %s34_s26 = int_to_ptr.vmem [resolvable:$true] %s33_s26 }
   0xf   :  { %s946_s27 = scalar_lea.vmem %s34_s26, 2048  ;;  %p951_p6 = scmp.lt.s32.totalorder %s34_s26, %s34_s26 }
  0x10   :  { %p947_p5 = scmp.ne.s32.totalorder %s34_s26, %s946_s27  ;;  %p952_p7 = scmp.lt.s32.totalorder %s946_s27, %s946_s27 }
  0x12   :  { %p953_p8 = por %p952_p7, %p951_p6 }
  0x14   :  { %p954_p9 = pnand %p953_p8, %p947_p5 }
  0x16   :  { %957 = shalt.err (!%p954_p9)
}
  0x17   :  { %39 = dma.hbm_to_vmem [thread:$0]  %s1062_s3, 2048, %s34_s26, [#allocation5], %s963_s21, %s963_s21, %s964_s22  }
  0x18   :  { %958 = dma.done.wait [#allocation3], 4096  }
  0x19   :  { %959 = vsyncadd [#allocation3], 4294963200 }
  0x1a   :  { %960 = dma.done.wait [#allocation5], 2048  }
  0x1b   :  { %961 = vsyncadd [#allocation5], 4294965248  ;;  %v862_v0 = vld [vmem:[#allocation2 + $0x78] sm:$0xff]   ;;  %v864_v2 = vld [vmem:[#allocation2 + $0x70] sm:$0xff]   ;;  %v84_v6 = vlaneseq  ;;  %v966_v7 = vmov 1966171168  }
  0x1c   :  { %v863_v1 = vld [vmem:[#allocation2 + $0x38] sm:$0xff]   ;;  %753 = vmatprep.subr.bf16.mxu0 %v862_v0  ;;  %v865_v3 = vld [vmem:[#allocation2 + $0x30] sm:$0xff]   ;;  %v866_v4 = vld [vmem:[#allocation2 + $0x68] sm:$0xff]   ;;  %v98_v8 = vunpack.c.l.s4 %v966_v7  ;;  %v967_v47 = vmov 0.0   ;;  %vm968_vm0 = vmmov 0  }
  0x1d   :  { %754 = vmatpush3.bf16.msra.mxu0 %v863_v1  ;;  %v867_v5 = vld [vmem:[#allocation2 + $0x28] sm:$0xff]   ;;  %v868_v9 = vld [vmem:[#allocation2 + $0x60] sm:$0xff]   ;;  %v1005_v11 = vshrl.u32 %v84_v6, 7  ;;  %v870_v13 = vld [vmem:[#allocation2 + $0x58] sm:$0xff]   ;;  %815 = vmatprep.subr.bf16.mxu1 %v967_v47 }
  0x1e   :  { %755 = vmatprep.subr.bf16.mxu0 %v864_v2  ;;  %v869_v10 = vld [vmem:[#allocation2 + $0x20] sm:$0xff]   ;;  %v99_v12 = vunpack.c.0.s8 %v98_v8  ;;  %v871_v14 = vld [vmem:[#allocation2 + $0x18] sm:$0xff]   ;;  %v872_v15 = vld [vmem:[#allocation2 + $0x50] sm:$0xff]   ;;  %831 = vmatprep.mubr.msk.bf16.mxu1 %vm968_vm0, %v967_v47 }
  0x1f   :  { %v699_v17 = vld.sshfl [vmem:[%s1059_s0] sm:$0x11 pattern:$0x75316420]  ;;  %v873_v19 = vld [vmem:[#allocation2 + $0x10] sm:$0xff]   ;;  %v874_v21 = vld [vmem:[#allocation2 + $0x48] sm:$0xff]  }
  0x20   :  { %v102_v16 = vsub.s32 %v99_v12, %v1005_v11  ;;  %v96_v18 = vcombine.high %v699_v17, %v699_v17  ;;  %v875_v22 = vld [vmem:[#allocation2 + $0x8] sm:$0xff]   ;;  %v876_v23 = vld [vmem:[#allocation2 + $0x40] sm:$0xff]   ;;  %v878_v25 = vld [vmem:[#allocation2 + $0xf8] sm:$0xff]   ;;  %v1029_v56 = vsub.s32 0, %v1005_v11 }
  0x21   :  { %756 = vmatpush3.bf16.msra.mxu0 %v865_v3  ;;  %v877_v24 = vld [vmem:[#allocation2] sm:$0xff]   ;;  %v879_v27 = vld [vmem:[#allocation2 + $0xb8] sm:$0xff]   ;;  %v880_v28 = vld [vmem:[#allocation2 + $0xf0] sm:$0xff]  }
  0x22   :  { %757 = vmatprep.subr.bf16.mxu0 %v866_v4  ;;  %v110_v20 = vrot.slane %v96_v18, %v102_v16  ;;  %v103_v26 = vrot.slane %v699_v17, %v102_v16  ;;  %v881_v29 = vld [vmem:[#allocation2 + $0xb0] sm:$0xff]   ;;  %v726_v30 = vld.sshfl [vmem:[%s1059_s0 + $0x2] sm:$0x11 pattern:$0x75316420]  ;;  %v882_v31 = vld [vmem:[#allocation2 + $0xe8] sm:$0xff]  }
  0x23   :  { %v418_v32 = vcombine.high %v726_v30, %v726_v30  ;;  %v883_v34 = vld [vmem:[#allocation2 + $0xa8] sm:$0xff]   ;;  %v884_v35 = vld [vmem:[#allocation2 + $0xe0] sm:$0xff]   ;;  %v886_v37 = vld [vmem:[#allocation2 + $0xd8] sm:$0xff]   ;;  %v425_v45 = vrot.slane %v726_v30, %v102_v16 }
  0x24   :  { %241 = vmatprep.mubr.bf16.mxu0 %v110_v20  ;;  %v885_v36 = vld [vmem:[#allocation2 + $0xa0] sm:$0xff]   ;;  %v887_v38 = vld [vmem:[#allocation2 + $0x98] sm:$0xff]   ;;  %v888_v39 = vld [vmem:[#allocation2 + $0xd0] sm:$0xff]  }
  0x25   :  { %758 = vmatpush3.bf16.msra.mxu0 %v867_v5  ;;  %v432_v33 = vrot.slane %v418_v32, %v102_v16  ;;  %v889_v40 = vld [vmem:[#allocation2 + $0x90] sm:$0xff]   ;;  %v890_v41 = vld [vmem:[#allocation2 + $0xc8] sm:$0xff]   ;;  %v892_v43 = vld [vmem:[#allocation2 + $0xc0] sm:$0xff]  }
  0x26   :  { %759 = vmatprep.subr.bf16.mxu0 %v868_v9  ;;  %v891_v42 = vld [vmem:[#allocation2 + $0x88] sm:$0xff]   ;;  %v893_v44 = vld [vmem:[#allocation2 + $0x80] sm:$0xff]   ;;  %v894_v46 = vld [vmem:[#allocation4 + $0x38] sm:$0xff]  }
  0x27   :  { %816 = vmatpush3.bf16.msra.mxu1 %v894_v46  ;;  %v895_v48 = vld [vmem:[#allocation4 + $0x30] sm:$0xff]   ;;  %v896_v49 = vld [vmem:[#allocation4 + $0x28] sm:$0xff]   ;;  %v897_v50 = vld [vmem:[#allocation4 + $0x20] sm:$0xff]  }
  0x28   :  { %817 = vmatprep.subr.bf16.mxu1 %v967_v47  ;;  %v898_v51 = vld [vmem:[#allocation4 + $0x18] sm:$0xff]   ;;  %v899_v52 = vld [vmem:[#allocation4 + $0x10] sm:$0xff]   ;;  %v900_v53 = vld [vmem:[#allocation4 + $0x8] sm:$0xff]  }
  0x29   :  { %760 = vmatpush3.bf16.msra.mxu0 %v869_v10  ;;  %v901_v54 = vld [vmem:[#allocation4] sm:$0xff]   ;;  %v902_v18 = vld [vmem:[#allocation4 + $0x78] sm:$0xff]   ;;  %v903_v20 = vld [vmem:[#allocation4 + $0x70] sm:$0xff]  }
  0x2a   :  { %761 = vmatprep.subr.bf16.mxu0 %v870_v13  ;;  %v82_v55 = vld [vmem:[%s1061_s2] sm:$0x1]  ;;  %v725_v5 = vld [vmem:[%s1061_s2 + $0x1] sm:$0x1] }
  0x2b   :  { %818 = vmatpush3.bf16.msra.mxu1 %v895_v48  ;;  %v83_v57 = vunpack.c.l.bf16 %v82_v55  ;;  %v405_v6 = vunpack.c.l.bf16 %v725_v5  ;;  %v272_v32 = vld [vmem:[%s1063_s4] sm:$0x1] }
  0x2c   :  { %819 = vmatprep.subr.bf16.mxu1 %v967_v47 }
  0x2d   :  { %762 = vmatpush3.bf16.msra.mxu0 %v871_v14  ;;  %v87_v59 = vrot.slane %v83_v57, %v1029_v56  ;;  %v409_v8 = vrot.slane %v405_v6, %v1029_v56 }
  0x2e   :  { %763 = vmatprep.subr.bf16.mxu0 %v872_v15 }
  0x2f   :  { %820 = vmatpush3.bf16.msra.mxu1 %v896_v49 }
  0x30   :  { %821 = vmatprep.subr.bf16.mxu1 %v967_v47 }
  0x31   :  { %764 = vmatpush3.bf16.msra.mxu0 %v873_v19 }
  0x32   :  { %765 = vmatprep.subr.bf16.mxu0 %v874_v21  ;;  %v904_v21 = vld [vmem:[#allocation4 + $0x68] sm:$0xff]  }
  0x33   :  { %822 = vmatpush3.bf16.msra.mxu1 %v897_v50 }
  0x34   :  { %823 = vmatprep.subr.bf16.mxu1 %v967_v47 }
  0x35   :  { %766 = vmatpush3.bf16.msra.mxu0 %v875_v22  ;;  %v905_v22 = vld [vmem:[#allocation4 + $0x60] sm:$0xff]  }
  0x36   :  { %767 = vmatprep.subr.bf16.mxu0 %v876_v23 }
  0x37   :  { %824 = vmatpush3.bf16.msra.mxu1 %v898_v51 }
  0x38   :  { %825 = vmatprep.subr.bf16.mxu1 %v967_v47 }
  0x39   :  { %768 = vmatpush3.bf16.msra.mxu0 %v877_v24 }
  0x3a   :  { %784 = vmatprep.subr.bf16.mxu0 %v878_v25  ;;  %v906_v25 = vld [vmem:[#allocation4 + $0x58] sm:$0xff]  }
  0x3b   :  { %826 = vmatpush3.bf16.msra.mxu1 %v899_v52 }
  0x3c   :  { %242 = vmatmul.mubr.bf16.vlgmr.msra.gmra.mxu0 %v103_v26  ;;  %827 = vmatprep.subr.bf16.mxu1 %v967_v47  ;;  %v907_v26 = vld [vmem:[#allocation4 + $0x50] sm:$0xff]  }
  0x3d   :  { %785 = vmatpush3.bf16.msra.mxu0 %v879_v27  ;;  %563 = vmatprep.mubr.bf16.mxu0 %v432_v33  ;;  %v908_v27 = vld [vmem:[#allocation4 + $0x48] sm:$0xff]   ;;  %v273_v33 = vunpack.c.l.bf16 %v272_v32 }
  0x3e   :  { %786 = vmatprep.subr.bf16.mxu0 %v880_v28  ;;  %v909_v28 = vld [vmem:[#allocation4 + $0x40] sm:$0xff]  }
  0x3f   :  { %828 = vmatpush3.bf16.msra.mxu1 %v900_v53 }
  0x40   :  { %829 = vmatprep.subr.bf16.mxu1 %v967_v47 }
  0x41   :  { %787 = vmatpush3.bf16.msra.mxu0 %v881_v29 }
  0x42   :  { %788 = vmatprep.subr.bf16.mxu0 %v882_v31 }
  0x43   :  { %830 = vmatpush3.bf16.msra.mxu1 %v901_v54 }
  0x44   :  { %835 = vmatprep.subr.bf16.mxu1 %v967_v47 }
  0x45   :  { %789 = vmatpush3.bf16.msra.mxu0 %v883_v34  ;;  %v277_v34 = vrot.slane %v273_v33, %v1029_v56 }
  0x46   :  { %790 = vmatprep.subr.bf16.mxu0 %v884_v35 }
  0x49   :  { %791 = vmatpush3.bf16.msra.mxu0 %v885_v36 }
  0x4a   :  { %792 = vmatprep.subr.bf16.mxu0 %v886_v37 }
  0x4d   :  { %793 = vmatpush3.bf16.msra.mxu0 %v887_v38 }
  0x4e   :  { %794 = vmatprep.subr.bf16.mxu0 %v888_v39 }
  0x51   :  { %795 = vmatpush3.bf16.msra.mxu0 %v889_v40 }
  0x52   :  { %796 = vmatprep.subr.bf16.mxu0 %v890_v41  ;;  %v743_v41 = vld [vmem:[%s1063_s4 + $0x1] sm:$0x1] }
  0x55   :  { %797 = vmatpush3.bf16.msra.mxu0 %v891_v42  ;;  %v597_v42 = vunpack.c.l.bf16 %v743_v41 }
  0x56   :  { %798 = vmatprep.subr.bf16.mxu0 %v892_v43 }
  0x57   :  { %v601_v43 = vrot.slane %v597_v42, %v1029_v56 }
  0x59   :  { %799 = vmatpush3.bf16.msra.mxu0 %v893_v44 }
  0x5c   :  { %564 = vmatmul.mubr.bf16.vlgmr.msra.gmra.mxu0 %v425_v45 }
  0xfc   :  { %v769_v58 = vpop.f32.mrf.mxu0 }
  0xfe   :  { %v770_v60 = vpop.f32.mrf.mxu0 }
  0xff   :  { %v771_v61 = vadd.f32 %v770_v60, %v769_v58 }
 0x100   :  { %v772_v62 = vpop.f32.mrf.mxu0 }
 0x101   :  { %v244_v63 = vadd.f32 %v771_v61, %v87_v59 }
 0x102   :  { %v773_v0 = vpop.f32.mrf.mxu0 }
 0x103   :  { %v249_v1 = vsub.f32 0.0, %v244_v63 }
 0x105   :  { %v250_v2 = vmul.f32 1.442695, %v249_v1 }
 0x107   :  { %910 = vpow2.f32 %v250_v2 }
 0x114   :  { %v911_v3 = vpop.eup %910 }
 0x115   :  { %v252_v4 = vadd.f32 1.0, %v911_v3 }
 0x117   :  { %912 = vrcp.f32 %v252_v4 }
 0x11c   :  { %v800_v7 = vpop.f32.mrf.mxu0 }
 0x11e   :  { %v801_v9 = vpop.f32.mrf.mxu0 }
 0x11f   :  { %v802_v10 = vadd.f32 %v801_v9, %v800_v7 }
 0x120   :  { %v803_v11 = vpop.f32.mrf.mxu0 }
 0x121   :  { %v566_v12 = vadd.f32 %v802_v10, %v409_v8 }
 0x122   :  { %v804_v13 = vpop.f32.mrf.mxu0 }
 0x123   :  { %v571_v14 = vsub.f32 0.0, %v566_v12 }
 0x124   :  { %v913_v15 = vpop.eup %912 }
 0x125   :  { %v572_v16 = vmul.f32 1.442695, %v571_v14  ;;  %v254_v17 = vmul.f32 %v913_v15, %v244_v63 }
 0x127   :  { %914 = vpow2.f32 %v572_v16  ;;  %v255_v19 = vpack.c.bf16 %v254_v17, %v254_v17 }
 0x129   :  { %832 = vmatmul.mubr.bf16.vlgmr.msra.gmra.mxu1 %v255_v19 }
 0x12a   :  { %836 = vmatpush3.bf16.msra.mxu1 %v902_v18  ;;  %851 = vmatprep.mubr.msk.bf16.mxu1 %vm968_vm0, %v967_v47 }
 0x12b   :  { %837 = vmatprep.subr.bf16.mxu1 %v967_v47 }
 0x12e   :  { %838 = vmatpush3.bf16.msra.mxu1 %v903_v20 }
 0x12f   :  { %839 = vmatprep.subr.bf16.mxu1 %v967_v47 }
 0x132   :  { %840 = vmatpush3.bf16.msra.mxu1 %v904_v21 }
 0x133   :  { %841 = vmatprep.subr.bf16.mxu1 %v967_v47 }
 0x134   :  { %v915_v23 = vpop.eup %914 }
 0x135   :  { %v574_v24 = vadd.f32 1.0, %v915_v23 }
 0x136   :  { %842 = vmatpush3.bf16.msra.mxu1 %v905_v22 }
 0x137   :  { %916 = vrcp.f32 %v574_v24  ;;  %843 = vmatprep.subr.bf16.mxu1 %v967_v47 }
 0x13a   :  { %844 = vmatpush3.bf16.msra.mxu1 %v906_v25 }
 0x13b   :  { %845 = vmatprep.subr.bf16.mxu1 %v967_v47 }
 0x13e   :  { %846 = vmatpush3.bf16.msra.mxu1 %v907_v26 }
 0x13f   :  { %847 = vmatprep.subr.bf16.mxu1 %v967_v47 }
 0x142   :  { %848 = vmatpush3.bf16.msra.mxu1 %v908_v27 }
 0x143   :  { %849 = vmatprep.subr.bf16.mxu1 %v967_v47 }
 0x144   :  { %v917_v29 = vpop.eup %916 }
 0x145   :  { %v576_v30 = vmul.f32 %v917_v29, %v566_v12 }
 0x146   :  { %850 = vmatpush3.bf16.msra.mxu1 %v909_v28 }
 0x147   :  { %v577_v31 = vpack.c.bf16 %v576_v30, %v576_v30 }
 0x149   :  { %852 = vmatmul.mubr.bf16.vlgmr.msra.gmra.mxu1 %v577_v31 }
 0x1e9   :  { %v360_v35 = vpop.f32.mrf.mxu1 }
 0x1ea   :  { %v361_v36 = vadd.f32 %v360_v35, %v277_v34 }
 0x1eb   :  { %v833_v37 = vpop.f32.mrf.mxu1 }
 0x1ec   :  { %v366_v38 = vpack.c.bf16 %v361_v36, %v361_v36 }
 0x1ed   :  { %v363_v39 = vpop.f32.mrf.mxu1 }
 0x1ee   :  { %367 = vst [vmem:[%s1064_s5] sm:$0x1] %v366_v38 }
 0x1ef   :  { %v834_v40 = vpop.f32.mrf.mxu1 }
 0x209   :  { %v684_v44 = vpop.f32.mrf.mxu1 }
 0x20a   :  { %v685_v45 = vadd.f32 %v684_v44, %v601_v43 }
 0x20b   :  { %v853_v46 = vpop.f32.mrf.mxu1 }
 0x20c   :  { %v690_v47 = vpack.c.bf16 %v685_v45, %v685_v45 }
 0x20d   :  { %v687_v48 = vpop.f32.mrf.mxu1 }
 0x20e   :  { %752 = vst [vmem:[%s1064_s5 + $0x1] sm:$0x1] %v690_v47 }
 0x20f   :  { %v854_v49 = vpop.f32.mrf.mxu1 }
 0x210   :  { %697 = vsyncpa [#allocation3], 1 }
 0x211   :  { %698 = vsyncpa [#allocation5], 1 }

// kernel: rdt_forward.3
= control target key start
LH: loop header
LB: loop body
LE: loop exit
PB: predicated region body
PF: predicated region fallthrough
CT: control target
= control target key end

     0   :  { %s7649_s6 = smov 1   ;;  %s7650_s10 = smov 2   ;;  %s9023_s0 = inlined_call_operand.smem [shape: u32[32], index: -1, kind: input, shape index: {}] }
   0x1   :  { %s7703_s5 = sld [smem:[%s9023_s0]]   ;;  %s7651_s14 = smov 3  }
   0x2   :  { %s7708_s9 = sld [smem:[%s9023_s0 + %s7649_s6]]   ;;  %s7652_s18 = smov 4  }
   0x3   :  { %s7713_s13 = sld [smem:[%s9023_s0 + %s7650_s10]]   ;;  %s7653_s22 = smov 5  }
   0x4   :  { %s7718_s17 = sld [smem:[%s9023_s0 + %s7651_s14]]   ;;  %s7654_s26 = smov 6  }
   0x5   :  { %s7723_s21 = sld [smem:[%s9023_s0 + %s7652_s18]]   ;;  %s7655_s30 = smov 7  }
   0x6   :  { %s7728_s25 = sld [smem:[%s9023_s0 + %s7653_s22]]   ;;  %s7656_s4 = smov 8  }
   0x7   :  { %9049 = sst [smem:[#allocation17_spill]] %s7703_s5  ;;  %s7657_s10 = smov 9  }
   0x8   :  { %9050 = sst [smem:[#allocation18_spill]] %s7708_s9  ;;  %s7658_s15 = smov 10  }
   0x9   :  { %9051 = sst [smem:[#allocation19_spill]] %s7713_s13  ;;  %s7659_s20 = smov 11  }
   0xa   :  { %9052 = sst [smem:[#allocation20_spill]] %s7718_s17  ;;  %s7661_s1 = smov 13  }
   0xb   :  { %9053 = sst [smem:[#allocation21_spill]] %s7723_s21  ;;  %s7662_s7 = smov 14  }
   0xc   :  { %9054 = sst [smem:[#allocation22_spill]] %s7728_s25  ;;  %s7664_s22 = smov 16  }
   0xd   :  { %s7733_s29 = sld [smem:[%s9023_s0 + %s7654_s26]]   ;;  %s7660_s26 = smov 12  }
   0xe   :  { %s7738_s3 = sld [smem:[%s9023_s0 + %s7655_s30]]   ;;  %s7665_s28 = smov 17  }
   0xf   :  { %s7743_s8 = sld [smem:[%s9023_s0 + %s7656_s4]]  }
  0x10   :  { %s7748_s14 = sld [smem:[%s9023_s0 + %s7657_s10]]  }
  0x11   :  { %s7753_s19 = sld [smem:[%s9023_s0 + %s7658_s15]]   ;;  %s7663_s15 = smov 15  }
  0x12   :  { %s7758_s24 = sld [smem:[%s9023_s0 + %s7659_s20]]  }
  0x13   :  { %9055 = sst [smem:[#allocation23_spill]] %s7733_s29 }
  0x14   :  { %9056 = sst [smem:[#allocation24_spill]] %s7738_s3 }
  0x15   :  { %9057 = sst [smem:[#allocation25_spill]] %s7743_s8 }
  0x16   :  { %9058 = sst [smem:[#allocation26_spill]] %s7748_s14 }
  0x17   :  { %9059 = sst [smem:[#allocation27_spill]] %s7753_s19 }
  0x18   :  { %9060 = sst [smem:[#allocation28_spill]] %s7758_s24 }
  0x19   :  { %s7763_s30 = sld [smem:[%s9023_s0 + %s7660_s26]]  }
  0x1a   :  { %s7768_s6 = sld [smem:[%s9023_s0 + %s7661_s1]]  }
  0x1b   :  { %s7773_s12 = sld [smem:[%s9023_s0 + %s7662_s7]]   ;;  %s7666_s7 = smov 18  }
  0x1c   :  { %s7778_s20 = sld [smem:[%s9023_s0 + %s7663_s15]]   ;;  %s7667_s15 = smov 19  }
  0x1d   :  { %s7783_s27 = sld [smem:[%s9023_s0 + %s7664_s22]]   ;;  %s7668_s22 = smov 20  }
  0x1e   :  { %s7788_s4 = sld [smem:[%s9023_s0 + %s7665_s28]]   ;;  %s7669_s28 = smov 21  }
  0x1f   :  { %9061 = sst [smem:[#allocation29_spill]] %s7763_s30 }
  0x20   :  { %9062 = sst [smem:[#allocation30_spill]] %s7768_s6 }
  0x21   :  { %9063 = sst [smem:[#allocation31_spill]] %s7773_s12 }
  0x22   :  { %9064 = sst [smem:[#allocation32_spill]] %s7778_s20 }
  0x23   :  { %9065 = sst [smem:[#allocation33_spill]] %s7783_s27 }
  0x24   :  { %9066 = sst [smem:[#allocation34_spill]] %s7788_s4 }
  0x25   :  { %s7793_s13 = sld [smem:[%s9023_s0 + %s7666_s7]]   ;;  %s7670_s7 = smov 22  }
  0x26   :  { %s7798_s9 = sld [smem:[%s9023_s0 + %s7667_s15]]   ;;  %s7671_s15 = smov 23  }
  0x27   :  { %s7803_s17 = sld [smem:[%s9023_s0 + %s7668_s22]]   ;;  %s7672_s22 = smov 24  }
  0x28   :  { %s7808_s21 = sld [smem:[%s9023_s0 + %s7669_s28]]   ;;  %s7673_s28 = smov 25  }
  0x29   :  { %s7813_s5 = sld [smem:[%s9023_s0 + %s7670_s7]]   ;;  %s7674_s7 = smov 26  }
  0x2a   :  { %s7833_s4 = sld [smem:[%s9023_s0 + %s7674_s7]]   ;;  %s7678_s7 = smov 30  }
  0x2b   :  { %9067 = sst [smem:[#allocation35_spill]] %s7793_s13 }
  0x2c   :  { %9068 = sst [smem:[#allocation36_spill]] %s7798_s9 }
  0x2d   :  { %9069 = sst [smem:[#allocation37_spill]] %s7803_s17 }
  0x2e   :  { %9070 = sst [smem:[#allocation38_spill]] %s7808_s21 }
  0x2f   :  { %9071 = sst [smem:[#allocation39_spill]] %s7813_s5 }
  0x30   :  { %s7818_s13 = sld [smem:[%s9023_s0 + %s7671_s15]]   ;;  %s7675_s15 = smov 27  }
  0x31   :  { %s7823_s17 = sld [smem:[%s9023_s0 + %s7672_s22]]   ;;  %s7676_s22 = smov 28  }
  0x32   :  { %s7828_s21 = sld [smem:[%s9023_s0 + %s7673_s28]]   ;;  %s7677_s28 = smov 29  }
  0x33   :  { %9075 = sst [smem:[#allocation43_spill]] %s7833_s4 }
  0x34   :  { %s7843_s27 = sld [smem:[%s9023_s0 + %s7676_s22]]  }
  0x35   :  { %s7853_s4 = sld [smem:[%s9023_s0 + %s7678_s7]]  }
  0x36   :  { %9072 = sst [smem:[#allocation40_spill]] %s7818_s13 }
  0x37   :  { %9073 = sst [smem:[#allocation41_spill]] %s7823_s17 }
  0x38   :  { %9074 = sst [smem:[#allocation42_spill]] %s7828_s21 }
  0x39   :  { %s7838_s13 = sld [smem:[%s9023_s0 + %s7675_s15]]   ;;  %s7679_s15 = smov 31  }
  0x3a   :  { %9077 = sst [smem:[#allocation45_spill]] %s7843_s27 }
  0x3b   :  { %s7848_s21 = sld [smem:[%s9023_s0 + %s7677_s28]]  }
  0x3c   :  { %9079 = sst [smem:[#allocation47_spill]] %s7853_s4 }
  0x3f   :  { %9076 = sst [smem:[#allocation44_spill]] %s7838_s13 }
  0x40   :  { %s7858_s13 = sld [smem:[%s9023_s0 + %s7679_s15]]  }
  0x41   :  { %9078 = sst [smem:[#allocation46_spill]] %s7848_s21 }
  0x46   :  { %9080 = sst [smem:[#allocation48_spill]] %s7858_s13 }
  0x47   :  { %68 = vsyncpa [#allocation4], 0 }
  0x48   :  { %70 = vsyncpa [#allocation4 + $0x1], 0 }
  0x49   :  { %71 = vsyncpa [#allocation6], 0 }
  0x4a   :  { %73 = vsyncpa [#allocation6 + $0x1], 0 }
  0x4b   :  { %74 = vsyncpa [#allocation9], 0 }
  0x4c   :  { %75 = vsyncpa [#allocation12], 0  ;;  %s7860_s22 = smov 0   ;;  %s7862_s23 = smov 0  }
  0x4d   :  { %s7864_s26 = smov 0   ;;  %s7866_s28 = smov 0  }
  0x4e LB: > { %s9081_s17 = sld [smem:[#allocation41_spill]]  ;;  %s7879_s0 = sadd.s32 4294967295, %s7647_s28   ;;  %s7643_s26 = sphi %s7864_s26, %s9167_s26   ;;  %s7639_s23 = sphi %s7862_s23, %s9166_s23   ;;  %s7635_s22 = sphi %s7860_s22, %s9165_s22   ;;  %s7647_s28 = sphi %s7866_s28, %s9164_s28  }
  0x4f   : > { %s9082_s9 = sld [smem:[#allocation36_spill]]  ;;  %s7882_s1 = sadd.s32 1, %s7647_s28  }
  0x50   : > { %s9083_s5 = sld [smem:[#allocation39_spill]]  ;;  %s554_s2 = ssub.s32 %s7647_s28, %s7882_s1 }
  0x51   : > { %9084 = sst [smem:[#allocation49_spill]] %s7639_s23  ;;  %s557_s7 = sadd.s32 1, %s7643_s26 }
  0x52   : > { %9085 = sst [smem:[#allocation50_spill]] %s7643_s26  ;;  %p555_p0 = scmp.eq.s32.totalorder %s554_s2, 0 }
  0x53   : > { %9086 = sst [smem:[#allocation51_spill]] %s7882_s1  ;;  %p564_p1 = scmp.ne.s32.totalorder %s7643_s26, %s7639_s23 }
  0x54   : > { %p565_p2 = scmp.eq.s32.totalorder %s7647_s28, 0  ;;  %p570_p3 = scmp.ne.s32.totalorder %s7639_s23, %s7635_s22 }
  0x55   : > { %s7892_s10 = scalar_select %p555_p0, %s7643_s26, %s557_s7  }
  0x56   : > { %p7894_p4 = por %p565_p2, %p564_p1  ;;  %p9031_p5 = scmp.eq.s32.totalorder %s7879_s0, 0 }
  0x57   : > { %9087 = sst [smem:[#allocation52_spill]] %s7892_s10  ;;  %p6093_p6 = scmp.ge.s32.totalorder %s7647_s28, 1 }
  0x58   : > { %p863_p7 = scmp.lt.s32.totalorder %s7647_s28, 3  ;;  %p7903_p8 = por %p9031_p5, %p570_p3 }
  0x59   : > { %s7680_s18 = smov [#allocation8]   ;;  %p7018_p13 = scmp.lt.s32.totalorder %s7647_s28, 2 }
  0x5a   : > { %s9089_s15 = scalar_select %p7903_p8, 1, 0 }
  0x5b   : > { %p7908_p10 = pnand %p6093_p6, %p863_p7  ;;  %s897_s22 = sshll.u32 %s7680_s18, 4  ;;  %s898_s22 = int_to_ptr.vmem [resolvable:$true] %s897_s22 }
  0x5c   : > { %s9030_s7 = sand.u32 1, %s7643_s26   ;;  %s7923_s10 = sshll.u32 %s7647_s28, 10 }
  0x5d   : > { %s9090_s16 = scalar_select %p7908_p10, 1, 0 }
  0x5e   : > { %p6995_p11 = pneg %p7908_p10  ;;  %s7927_s1 = sshll.u32 %s9030_s7, 6 }
  0x5f   : > { %s7450_s18 = scalar_lea.vmem %s898_s22, 16  ;;  %s7457_s13 = scalar_lea.vmem %s898_s22, 32 }
  0x60   : > { %p7916_p12 = pnand %p6995_p11, %p9031_p5  ;;  %p7451_p1 = scmp.ne.s32.totalorder %s898_s22, %s7450_s18 }
  0x61   : > { %p7458_p6 = scmp.lt.s32.totalorder %s898_s22, %s898_s22  ;;  %p7459_p7 = scmp.lt.s32.totalorder %s7457_s13, %s7450_s18 }
  0x62   : > { %s9091_s2 = scalar_select %p7916_p12, 1, 0 }
  0x63   : > { %p9032_p0 = pneg %p7916_p12  ;;  %p7460_p11 = por %p7459_p7, %p7458_p6 }
  0x65   : > { %p7453_p2 = pnand %p7451_p1, %p9032_p0 }
  0x67   : > { %p7454_p3 = pneg %p7453_p2 }
  0x69   : > { %p7461_p9 = pnand %p7460_p11, %p7454_p3 }
  0x6b   : > { %7464 = shalt.err (!%p7461_p9)
}
  0x6c   : > { %s9092_s27 = sld [smem:[#allocation45_spill]]  ;;  %p7941_p1 = pnand %p7018_p13, %p7894_p4 }
  0x6d   : > { %s1059_s13 = sand.u32 1, %s7647_s28   ;;  %s7948_s18 = scalar_lea.hbm %s9083_s5, %s7923_s10 }
  0x6e   : > { %s1063_s20 = scalar_lea.vmem [#allocation5], %s7927_s1  ;;  %s7681_s6 = smov [#allocation10]  }
  0x6f   : > { %s1070_s12 = sshll.u32 %s1063_s20, 4  ;;  %s7955_s11 = scalar_lea.sflag [#allocation6], %s1059_s13  ;;  %s7951_s12 = int_to_ptr.vmem [resolvable:$true] %s1070_s12 }
  0x70   : > { %p7961_p9 = pneg %p7941_p1  ;;  %s7470_s28 = scalar_lea.hbm %s9083_s5, 2048 }
  0x71   : > { %p7471_p3 = scmp.lt.s32.totalorder %s7948_s18, %s9083_s5 }
  0x72   : > { %6998 = dma.hbm_to_vmem [thread:$0]  (!%p7916_p12), %s9092_s27, 16, %s898_s22, [#allocation9]  }
  0x73   : > { %s7953_s22 = sshll.u32 %s7681_s6, 4  ;;  %s7465_s27 = scalar_lea.hbm %s7948_s18, 1024  ;;  %s908_s22 = int_to_ptr.vmem [resolvable:$true] %s7953_s22 }
  0x74   : > { %p7466_p4 = scmp.ne.s32.totalorder %s7948_s18, %s7465_s27  ;;  %p7472_p6 = scmp.lt.s32.totalorder %s7470_s28, %s7465_s27 }
  0x76   : > { %p7468_p13 = pnand %p7961_p9, %p7466_p4  ;;  %p7473_p7 = por %p7472_p6, %p7471_p3 }
  0x78   : > { %p7469_p2 = pneg %p7468_p13 }
  0x7a   : > { %p7474_p11 = pnand %p7473_p7, %p7469_p2 }
  0x7c   : > { %7477 = shalt.err (!%p7474_p11)
}
  0x7d   : > { %s7478_s6 = scalar_lea.vmem %s7951_s12, 1024  ;;  %s7682_s20 = smov [#allocation5]  }
  0x7e   : > { %p7479_p5 = scmp.ne.s32.totalorder %s7951_s12, %s7478_s6  ;;  %s7483_s13 = sshll.u32 %s7682_s20, 4  ;;  %s7484_s13 = int_to_ptr.vmem [resolvable:$false] %s7483_s13 }
  0x7f   : > { %s7485_s24 = scalar_lea.vmem %s7484_s13, 2048  ;;  %p7486_p4 = scmp.lt.s32.totalorder %s7951_s12, %s7484_s13 }
  0x80   : > { %p7481_p0 = pnand %p7479_p5, %p7961_p9  ;;  %p7487_p13 = scmp.lt.s32.totalorder %s7485_s24, %s7478_s6 }
  0x82   : > { %p7482_p8 = pneg %p7481_p0  ;;  %p7488_p10 = por %p7487_p13, %p7486_p4 }
  0x84   : > { %p7489_p12 = pnand %p7488_p10, %p7482_p8 }
  0x86   : > { %7492 = shalt.err (!%p7489_p12)
}
  0x87   : > { %s9037_s27 = smov 64   ;;  %s7684_s28 = smov 4  }
  0x88   : > { %7011 = dma.hbm_to_vmem [thread:$0]  (!%p7941_p1), %s7948_s18, 1024, %s7951_s12, %s7955_s11, %s9037_s27, %s9037_s27, %s7684_s28  }
  0x89   : > { %s7504_s20 = scalar_lea.vmem %s908_s22, 1024  ;;  %p9095_p0 = scmp.ne.s32.totalorder %s9091_s2, 0 }
  0x8a   : > { %p7505_p5 = scmp.ne.s32.totalorder %s908_s22, %s7504_s20  ;;  %p7512_p12 = scmp.lt.s32.totalorder %s908_s22, %s908_s22 }
  0x8b   : > { %p9096_p2 = pneg %p9095_p0  ;;  %p7513_p3 = scmp.lt.s32.totalorder %s7504_s20, %s7504_s20 }
  0x8d   : > { %p7507_p8 = pnand %p7505_p5, %p9096_p2  ;;  %p7514_p6 = por %p7513_p3, %p7512_p12 }
  0x8f   : > { %p7508_p10 = pneg %p7507_p8 }
  0x91   : > { %p7515_p7 = pnand %p7514_p6, %p7508_p10 }
  0x93   : > { %7518 = shalt.err (!%p7515_p7)
}
  0x94   : > { %s9097_s21 = sld [smem:[#allocation46_spill]]  ;;  %s7685_s24 = smov [#allocation11]  }
  0x95   : > { %s921_s12 = sshll.u32 %s7685_s24, 4  ;;  %p9098_p4 = pmov %p9096_p2  ;;  %s922_s12 = int_to_ptr.vmem [resolvable:$true] %s921_s12 }
  0x96   : > { %s7530_s18 = scalar_lea.vmem %s922_s12, 16  ;;  %s7537_s6 = scalar_lea.vmem %s922_s12, 32 }
  0x97   : > { %p7531_p11 = scmp.ne.s32.totalorder %s922_s12, %s7530_s18  ;;  %p7538_p2 = scmp.lt.s32.totalorder %s922_s12, %s922_s12 }
  0x98   : > { %p7539_p8 = scmp.lt.s32.totalorder %s7537_s6, %s7530_s18 }
  0x99   : > { %p7533_p13 = pnand %p7531_p11, %p9098_p4 }
  0x9a   : > { %7001 = dma.hbm_to_vmem [thread:$0]  (!%p9095_p0), %s9097_s21, 1024, %s908_s22, [#allocation9], %s9037_s27, %s9037_s27, %s7684_s28  }
  0x9b   : > { %p7534_p5 = pneg %p7533_p13  ;;  %p7540_p10 = por %p7539_p8, %p7538_p2 }
  0x9d   : > { %p7541_p12 = pnand %p7540_p10, %p7534_p5 }
  0x9f   : > { %7544 = shalt.err (!%p7541_p12)
}
  0xa0   : > { %s9099_s4 = sld [smem:[#allocation47_spill]]  ;;  %s8001_s22 = scalar_lea.hbm %s9082_s9, %s7923_s10 }
  0xa1   : > { %s1030_s13 = scalar_lea.vmem [#allocation3], %s7927_s1  ;;  %s9100_s24 = sand.u32 1, %s7643_s26  }
  0xa2   : > { %s1037_s20 = sshll.u32 %s1030_s13, 4  ;;  %s1027_s2 = scalar_lea.sflag [#allocation4], %s9100_s24  ;;  %s8004_s20 = int_to_ptr.vmem [resolvable:$true] %s1037_s20 }
  0xa3   : > { %s7545_s18 = scalar_lea.hbm %s8001_s22, 1024  ;;  %s7550_s6 = scalar_lea.hbm %s9082_s9, 2048 }
  0xa4   : > { %p7546_p3 = scmp.ne.s32.totalorder %s8001_s22, %s7545_s18  ;;  %p7551_p11 = scmp.lt.s32.totalorder %s8001_s22, %s9082_s9 }
  0xa5   : > { %p7552_p4 = scmp.lt.s32.totalorder %s7550_s6, %s7545_s18 }
  0xa6   : > { %7004 = dma.hbm_to_vmem [thread:$0]  (!%p9095_p0), %s9099_s4, 16, %s922_s12, [#allocation12]  }
  0xa7   : > { %p7548_p6 = pnand %p7546_p3, %p7961_p9  ;;  %p7553_p0 = por %p7552_p4, %p7551_p11 }
  0xa9   : > { %p7549_p7 = pneg %p7548_p6 }
  0xab   : > { %p7554_p13 = pnand %p7553_p0, %p7549_p7 }
  0xad   : > { %7557 = shalt.err (!%p7554_p13)
}
  0xae   : > { %s7558_s12 = scalar_lea.vmem %s8004_s20, 1024  ;;  %s7686_s13 = smov [#allocation3]  }
  0xaf   : > { %p7559_p5 = scmp.ne.s32.totalorder %s8004_s20, %s7558_s12  ;;  %s7563_s24 = sshll.u32 %s7686_s13, 4  ;;  %s7564_s24 = int_to_ptr.vmem [resolvable:$false] %s7563_s24 }
  0xb0   : > { %s7565_s27 = scalar_lea.vmem %s7564_s24, 2048  ;;  %p7566_p10 = scmp.lt.s32.totalorder %s8004_s20, %s7564_s24 }
  0xb1   : > { %p7561_p2 = pnand %p7559_p5, %p7961_p9  ;;  %p7567_p12 = scmp.lt.s32.totalorder %s7565_s27, %s7558_s12 }
  0xb3   : > { %p7562_p8 = pneg %p7561_p2  ;;  %p7568_p3 = por %p7567_p12, %p7566_p10 }
  0xb5   : > { %p7569_p6 = pnand %p7568_p3, %p7562_p8 }
  0xb7   : > { %7572 = shalt.err (!%p7569_p6)
}
  0xb8   : > { %s9101_s18 = smov 64   ;;  %s8029_s6 = scalar_lea.hbm %s9081_s17, %s7923_s10 }
  0xb9   : > { %7008 = dma.hbm_to_vmem [thread:$0]  (!%p7941_p1), %s8001_s22, 1024, %s8004_s20, %s1027_s2, %s9101_s18, %s9101_s18, %s7684_s28  }
  0xba   : > { %s1090_s27 = scalar_lea.vmem [#allocation7], %s7927_s1  ;;  %s7573_s13 = scalar_lea.hbm %s8029_s6, 1024 }
  0xbb   : > { %s1097_s12 = sshll.u32 %s1090_s27, 4  ;;  %p7574_p7 = scmp.ne.s32.totalorder %s8029_s6, %s7573_s13  ;;  %s1098_s12 = int_to_ptr.vmem [resolvable:$true] %s1097_s12 }
  0xbc   : > { %s7578_s24 = scalar_lea.hbm %s9081_s17, 2048  ;;  %p7579_p0 = scmp.lt.s32.totalorder %s8029_s6, %s9081_s17 }
  0xbd   : > { %p7576_p11 = pnand %p7574_p7, %p7961_p9  ;;  %p7580_p13 = scmp.lt.s32.totalorder %s7578_s24, %s7573_s13 }
  0xbf   : > { %p7577_p4 = pneg %p7576_p11  ;;  %p7581_p5 = por %p7580_p13, %p7579_p0 }
  0xc1   : > { %p7582_p2 = pnand %p7581_p5, %p7577_p4 }
  0xc3   : > { %7585 = shalt.err (!%p7582_p2)
}
  0xc4   : > { %s7586_s22 = scalar_lea.vmem %s1098_s12, 1024  ;;  %s7687_s1 = smov [#allocation7]  }
  0xc5   : > { %p7587_p8 = scmp.ne.s32.totalorder %s1098_s12, %s7586_s22  ;;  %s7591_s10 = sshll.u32 %s7687_s1, 4  ;;  %s7592_s10 = int_to_ptr.vmem [resolvable:$false] %s7591_s10 }
  0xc6   : > { %s7593_s20 = scalar_lea.vmem %s7592_s10, 2048  ;;  %p7594_p3 = scmp.lt.s32.totalorder %s1098_s12, %s7592_s10 }
  0xc7   : > { %p7589_p10 = pnand %p7587_p8, %p7961_p9  ;;  %p7595_p6 = scmp.lt.s32.totalorder %s7593_s20, %s7586_s22 }
  0xc9   : > { %p7590_p12 = pneg %p7589_p10  ;;  %p7596_p7 = por %p7595_p6, %p7594_p3 }
  0xcb   : > { %p7597_p11 = pnand %p7596_p7, %p7590_p12 }
  0xcd   : > { %7600 = shalt.err (!%p7597_p11)
}
  0xce   : > { %7014 = dma.hbm_to_vmem [thread:$0]  (!%p7941_p1), %s8029_s6, 1024, %s1098_s12, %s7955_s11, %s9101_s18, %s9101_s18, %s7684_s28  }
  0xcf   : > { %p9102_p9 = scmp.ne.s32.totalorder %s9090_s16, 0 }
  0xd1   : > { %1115 = sbr.rel (%p9102_p9) target bundleno = 8509 (0x213d), region = 144 }
  0xd6   : > { %s1117_s30 = sand.u32 1, %s7639_s23   ;;  %p9104_p4 = scmp.ne.s32.totalorder %s9089_s15, 0 }
  0xd7   : > { %s6108_s2 = sshll.u32 %s1117_s30, 6  ;;  %s1118_s27 = scalar_lea.sflag [#allocation4], %s1117_s30 }
  0xd8   : > { %s8051_s13 = scalar_lea.vmem [#allocation3], %s6108_s2 }
  0xd9   : > { %9103 = sst [smem:[#allocation53_spill]] %s8051_s13 }
  0xda   : > { %7618 = dma.done.wait (%p9104_p4), %s1118_s27, 1024  }
  0xdb   : > { %7620 = vsyncadd (%p9104_p4), %s1118_s27, 4294966272  ;;  %s1126_s7 = sand.u32 1, %s7879_s0   ;;  %s8058_s11 = scalar_lea.vmem [#allocation5], %s6108_s2 }
  0xdc   : > { %s1127_s24 = scalar_lea.sflag [#allocation6], %s1126_s7  ;;  %9105 = sst [smem:[#allocation54_spill]] %s8058_s11 }
  0xdd   : > { %7622 = dma.done.wait (%p9104_p4), %s1127_s24, 2048  }
  0xde   : > { %7624 = vsyncadd (%p9104_p4), %s1127_s24, 4294965248  ;;  %s8064_s16 = scalar_lea.vmem [#allocation7], %s6108_s2  ;;  %p9107_p1 = scmp.eq.s32.totalorder %s7879_s0, 0 }
  0xdf   : > { %9106 = sst [smem:[#allocation55_spill]] %s8064_s16 }
  0xe0   : > { %7626 = dma.done.wait (%p9107_p1), [#allocation9], 1040   ;;  %p9108_p0 = pmov %p9107_p1 }
  0xe2   : > { %7628 = vsyncadd (%p9108_p0), [#allocation9], 4294966256  ;;  %p9109_p13 = pmov %p9108_p0 }
  0xe3   : > { %p9110_p5 = pmov %p9108_p0 }
  0xe4   : > { %7630 = dma.done.wait (%p9109_p13), [#allocation12], 16  }
  0xe5   : > { %7632 = vsyncadd (%p9110_p5), [#allocation12], 4294967280  ;;  %s9113_s29 = sld [smem:[#allocation23_spill]]  ;;  %p1299_p2 = scmp.lt.s32.totalorder %s7879_s0, 1 }
  0xe6   : > { %s9115_s3 = sld [smem:[#allocation24_spill]]  ;;  %s1365_s6 = ssub.s32 0, %s7879_s0 }
  0xe7   : > { %s9116_s19 = sld [smem:[#allocation27_spill]]  ;;  %p1364_p8 = scmp.lt.s32.totalorder %s7879_s0, 0 }
  0xe8   : > { %s9118_s28 = sld [smem:[#allocation29_spill]]  ;;  %s6122_s10 = smin.u32 %s7879_s0, %s1365_s6 }
  0xe9   : > { %s9119_s18 = sld [smem:[#allocation30_spill]]  ;;  %p9132_p12 = scmp.ne.s32.totalorder %s7879_s0, 0 }
  0xea   : > { %s9120_s12 = sld [smem:[#allocation31_spill]] }
  0xeb   : > { %s8077_s22 = scalar_select %p1299_p2, %s7879_s0, 1 }
  0xec   : > { %s9121_s1 = sld [smem:[#allocation32_spill]] }
  0xed   : > { %s9122_s30 = sld [smem:[#allocation33_spill]]  ;;  %s6975_s2 = smul.u32 192, %s8077_s22 }
  0xee   : > { %s9123_s27 = sld [smem:[#allocation34_spill]]  ;;  %s6976_s7 = smul.u32 3, %s8077_s22 }
  0xef   : > { %s9124_s24 = sld [smem:[#allocation35_spill]]  ;;  %s8088_s9 = scalar_lea.vmem %s9113_s29, %s6975_s2 }
  0xf0   : > { %s9125_s5 = sld [smem:[#allocation37_spill]]  ;;  %s8093_s6 = scalar_lea.vmem %s9115_s3, %s6976_s7 }
  0xf1   : > { %9126 = sst [smem:[#allocation56_spill]] %s8088_s9  ;;  %s6295_s23 = sshll.u32 %s8077_s22, 6 }
  0xf2   : > { %s9127_s17 = sld [smem:[#allocation38_spill]]  ;;  %s8097_s16 = scalar_lea.vmem %s9116_s19, %s6295_s23 }
  0xf3   : > { %s9128_s26 = sld [smem:[#allocation40_spill]]  ;;  %s1327_s13 = scalar_lea.vmem %s9118_s28, %s8077_s22 }
  0xf4   : > { %9129 = sst [smem:[#allocation57_spill]] %s8093_s6  ;;  %s8104_s4 = scalar_lea.vmem %s9119_s18, %s6295_s23 }
  0xf5   : > { %s9130_s20 = sld [smem:[#allocation42_spill]]  ;;  %s1335_s8 = scalar_lea.vmem %s9120_s12, %s8077_s22 }
  0xf6   : > { %9131 = sst [smem:[#allocation58_spill]] %s8097_s16  ;;  %s6297_s2 = sshll.u32 %s8077_s22, 7 }
  0xf7   : > { %s8110_s29 = scalar_lea.vmem %s9121_s1, %s6297_s2  ;;  %s6121_s25 = sshll.u32 %s8077_s22, 1 }
  0xf8   : > { %s8114_s21 = scalar_lea.vmem %s9122_s30, %s6121_s25  ;;  %s1347_s14 = scalar_lea.vmem %s9123_s27, %s8077_s22 }
  0xf9   : > { %s1350_s7 = scalar_lea.vmem %s9124_s24, %s8077_s22  ;;  %s1353_s3 = scalar_lea.vmem %s9125_s5, %s8077_s22 }
  0xfa   : > { %s1356_s6 = scalar_lea.vmem %s9127_s17, %s8077_s22  ;;  %s1359_s9 = scalar_lea.vmem %s9128_s26, %s8077_s22 }
  0xfb   : > { %s1362_s19 = scalar_lea.vmem %s9130_s20, %s8077_s22  ;;  %s1367_s16 = sand.u32 1, %s6122_s10  }
  0xfc   : > { %s1368_s11 = ssub.s32 0, %s1367_s16  ;;  %1379 = sbr.rel (%p9132_p12) target bundleno = 264 (0x108), region = 172 }
  0xfd   : > { %s9169_s11 = smov (!%p1364_p8, %s1368_s11), %s1367_s16  ;;  %s9133_s15 = sld [smem:[#allocation17_spill]] (!%p9132_p12) }
  0xfe   : > { %p6124_p10 = scmp.lt.s32.totalorder %s9169_s11, 0  ;;  %s1374_s23 = sadd.s32 2, %s9169_s11 }
 0x100   : > { %s9171_s23 = smov (!%p6124_p10, %s1374_s23), %s9169_s11 }
 0x103   : > { %v6304_v0 = vld [vmem:[%s9133_s15] sm:$0xff]   ;;  %v6321_v1 = vld [vmem:[%s9133_s15 + $0x8] sm:$0xff]  }
 0x104   : > { %v6305_v2 = vunpack.c.l.bf16 %v6304_v0  ;;  %v6306_v3 = vunpack.c.h.bf16 %v6304_v0  ;;  %v6309_v4 = vunpack.c.l.bf16 %v6321_v1  ;;  %v6310_v5 = vunpack.c.h.bf16 %v6321_v1 }
 0x106   : > { %1388 = vst [vmem:[#allocation2 + $0x10] sm:$0xff] %v6305_v2  ;;  %1389 = vst [vmem:[#allocation2] sm:$0xff] %v6306_v3 }
 0x107   : > { %1390 = vst [vmem:[#allocation2 + $0x18] sm:$0xff] %v6309_v4  ;;  %1391 = vst [vmem:[#allocation2 + $0x8] sm:$0xff] %v6310_v5 }
 0x108 PF: > { %s9134_s5 = sld [smem:[#allocation56_spill]]  ;;  %v7688_v35 = vmov 0   ;;  %v1454_v52 = vlaneseq  ;;  %vm7690_vm0 = vmmov 0   ;;  %vm1974_vm1 = vcmask 261120   ;;  %s7691_s10 = smov 96  }
 0x109   : > { %s9135_s17 = sld [smem:[#allocation21_spill]]  ;;  %1686 = vmatprep.mubr.bf16.mxu0 %v7688_v35  ;;  %vm2083_vm2 = vcmask 130048   ;;  %s7692_s30 = smov 64  }
 0x10a   : > { %s9136_s25 = sld [smem:[#allocation22_spill]]  ;;  %v8178_v53 = vshrl.u32 %v1454_v52, 7  ;;  %s7693_s27 = smov 32  }
 0x10b   : > { %s9138_s11 = sld [smem:[#allocation57_spill]]  ;;  %s6298_s2 = sshll.u32 %s9171_s23, 4 }
 0x10c   : > { %v8184_v56 = vsub.s32 0, %v8178_v53  ;;  %s9139_s16 = sld [smem:[#allocation26_spill]]  ;;  %p6269_p3 = scmp.ne.s32.totalorder %s7879_s0, 1 }
 0x10d   : > { %v8136_v6 = vld [vmem:[#allocation2 + $0x10] sm:$0xff]  ;;  %v8140_v8 = vld [vmem:[#allocation2] sm:$0xff]  ;;  %s9140_s28 = sld [smem:[#allocation25_spill]] }
 0x10e   : > { %v8138_v7 = vld [vmem:[#allocation2 + $0x18] sm:$0xff]  ;;  %v1425_v9 = vmul.f32 %v8136_v6, %v8136_v6  ;;  %v8146_v11 = vld [vmem:[#allocation2 + $0x8] sm:$0xff]  ;;  %v1426_v14 = vmul.f32 %v8140_v8, %v8140_v8  ;;  %v7101_v17 = vld [vmem:[%s9134_s5 + $0x94] ss:$12 sps:$4 sm:$0xff]   ;;  %s9143_s1 = sld [smem:[#allocation20_spill]] }
 0x10f   : > { %v1427_v10 = vmul.f32 %v8138_v7, %v8138_v7  ;;  %v7097_v12 = vld [vmem:[%s9134_s5 + $0xac] ss:$12 sps:$4 sm:$0xff]   ;;  %v7099_v13 = vld [vmem:[%s9134_s5 + $0xa8] ss:$12 sps:$4 sm:$0xff]   ;;  %v1428_v15 = vmul.f32 %v8146_v11, %v8146_v11  ;;  %v7100_v16 = vld [vmem:[%s9134_s5 + $0xb0] ss:$12 sps:$4 sm:$0xff]  }
 0x110   : > { %1429 = vadd.xlane.f32.xlu0 %v1425_v9  ;;  %1654 = vmatprep.subr.bf16.mxu0 %v7097_v12  ;;  %v7103_v18 = vld [vmem:[%s9134_s5 + $0x90] ss:$12 sps:$4 sm:$0xff]   ;;  %v7104_v19 = vld [vmem:[%s9134_s5 + $0x98] ss:$12 sps:$4 sm:$0xff]   ;;  %v7108_v22 = vld [vmem:[%s9134_s5 + $0x80] ss:$12 sps:$4 sm:$0xff]   ;;  %s9137_s26 = scalar_lea.vmem %s9136_s25, %s8077_s22 }
 0x111   : > { %1433 = vadd.xlane.f32.xlu1 %v1427_v10  ;;  %1655 = vmatpush1.bf16.msra.mxu0 %v7099_v13  ;;  %v7105_v20 = vld [vmem:[%s9134_s5 + $0x7c] ss:$12 sps:$4 sm:$0xff]   ;;  %v7107_v21 = vld [vmem:[%s9134_s5 + $0x78] ss:$12 sps:$4 sm:$0xff]   ;;  %v7111_v24 = vld [vmem:[%s9134_s5 + $0x60] ss:$12 sps:$4 sm:$0xff]  }
 0x112   : > { %6519 = vmatprep.subr.bf16.mxu1 %v7100_v16  ;;  %1656 = vmatprep.subr.bf16.mxu0 %v7101_v17  ;;  %v7109_v23 = vld [vmem:[%s9134_s5 + $0x64] ss:$12 sps:$4 sm:$0xff]   ;;  %v7112_v25 = vld [vmem:[%s9134_s5 + $0x68] ss:$12 sps:$4 sm:$0xff]   ;;  %v7113_v26 = vld [vmem:[%s9134_s5 + $0x4c] ss:$12 sps:$4 sm:$0xff]   ;;  %s9141_s18 = scalar_lea.vmem %s9139_s16, %s8077_s22 }
 0x113   : > { %6520 = vmatpush3.bf16.msra.mxu1 %v7100_v16  ;;  %v7115_v27 = vld [vmem:[%s9134_s5 + $0x48] ss:$12 sps:$4 sm:$0xff]   ;;  %v7116_v28 = vld [vmem:[%s9134_s5 + $0x50] ss:$12 sps:$4 sm:$0xff]   ;;  %v7120_v30 = vld [vmem:[%s9134_s5 + $0x38] ss:$12 sps:$4 sm:$0xff]   ;;  %s9142_s12 = scalar_lea.vmem %s9140_s28, %s8077_s22 }
 0x114   : > { %1431 = vadd.xlane.f32.xlu0 %v1426_v14  ;;  %6521 = vmatprep.subr.bf16.mxu1 %v7104_v19  ;;  %v7117_v29 = vld [vmem:[%s9134_s5 + $0x34] ss:$12 sps:$4 sm:$0xff]   ;;  %v7119_v31 = vld [vmem:[%s9134_s5 + $0x30] ss:$12 sps:$4 sm:$0xff]   ;;  %v7123_v34 = vld [vmem:[%s9134_s5 + $0x18] ss:$12 sps:$4 sm:$0xff]  }
 0x115   : > { %1435 = vadd.xlane.f32.xlu1 %v1428_v15  ;;  %1657 = vmatpush1.bf16.msra.mxu0 %v7103_v18  ;;  %v7121_v32 = vld [vmem:[%s9134_s5 + $0x1c] ss:$12 sps:$4 sm:$0xff]   ;;  %v7124_v33 = vld [vmem:[%s9134_s5 + $0x20] ss:$12 sps:$4 sm:$0xff]   ;;  %v7125_v36 = vld [vmem:[%s9134_s5 + $0x4] ss:$12 sps:$4 sm:$0xff]  }
 0x116   : > { %1658 = vmatprep.subr.bf16.mxu0 %v7105_v20  ;;  %v7128_v37 = vld [vmem:[%s9134_s5 + $0x8] ss:$12 sps:$4 sm:$0xff]   ;;  %v7127_v38 = vld [vmem:[%s9134_s5] ss:$12 sps:$4 sm:$0xff]   ;;  %v7129_v39 = vld [vmem:[%s9135_s17 + $0x38] sm:$0xff]   ;;  %v1505_v17 = vsub.s32 2, %v8178_v53 }
 0x117   : > { %6522 = vmatpush3.bf16.msra.mxu1 %v7104_v19  ;;  %v1423_v54 = vld [vmem:[%s9137_s26] sm:$0x1]  ;;  %v7130_v12 = vld [vmem:[%s9135_s17 + $0x30] sm:$0xff]   ;;  %v7135_v13 = vld [vmem:[%s9135_s17 + $0x8] sm:$0xff]   ;;  %s9144_s20 = sld [smem:[#allocation58_spill]] }
 0x118   : > { %6523 = vmatprep.subr.bf16.mxu1 %v7108_v22  ;;  %v1424_v55 = vunpack.c.l.bf16 %v1423_v54  ;;  %v7136_v14 = vld [vmem:[%s9135_s17] sm:$0xff]   ;;  %s9145_s24 = sld [smem:[#allocation18_spill]] }
 0x119   : > { %1659 = vmatpush1.bf16.msra.mxu0 %v7107_v21  ;;  %v1496_v15 = vld [vmem:[%s9138_s11] sm:$0x7]  ;;  %s9155_s16 = sld [smem:[#allocation54_spill]] }
 0x11a   : > { %1660 = vmatprep.subr.bf16.mxu0 %v7109_v23  ;;  %v1457_v61 = vrot.slane %v1424_v55, %v8184_v56  ;;  %v8200_v16 = vunpack.c.l.bf16 %v1496_v15  ;;  %s9157_s28 = sld [smem:[#allocation55_spill]] }
 0x11b   : > { %6524 = vmatpush3.bf16.msra.mxu1 %v7108_v22  ;;  %s9161_s0 = sld [smem:[#allocation43_spill]] (!%p6269_p3) }
 0x11c   : > { %6525 = vmatprep.subr.bf16.mxu1 %v7112_v25  ;;  %v1502_v18 = vrot.slane %v8200_v16, %v8184_v56  ;;  %v1506_v19 = vrot.slane %v8200_v16, %v1505_v17 }
 0x11d   : > { %1661 = vmatpush1.bf16.msra.mxu0 %v7111_v24 }
 0x11e   : > { %1662 = vmatprep.subr.bf16.mxu0 %v7113_v26  ;;  %v1517_v20 = vrot.slane %v1502_v18, %v8184_v56  ;;  %v1521_v22 = vrot.slane %v1506_v19, %v8184_v56  ;;  %s8507_s5 = scalar_lea.vmem %s9145_s24, %s6298_s2 }
 0x11f   : > { %6526 = vmatpush3.bf16.msra.mxu1 %v7112_v25 }
 0x120   : > { %6527 = vmatprep.subr.bf16.mxu1 %v7116_v28 }
 0x121   : > { %1663 = vmatpush1.bf16.msra.mxu0 %v7115_v27 }
 0x122   : > { %1664 = vmatprep.subr.bf16.mxu0 %v7117_v29 }
 0x123   : > { %6528 = vmatpush3.bf16.msra.mxu1 %v7116_v28 }
 0x124   : > { %6529 = vmatprep.subr.bf16.mxu1 %v7120_v30 }
 0x125   : > { %1665 = vmatpush1.bf16.msra.mxu0 %v7119_v31 }
 0x126   : > { %1666 = vmatprep.subr.bf16.mxu0 %v7121_v32 }
 0x127   : > { %6530 = vmatpush3.bf16.msra.mxu1 %v7120_v30 }
 0x128   : > { %6531 = vmatprep.subr.bf16.mxu1 %v7124_v33 }
 0x129   : > { %1667 = vmatpush1.bf16.msra.mxu0 %v7123_v34 }
 0x12a   : > { %1668 = vmatprep.subr.bf16.mxu0 %v7125_v36 }
 0x12b   : > { %6532 = vmatpush3.bf16.msra.mxu1 %v7124_v33 }
 0x12c   : > { %6533 = vmatprep.subr.bf16.mxu1 %v7128_v37 }
 0x12d   : > { %1669 = vmatpush1.bf16.msra.mxu0 %v7127_v38 }
 0x12e   : > { %6539 = vmatprep.subr.bf16.mxu0 %v7129_v39 }
 0x12f   : > { %6534 = vmatpush3.bf16.msra.mxu1 %v7128_v37 }
 0x130   : > { %6559 = vmatprep.subr.bf16.mxu1 %v7129_v39 }
 0x199   : > { %v1430_v40 = vpop.xlane.xlu0 %1429 }
 0x19a   : > { %v1434_v41 = vpop.xlane.xlu1 %1433  ;;  %v1438_v42 = vmul.f32 0.0078125, %v1430_v40 }
 0x19b   : > { %v1440_v43 = vmul.f32 0.0078125, %v1434_v41 }
 0x19c   : > { %v1442_v44 = vadd.f32 1e-06, %v1438_v42 }
 0x19d   : > { %v1444_v45 = vadd.f32 1e-06, %v1440_v43  ;;  %v1432_v46 = vpop.xlane.xlu0 %1431 }
 0x19e   : > { %v1436_v47 = vpop.xlane.xlu1 %1435  ;;  %7203 = vrsqrt.f32 %v1442_v44  ;;  %v1439_v48 = vmul.f32 0.0078125, %v1432_v46 }
 0x19f   : > { %v1441_v49 = vmul.f32 0.0078125, %v1436_v47  ;;  %7205 = vrsqrt.f32 %v1444_v45 }
 0x1a0   : > { %v1443_v50 = vadd.f32 1e-06, %v1439_v48 }
 0x1a1   : > { %v1445_v51 = vadd.f32 1e-06, %v1441_v49 }
 0x1a2   : > { %7207 = vrsqrt.f32 %v1443_v50 }
 0x1a3   : > { %7209 = vrsqrt.f32 %v1445_v51  ;;  %v7689_v51 = vmov 0.0  }
 0x1ab   : > { %v7204_v57 = vpop.eup %7203 }
 0x1ac   : > { %v7206_v58 = vpop.eup %7205  ;;  %v1450_v60 = vmul.f32 %v7204_v57, %v8136_v6  ;;  %v7131_v6 = vld [vmem:[%s9135_s17 + $0x28] sm:$0xff]  }
 0x1ad   : > { %v1452_v59 = vmul.f32 %v7206_v58, %v8138_v7  ;;  %v7132_v7 = vld [vmem:[%s9135_s17 + $0x20] sm:$0xff]  }
 0x1ae   : > { %v1458_v3 = vmul.f32 %v1457_v61, %v1450_v60 }
 0x1af   : > { %v7208_v62 = vpop.eup %7207  ;;  %v1460_v2 = vmul.f32 %v1457_v61, %v1452_v59 }
 0x1b0   : > { %v7210_v63 = vpop.eup %7209  ;;  %v1451_v0 = vmul.f32 %v7208_v62, %v8140_v8  ;;  %v7133_v8 = vld [vmem:[%s9135_s17 + $0x18] sm:$0xff]  }
 0x1b1   : > { %v1453_v1 = vmul.f32 %v7210_v63, %v8146_v11  ;;  %v7134_v11 = vld [vmem:[%s9135_s17 + $0x10] sm:$0xff]  }
 0x1b2   : > { %v1459_v4 = vmul.f32 %v1457_v61, %v1451_v0 }
 0x1b3   : > { %v1461_v5 = vmul.f32 %v1457_v61, %v1453_v1 }
 0x1b4   : > { %v1462_v9 = vpack.c.bf16 %v1459_v4, %v1458_v3 }
 0x1b5   : > { %v1463_v10 = vpack.c.bf16 %v1461_v5, %v1460_v2 }
 0x1b6   : > { %1687 = vmatmul.mubr.bf16.vlgmr.msra.gmra.mxu0 %v1462_v9  ;;  %6535 = vmatprep.mubr.bf16.mxu1 %v1462_v9 }
 0x1b7   : > { %6536 = vmatmul.mubr.bf16.vlgmr.msra.gmra.mxu1 %v1463_v10  ;;  %1696 = vmatprep.mubr.bf16.mxu0 %v7688_v35 }
 0x1b8   : > { %6540 = vmatpush3.bf16.msra.mxu0 %v7129_v39  ;;  %6560 = vmatpush3.bf16.msra.mxu1 %v7129_v39 }
 0x1b9   : > { %6541 = vmatprep.subr.bf16.mxu0 %v7130_v12  ;;  %6561 = vmatprep.subr.bf16.mxu1 %v7130_v12 }
 0x1bc   : > { %6542 = vmatpush3.bf16.msra.mxu0 %v7130_v12  ;;  %6562 = vmatpush3.bf16.msra.mxu1 %v7130_v12 }
 0x1bd   : > { %6543 = vmatprep.subr.bf16.mxu0 %v7131_v6  ;;  %6563 = vmatprep.subr.bf16.mxu1 %v7131_v6 }
 0x1be   : > { %1697 = vmatmul.mubr.bf16.gmra.mxu0 %v1463_v10 }
 0x1c0   : > { %6544 = vmatpush3.bf16.msra.mxu0 %v7131_v6  ;;  %6564 = vmatpush3.bf16.msra.mxu1 %v7131_v6 }
 0x1c1   : > { %6545 = vmatprep.subr.bf16.mxu0 %v7132_v7  ;;  %6565 = vmatprep.subr.bf16.mxu1 %v7132_v7 }
 0x1c4   : > { %6546 = vmatpush3.bf16.msra.mxu0 %v7132_v7  ;;  %6566 = vmatpush3.bf16.msra.mxu1 %v7132_v7  ;;  %v1877_v7 = vld [vmem:[%s9141_s18] sm:$0x1] }
 0x1c5   : > { %6547 = vmatprep.subr.bf16.mxu0 %v7133_v8  ;;  %6567 = vmatprep.subr.bf16.mxu1 %v7133_v8 }
 0x1c8   : > { %6548 = vmatpush3.bf16.msra.mxu0 %v7133_v8  ;;  %6568 = vmatpush3.bf16.msra.mxu1 %v7133_v8  ;;  %v1878_v8 = vunpack.c.l.bf16 %v1877_v7 }
 0x1c9   : > { %6549 = vmatprep.subr.bf16.mxu0 %v7134_v11  ;;  %6569 = vmatprep.subr.bf16.mxu1 %v7134_v11 }
 0x1ca   : > { %v1945_v18 = vrot.slane %v1878_v8, %v8184_v56 }
 0x1cc   : > { %6550 = vmatpush3.bf16.msra.mxu0 %v7134_v11  ;;  %6570 = vmatpush3.bf16.msra.mxu1 %v7134_v11 }
 0x1cd   : > { %6551 = vmatprep.subr.bf16.mxu0 %v7135_v13  ;;  %6571 = vmatprep.subr.bf16.mxu1 %v7135_v13 }
 0x1d0   : > { %6552 = vmatpush3.bf16.msra.mxu0 %v7135_v13  ;;  %6572 = vmatpush3.bf16.msra.mxu1 %v7135_v13 }
 0x1d1   : > { %6553 = vmatprep.subr.bf16.mxu0 %v7136_v14  ;;  %6573 = vmatprep.subr.bf16.mxu1 %v7136_v14 }
 0x1d4   : > { %6554 = vmatpush3.bf16.msra.mxu0 %v7136_v14  ;;  %6574 = vmatpush3.bf16.msra.mxu1 %v7136_v14  ;;  %v1509_v14 = vsub.s32 4, %v8178_v53 }
 0x1d5   : > { %6585 = vmatprep.subr.bf16.mxu1 %v7689_v51  ;;  %6579 = vmatprep.subr.bf16.mxu0 %v7689_v51 }
 0x276   : > { %v1688_v21 = vpop.f32.mrf.mxu0 }
 0x277   : > { %v8210_v24 = vadd.f32 %v1688_v21, %v1517_v20  ;;  %v8240_v52 = vpop.f32.mrf.mxu1  ;;  %v1756_v21 = vld [vmem:[%s9142_s12] sm:$0x1] }
 0x278   : > { %v1690_v23 = vpop.f32.mrf.mxu0 }
 0x279   : > { %v8212_v26 = vadd.f32 %v1690_v23, %v1521_v22  ;;  %v1758_v29 = vmul.f32 %v8210_v24, %v8210_v24  ;;  %v8242_v54 = vpop.f32.mrf.mxu1 }
 0x27a   : > { %v1692_v25 = vpop.f32.mrf.mxu0 }
 0x27b   : > { %v8214_v27 = vadd.f32 %v1692_v25, %v1517_v20  ;;  %v1879_v33 = vmul.f32 %v8212_v26, %v8212_v26  ;;  %v8244_v55 = vpop.f32.mrf.mxu1 }
 0x27c   : > { %v1694_v28 = vpop.f32.mrf.mxu0 }
 0x27d   : > { %v1759_v30 = vmul.f32 %v8214_v27, %v8214_v27  ;;  %v8220_v31 = vadd.f32 %v1694_v28, %v1521_v22  ;;  %v8246_v57 = vpop.f32.mrf.mxu1  ;;  %v1510_v28 = vrot.slane %v8200_v16, %v1509_v14 }
 0x27e   : > { %v1698_v32 = vpop.f32.mrf.mxu0 }
 0x27f   : > { %v1880_v34 = vmul.f32 %v8220_v31, %v8220_v31  ;;  %v1762_v36 = vpack.c.bf16 %v1759_v30, %v1758_v29  ;;  %v8226_v38 = vadd.f32 %v1698_v32, %v1517_v20 }
 0x280   : > { %v1700_v37 = vpop.f32.mrf.mxu0 }
 0x281   : > { %6555 = vmatprep.mubr.bf16.mxu0 %v1762_v36  ;;  %v1883_v39 = vpack.c.bf16 %v1880_v34, %v1879_v33  ;;  %v1701_v41 = vadd.f32 %v1700_v37, %v1521_v22  ;;  %v1760_v44 = vmul.f32 %v8226_v38, %v8226_v38  ;;  %v1757_v34 = vunpack.c.l.bf16 %v1756_v21 }
 0x282   : > { %v1702_v40 = vpop.f32.mrf.mxu0 }
 0x283   : > { %v8228_v42 = vadd.f32 %v1702_v40, %v1517_v20  ;;  %6575 = vmatprep.mubr.bf16.mxu1 %v1883_v39  ;;  %v1881_v47 = vmul.f32 %v1701_v41, %v1701_v41 }
 0x284   : > { %v1704_v43 = vpop.f32.mrf.mxu0 }
 0x285   : > { %v1761_v45 = vmul.f32 %v8228_v42, %v8228_v42  ;;  %v1705_v46 = vadd.f32 %v1704_v43, %v1521_v22  ;;  %v1525_v43 = vrot.slane %v1510_v28, %v8184_v56 }
 0x287   : > { %v1763_v48 = vpack.c.bf16 %v1761_v45, %v1760_v44  ;;  %v1882_v49 = vmul.f32 %v1705_v46, %v1705_v46 }
 0x289   : > { %v1884_v50 = vpack.c.bf16 %v1882_v49, %v1881_v47  ;;  %6556 = vmatmul.mubr.bf16.vlgmr.msra.gmra.mxu0 %v1763_v48  ;;  %v1753_v49 = vadd.f32 %v8244_v55, %v1525_v43 }
 0x28a   : > { %6581 = vmatprep.mubr.msk.bf16.mxu0 %vm7690_vm0, %v7689_v51 }
 0x28b   : > { %6576 = vmatmul.mubr.bf16.vlgmr.msra.gmra.mxu1 %v1884_v50  ;;  %v1745_v50 = vadd.f32 %v8246_v57, %v1525_v43 }
 0x28c   : > { %6587 = vmatprep.mubr.msk.bf16.mxu1 %vm7690_vm0, %v7689_v51 }
 0x349   : > { %v6557_v58 = vpop.f32.mrf.mxu0 }
 0x34a   : > { %v1855_v12 = vadd.f32 1e-06, %v6557_v58 }
 0x34b   : > { %v1846_v59 = vpop.f32.mrf.mxu0  ;;  %v6577_v60 = vpop.f32.mrf.mxu1 }
 0x34c   : > { %v1928_v61 = vadd.f32 1e-06, %v6577_v60  ;;  %v1847_v6 = vadd.f32 1e-06, %v1846_v59 }
 0x34d   : > { %v6558_v62 = vpop.f32.mrf.mxu0  ;;  %v1919_v63 = vpop.f32.mrf.mxu1 }
 0x34e   : > { %v1920_v0 = vadd.f32 1e-06, %v1919_v63  ;;  %7211 = vrsqrt.f32 %v1928_v61  ;;  %v1858_v4 = vadd.f32 1e-06, %v6558_v62 }
 0x34f   : > { %v1849_v1 = vpop.f32.mrf.mxu0  ;;  %v6578_v2 = vpop.f32.mrf.mxu1 }
 0x350   : > { %v1931_v3 = vadd.f32 1e-06, %v6578_v2  ;;  %7213 = vrsqrt.f32 %v1920_v0  ;;  %v1850_v9 = vadd.f32 1e-06, %v1849_v1  ;;  %v8300_v2 = vld [vmem:[%s9143_s1] ss:$0 sm:$0xff] }
 0x351   : > { %v1922_v5 = vpop.f32.mrf.mxu1 }
 0x352   : > { %v1923_v10 = vadd.f32 1e-06, %v1922_v5  ;;  %7215 = vrsqrt.f32 %v1931_v3 }
 0x354   : > { %7217 = vrsqrt.f32 %v1923_v10 }
 0x355   : > { %7219 = vrsqrt.f32 %v1858_v4 }
 0x356   : > { %7221 = vrsqrt.f32 %v1850_v9 }
 0x357   : > { %7223 = vrsqrt.f32 %v1855_v12 }
 0x358   : > { %7225 = vrsqrt.f32 %v1847_v6 }
 0x35b   : > { %v7212_v11 = vpop.eup %7211 }
 0x35c   : > { %v1940_v15 = vmul.f32 %v7212_v11, %v1701_v41 }
 0x35d   : > { %v7214_v13 = vpop.eup %7213 }
 0x35e   : > { %v1938_v20 = vmul.f32 %v7214_v13, %v8212_v26  ;;  %v1948_v32 = vmul.f32 %v1945_v18, %v1940_v15 }
 0x35f   : > { %v7216_v19 = vpop.eup %7215 }
 0x360   : > { %v1941_v23 = vmul.f32 %v7216_v19, %v1705_v46  ;;  %v1946_v37 = vmul.f32 %v1945_v18, %v1938_v20  ;;  %v1872_v46 = vrot.slane %v1757_v34, %v8184_v56 }
 0x361   : > { %v7218_v22 = vpop.eup %7217 }
 0x362   : > { %v7220_v25 = vpop.eup %7219  ;;  %v1939_v29 = vmul.f32 %v7218_v22, %v8220_v31  ;;  %v1949_v33 = vmul.f32 %v1945_v18, %v1941_v23 }
 0x363   : > { %v7222_v30 = vpop.eup %7221  ;;  %v1868_v26 = vmul.f32 %v7220_v25, %v8228_v42 }
 0x364   : > { %v7224_v36 = vpop.eup %7223  ;;  %v1947_v39 = vmul.f32 %v1945_v18, %v1939_v29  ;;  %v8260_v41 = vpack.c.bf16 %v1949_v33, %v1948_v32  ;;  %v1866_v44 = vmul.f32 %v7222_v30, %v8214_v27  ;;  %v1750_v27 = vadd.f32 %v8240_v52, %v1525_v43 }
 0x365   : > { %v7226_v40 = vpop.eup %7225  ;;  %v1867_v31 = vmul.f32 %v7224_v36, %v8226_v38  ;;  %v1876_v48 = vmul.f32 %v1872_v46, %v1868_v26 }
 0x366   : > { %v8264_v16 = vpack.c.bf16 %v1947_v39, %v1946_v37  ;;  %v2026_v45 = vsel %vm1974_vm1, %v8260_v41, 0  ;;  %v1865_v47 = vmul.f32 %v7226_v40, %v8210_v24  ;;  %v1874_v38 = vmul.f32 %v1872_v46, %v1866_v44 }
 0x367   : > { %6586 = vmatpush3.bf16.xpose.msra.mxu1 %v2026_v45  ;;  %v1875_v58 = vmul.f32 %v1872_v46, %v1867_v31  ;;  %v1742_v24 = vadd.f32 %v8242_v54, %v1525_v43  ;;  %v8281_v61 = vpack.c.bf16 %v1753_v49, %v1750_v27 }
 0x368   : > { %v1979_v42 = vsel %vm1974_vm1, %v8264_v16, 0  ;;  %6597 = vmatprep.subr.bf16.mxu1 %v7689_v51  ;;  %v1873_v59 = vmul.f32 %v1872_v46, %v1865_v47 }
 0x369   : > { %6580 = vmatpush3.bf16.xpose.msra.mxu0 %v1979_v42  ;;  %v8279_v60 = vpack.c.bf16 %v1876_v48, %v1875_v58  ;;  %v8285_v63 = vpack.c.bf16 %v1745_v50, %v1742_v24 }
 0x36a   : > { %6591 = vmatprep.subr.bf16.mxu0 %v7689_v51  ;;  %v8283_v62 = vpack.c.bf16 %v1874_v38, %v1873_v59 }
 0x36e   : > { %6588 = vmatmul.mubr.msk.bf16.vlgmr.msra.gmra.mxu1 %vm1974_vm1, %v8279_v60 }
 0x36f   : > { %6598 = vmatpush3.bf16.msra.mxu1 %v8281_v61  ;;  %6599 = vmatprep.mubr.msk.bf16.mxu1 %vm7690_vm0, %v7689_v51 }
 0x370   : > { %6582 = vmatmul.mubr.msk.bf16.vlgmr.msra.gmra.mxu0 %vm1974_vm1, %v8283_v62  ;;  %6609 = vmatprep.subr.bf16.mxu1 %v7689_v51 }
 0x371   : > { %6592 = vmatpush3.bf16.msra.mxu0 %v8285_v63  ;;  %6593 = vmatprep.mubr.msk.bf16.mxu0 %vm7690_vm0, %v7689_v51 }
 0x372   : > { %6603 = vmatprep.subr.bf16.mxu0 %v7689_v51 }
 0x42e   : > { %v2062_v52 = vpop.f32.mrf.mxu1 }
 0x42f   : > { %v2071_v55 = vmul.f32 0.17677669, %v2062_v52 }
 0x430   : > { %v2015_v54 = vpop.f32.mrf.mxu0  ;;  %v6589_v0 = vpop.f32.mrf.mxu1 }
 0x431   : > { %v2069_v57 = vmul.f32 0.17677669, %v2015_v54  ;;  %v2081_v7 = vadd.f32 %v8300_v2, %v2071_v55 }
 0x432   : > { %v6583_v1 = vpop.f32.mrf.mxu0  ;;  %v2065_v3 = vpop.f32.mrf.mxu1 }
 0x433   : > { %v2079_v4 = vadd.f32 %v8300_v2, %v2069_v57  ;;  %v2072_v9 = vmul.f32 0.17677669, %v2065_v3  ;;  %v2090_v13 = vsel %vm2083_vm2, %v2081_v7, -inf }
 0x434   : > { %v2018_v5 = vpop.f32.mrf.mxu0  ;;  %v6590_v12 = vpop.f32.mrf.mxu1 }
 0x435   : > { %v2070_v10 = vmul.f32 0.17677669, %v2018_v5  ;;  %v2084_v6 = vsel %vm2083_vm2, %v2079_v4, -inf  ;;  %v2082_v15 = vadd.f32 %v8300_v2, %v2072_v9 }
 0x436   : > { %2085 = vmax.xlane.f32.xlu0 %v2084_v6  ;;  %v6584_v8 = vpop.f32.mrf.mxu0 }
 0x437   : > { %v2080_v11 = vadd.f32 %v8300_v2, %v2070_v10  ;;  %v2093_v18 = vsel %vm2083_vm2, %v2082_v15, -inf }
 0x439   : > { %v2087_v14 = vsel %vm2083_vm2, %v2080_v11, -inf }
 0x43a   : > { %2091 = vmax.xlane.f32.xlu0 %v2090_v13  ;;  %2088 = vmax.xlane.f32.xlu1 %v2087_v14 }
 0x43e   : > { %2094 = vmax.xlane.f32.xlu1 %v2093_v18 }
 0x44f   : > { %2277 = vrot.lane.b32.xlu1 %v8260_v41, %s7691_s10 }
 0x4bf   : > { %v2086_v19 = vpop.xlane.xlu0 %2085 }
 0x4c0   : > { %v2096_v20 = vsub.f32 %v2079_v4, %v2086_v19 }
 0x4c2   : > { %v2100_v25 = vmul.f32 1.442695, %v2096_v20 }
 0x4c3   : > { %v2092_v21 = vpop.xlane.xlu0 %2091  ;;  %v2089_v22 = vpop.xlane.xlu1 %2088 }
 0x4c4   : > { %v2098_v23 = vsub.f32 %v2081_v7, %v2092_v21  ;;  %v2097_v29 = vsub.f32 %v2080_v11, %v2089_v22 }
 0x4c6   : > { %v2104_v28 = vmul.f32 1.442695, %v2098_v23  ;;  %v2102_v33 = vmul.f32 1.442695, %v2097_v29 }
 0x4c7   : > { %v2095_v30 = vpop.xlane.xlu1 %2094 }
 0x4c8   : > { %7227 = vpow2.f32 %v2104_v28  ;;  %v2099_v32 = vsub.f32 %v2082_v15, %v2095_v30 }
 0x4c9   : > { %7229 = vpow2.f32 %v2100_v25 }
 0x4ca   : > { %v2106_v34 = vmul.f32 1.442695, %v2099_v32 }
 0x4cb   : > { %v2278_v45 = vpop.permute.xlu1 %2277 }
 0x4cc   : > { %7231 = vpow2.f32 %v2106_v34  ;;  %v2283_v55 = vsel %vm1974_vm1, %v2278_v45, 0 }
 0x4cd   : > { %7233 = vpow2.f32 %v2102_v33 }
 0x4d5   : > { %v7228_v36 = vpop.eup %7227 }
 0x4d6   : > { %v2114_v37 = vsel %vm2083_vm2, %v7228_v36, 0.0  ;;  %v7230_v39 = vpop.eup %7229 }
 0x4d7   : > { %2115 = vadd.xlane.f32.xlu0 %v2114_v37  ;;  %v2108_v26 = vsel %vm2083_vm2, %v7230_v39, 0.0 }
 0x4d9   : > { %v7232_v40 = vpop.eup %7231 }
 0x4da   : > { %v2117_v43 = vsel %vm2083_vm2, %v7232_v40, 0.0  ;;  %v7234_v44 = vpop.eup %7233 }
 0x4db   : > { %2109 = vadd.xlane.f32.xlu0 %v2108_v26  ;;  %2118 = vadd.xlane.f32.xlu1 %v2117_v43  ;;  %v2111_v31 = vsel %vm2083_vm2, %v7234_v44, 0.0 }
 0x4df   : > { %2112 = vadd.xlane.f32.xlu1 %v2111_v31 }
 0x4f0   : > { %2221 = vrot.lane.b32.xlu1 %v8283_v62, %s7691_s10 }
 0x4f1   : > { %2224 = vrot.lane.b32.xlu0 %v8264_v16, %s7691_s10 }
 0x4f4   : > { %2274 = vrot.lane.b32.xlu1 %v8279_v60, %s7691_s10 }
 0x560   : > { %v2116_v46 = vpop.xlane.xlu0 %2115 }
 0x561   : > { %7235 = vrcp.f32 %v2116_v46 }
 0x564   : > { %v2110_v47 = vpop.xlane.xlu0 %2109  ;;  %v2119_v42 = vpop.xlane.xlu1 %2118 }
 0x565   : > { %7237 = vrcp.f32 %v2119_v42 }
 0x566   : > { %7239 = vrcp.f32 %v2110_v47 }
 0x568   : > { %v2113_v48 = vpop.xlane.xlu1 %2112  ;;  %v2225_v57 = vpop.permute.xlu0 %2224 }
 0x569   : > { %7241 = vrcp.f32 %v2113_v48  ;;  %v2230_v3 = vsel %vm1974_vm1, %v2225_v57, 0 }
 0x56c   : > { %v2222_v0 = vpop.permute.xlu1 %2221 }
 0x56e   : > { %v7236_v27 = vpop.eup %7235 }
 0x56f   : > { %v2125_v50 = vmul.f32 %v7236_v27, %v7228_v36 }
 0x570   : > { %v2275_v4 = vpop.permute.xlu1 %2274 }
 0x572   : > { %v7238_v49 = vpop.eup %7237 }
 0x573   : > { %v7240_v38 = vpop.eup %7239  ;;  %v2127_v58 = vmul.f32 %v7238_v49, %v7232_v40 }
 0x574   : > { %v2121_v52 = vmul.f32 %v7240_v38, %v7230_v39 }
 0x575   : > { %v2129_v24 = vpack.c.bf16 %v2127_v58, %v2125_v50 }
 0x576   : > { %v7242_v59 = vpop.eup %7241 }
 0x577   : > { %v2123_v54 = vmul.f32 %v7242_v59, %v7234_v44  ;;  %6600 = vmatmul.mubr.msk.bf16.vlgmr.msra.gmra.mxu1 %vm2083_vm2, %v2129_v24 }
 0x578   : > { %6610 = vmatpush3.bf16.xpose.msra.mxu1 %v2283_v55  ;;  %6611 = vmatprep.mubr.msk.bf16.mxu1 %vm7690_vm0, %v7689_v51 }
 0x579   : > { %v2128_v1 = vpack.c.bf16 %v2123_v54, %v2121_v52  ;;  %6621 = vmatprep.subr.bf16.mxu1 %v7689_v51 }
 0x57b   : > { %6594 = vmatmul.mubr.msk.bf16.vlgmr.msra.gmra.mxu0 %vm2083_vm2, %v2128_v1 }
 0x57c   : > { %6604 = vmatpush3.bf16.xpose.msra.mxu0 %v2230_v3  ;;  %6605 = vmatprep.mubr.msk.bf16.mxu0 %vm7690_vm0, %v7689_v51 }
 0x57d   : > { %6615 = vmatprep.subr.bf16.mxu0 %v7689_v51 }
 0x57f   : > { %6612 = vmatmul.mubr.msk.bf16.vlgmr.msra.gmra.mxu1 %vm1974_vm1, %v2275_v4 }
 0x580   : > { %6623 = vmatprep.mubr.msk.bf16.mxu1 %vm7690_vm0, %v7689_v51 }
 0x583   : > { %6606 = vmatmul.mubr.msk.bf16.vlgmr.msra.gmra.mxu0 %vm1974_vm1, %v2222_v0 }
 0x584   : > { %6617 = vmatprep.mubr.msk.bf16.mxu0 %vm7690_vm0, %v7689_v51 }
 0x637   : > { %v8338_v5 = vpop.f32.mrf.mxu1 }
 0x639   : > { %v6601_v9 = vpop.f32.mrf.mxu1 }
 0x63b   : > { %v8340_v10 = vpop.f32.mrf.mxu0  ;;  %v8342_v12 = vpop.f32.mrf.mxu1 }
 0x63c   : > { %v2219_v6 = vpack.c.bf16 %v8342_v12, %v8338_v5 }
 0x63d   : > { %v6595_v7 = vpop.f32.mrf.mxu0  ;;  %v6602_v8 = vpop.f32.mrf.mxu1 }
 0x63f   : > { %v8346_v11 = vpop.f32.mrf.mxu0  ;;  %v2319_v14 = vpop.f32.mrf.mxu1 }
 0x640   : > { %v2218_v13 = vpack.c.bf16 %v8346_v11, %v8340_v10  ;;  %v2328_v20 = vmul.f32 0.17677669, %v2319_v14  ;;  %v7137_v14 = vld [vmem:[%s9144_s20 + $0x8] sm:$0xff]   ;;  %v7139_v11 = vld [vmem:[%s9144_s20 + $0x18] sm:$0xff]  }
 0x641   : > { %v6596_v15 = vpop.f32.mrf.mxu0  ;;  %v6613_v18 = vpop.f32.mrf.mxu1 }
 0x642   : > { %v2332_v34 = vadd.f32 %v8300_v2, %v2328_v20 }
 0x643   : > { %v2266_v19 = vpop.f32.mrf.mxu0  ;;  %v2322_v22 = vpop.f32.mrf.mxu1 }
 0x644   : > { %v2326_v21 = vmul.f32 0.17677669, %v2266_v19  ;;  %v2329_v30 = vmul.f32 0.17677669, %v2322_v22  ;;  %v2340_v39 = vsel %vm2083_vm2, %v2332_v34, -inf }
 0x645   : > { %v6607_v23 = vpop.f32.mrf.mxu0  ;;  %v6614_v25 = vpop.f32.mrf.mxu1 }
 0x646   : > { %v2330_v28 = vadd.f32 %v8300_v2, %v2326_v21  ;;  %v2333_v26 = vadd.f32 %v8300_v2, %v2329_v30 }
 0x647   : > { %v2269_v29 = vpop.f32.mrf.mxu0 }
 0x648   : > { %v2327_v32 = vmul.f32 0.17677669, %v2269_v29  ;;  %v2334_v33 = vsel %vm2083_vm2, %v2330_v28, -inf  ;;  %v2343_v43 = vsel %vm2083_vm2, %v2333_v26, -inf }
 0x649   : > { %2335 = vmax.xlane.f32.xlu0 %v2334_v33  ;;  %v6608_v36 = vpop.f32.mrf.mxu0 }
 0x64a   : > { %v2331_v37 = vadd.f32 %v8300_v2, %v2327_v32 }
 0x64c   : > { %v2337_v40 = vsel %vm2083_vm2, %v2331_v37, -inf }
 0x64d   : > { %2341 = vmax.xlane.f32.xlu0 %v2340_v39  ;;  %2338 = vmax.xlane.f32.xlu1 %v2337_v40 }
 0x651   : > { %2344 = vmax.xlane.f32.xlu0 %v2343_v43 }
 0x6d2   : > { %v2336_v44 = vpop.xlane.xlu0 %2335 }
 0x6d3   : > { %v2346_v31 = vsub.f32 %v2330_v28, %v2336_v44  ;;  %v7138_v28 = vld [vmem:[%s9144_s20] sm:$0xff]  }
 0x6d5   : > { %v2350_v42 = vmul.f32 1.442695, %v2346_v31 }
 0x6d6   : > { %v2342_v45 = vpop.xlane.xlu0 %2341  ;;  %v2339_v46 = vpop.xlane.xlu1 %2338 }
 0x6d7   : > { %v2348_v47 = vsub.f32 %v2332_v34, %v2342_v45  ;;  %v2347_v27 = vsub.f32 %v2331_v37, %v2339_v46 }
 0x6d9   : > { %v2354_v48 = vmul.f32 1.442695, %v2348_v47  ;;  %v2352_v50 = vmul.f32 1.442695, %v2347_v27 }
 0x6da   : > { %v2345_v49 = vpop.xlane.xlu0 %2344 }
 0x6db   : > { %7243 = vpow2.f32 %v2354_v48  ;;  %v2349_v38 = vsub.f32 %v2333_v26, %v2345_v49 }
 0x6dc   : > { %7245 = vpow2.f32 %v2350_v42 }
 0x6dd   : > { %v2356_v58 = vmul.f32 1.442695, %v2349_v38 }
 0x6df   : > { %7247 = vpow2.f32 %v2356_v58 }
 0x6e0   : > { %7249 = vpow2.f32 %v2352_v50 }
 0x6e8   : > { %v7244_v59 = vpop.eup %7243 }
 0x6e9   : > { %v2364_v24 = vsel %vm2083_vm2, %v7244_v59, 0.0  ;;  %v7246_v52 = vpop.eup %7245 }
 0x6ea   : > { %2365 = vadd.xlane.f32.xlu0 %v2364_v24  ;;  %v2358_v55 = vsel %vm2083_vm2, %v7246_v52, 0.0 }
 0x6ec   : > { %v7248_v54 = vpop.eup %7247 }
 0x6ed   : > { %v2367_v57 = vsel %vm2083_vm2, %v7248_v54, 0.0  ;;  %v7250_v0 = vpop.eup %7249 }
 0x6ee   : > { %2359 = vadd.xlane.f32.xlu0 %v2358_v55  ;;  %2368 = vadd.xlane.f32.xlu1 %v2367_v57  ;;  %v2361_v1 = vsel %vm2083_vm2, %v7250_v0, 0.0 }
 0x6f2   : > { %2362 = vadd.xlane.f32.xlu1 %v2361_v1 }
 0x703   : > { %2429 = vrot.lane.b32.xlu1 %v8281_v61, %s7691_s10 }
 0x704   : > { %2381 = vrot.lane.b32.xlu0 %v8285_v63, %s7691_s10 }
 0x707   : > { %2614 = vrot.lane.b32.xlu1 %v8264_v16, %s7692_s30 }
 0x708   : > { %2612 = vrot.lane.b32.xlu0 %v8283_v62, %s7692_s30 }
 0x70b   : > { %2665 = vrot.lane.b32.xlu1 %v8260_v41, %s7692_s30 }
 0x70f   : > { %2663 = vrot.lane.b32.xlu1 %v8279_v60, %s7692_s30 }
 0x773   : > { %v2366_v3 = vpop.xlane.xlu0 %2365 }
 0x774   : > { %7251 = vrcp.f32 %v2366_v3 }
 0x777   : > { %v2360_v4 = vpop.xlane.xlu0 %2359  ;;  %v2369_v9 = vpop.xlane.xlu1 %2368 }
 0x778   : > { %7253 = vrcp.f32 %v2369_v9 }
 0x779   : > { %7255 = vrcp.f32 %v2360_v4 }
 0x77b   : > { %v2382_v7 = vpop.permute.xlu0 %2381  ;;  %v2363_v8 = vpop.xlane.xlu1 %2362 }
 0x77c   : > { %7257 = vrcp.f32 %v2363_v8  ;;  %6616 = vmatpush3.bf16.msra.mxu0 %v2382_v7 }
 0x77d   : > { %6627 = vmatprep.subr.bf16.mxu0 %v7139_v11 }
 0x77f   : > { %v2430_v15 = vpop.permute.xlu1 %2429  ;;  %v2613_v49 = vpop.permute.xlu0 %2612 }
 0x780   : > { %6622 = vmatpush3.bf16.msra.mxu1 %v2430_v15 }
 0x781   : > { %6635 = vmatprep.subr.bf16.mxu1 %v7137_v14  ;;  %v7252_v18 = vpop.eup %7251 }
 0x782   : > { %v2375_v21 = vmul.f32 %v7252_v18, %v7244_v59 }
 0x783   : > { %v2615_v29 = vpop.permute.xlu1 %2614 }
 0x784   : > { %v2620_v47 = vsel %vm1974_vm1, %v2615_v29, 0 }
 0x785   : > { %v7254_v19 = vpop.eup %7253 }
 0x786   : > { %v7256_v20 = vpop.eup %7255  ;;  %v2377_v22 = vmul.f32 %v7254_v19, %v7248_v54 }
 0x787   : > { %v2371_v30 = vmul.f32 %v7256_v20, %v7246_v52  ;;  %v2666_v34 = vpop.permute.xlu1 %2665 }
 0x788   : > { %v2379_v25 = vpack.c.bf16 %v2377_v22, %v2375_v21  ;;  %v2671_v36 = vsel %vm1974_vm1, %v2666_v34, 0 }
 0x789   : > { %v7258_v23 = vpop.eup %7257 }
 0x78a   : > { %v2373_v32 = vmul.f32 %v7258_v23, %v7250_v0  ;;  %6624 = vmatmul.mubr.msk.bf16.vlgmr.msra.gmra.mxu1 %vm2083_vm2, %v2379_v25 }
 0x78b   : > { %6636 = vmatpush3.bf16.msra.mxu1 %v7137_v14  ;;  %6639 = vmatprep.mubr.msk.bf16.mxu1 %vm1974_vm1, %v2218_v13  ;;  %v2664_v10 = vpop.permute.xlu1 %2663  ;;  %v7140_v13 = vld [vmem:[%s9144_s20 + $0x10] sm:$0xff]  }
 0x78c   : > { %v2378_v33 = vpack.c.bf16 %v2373_v32, %v2371_v30  ;;  %6637 = vmatprep.subr.bf16.mxu1 %v7138_v28 }
 0x78e   : > { %6618 = vmatmul.mubr.msk.bf16.vlgmr.msra.gmra.mxu0 %vm2083_vm2, %v2378_v33 }
 0x78f   : > { %6638 = vmatpush3.bf16.msra.mxu1 %v7138_v28  ;;  %6628 = vmatpush3.bf16.msra.mxu0 %v7139_v11 }
 0x790   : > { %6649 = vmatprep.subr.bf16.mxu1 %v7689_v51  ;;  %6629 = vmatprep.subr.bf16.mxu0 %v7140_v13 }
 0x792   : > { %6640 = vmatmul.mubr.msk.bf16.vlgmr.msra.gmra.mxu1 %vm1974_vm1, %v2219_v6 }
 0x793   : > { %6650 = vmatpush3.bf16.xpose.msra.mxu1 %v2671_v36  ;;  %6651 = vmatprep.mubr.msk.bf16.mxu1 %vm7690_vm0, %v7689_v51 }
 0x794   : > { %6661 = vmatprep.subr.bf16.mxu1 %v7689_v51  ;;  %6630 = vmatpush3.bf16.msra.mxu0 %v7140_v13 }
 0x795   : > { %6643 = vmatprep.subr.bf16.mxu0 %v7689_v51 }
 0x79a   : > { %6652 = vmatmul.mubr.msk.bf16.vlgmr.msra.gmra.mxu1 %vm1974_vm1, %v2664_v10 }
 0x79b   : > { %6663 = vmatprep.mubr.msk.bf16.mxu1 %vm7690_vm0, %v7689_v51 }
 0x84a   : > { %v2469_v5 = vpop.f32.mrf.mxu1 }
 0x84c   : > { %v6625_v12 = vpop.f32.mrf.mxu1 }
 0x84e   : > { %v2421_v6 = vpop.f32.mrf.mxu0  ;;  %v2472_v37 = vpop.f32.mrf.mxu1 }
 0x84f   : > { %v2477_v31 = vpack.c.bf16 %v2472_v37, %v2469_v5 }
 0x850   : > { %v6619_v39 = vpop.f32.mrf.mxu0  ;;  %v6626_v40 = vpop.f32.mrf.mxu1 }
 0x852   : > { %v2424_v26 = vpop.f32.mrf.mxu0  ;;  %v8397_v44 = vpop.f32.mrf.mxu1 }
 0x853   : > { %v2476_v43 = vpack.c.bf16 %v2424_v26, %v2421_v6 }
 0x854   : > { %v6620_v45 = vpop.f32.mrf.mxu0  ;;  %v8399_v46 = vpop.f32.mrf.mxu1 }
 0x855   : > { %6631 = vmatprep.mubr.msk.bf16.mxu0 %vm1974_vm1, %v2476_v43 }
 0x856   : > { %6632 = vmatmul.mubr.msk.bf16.vlgmr.msra.gmra.mxu0 %vm1974_vm1, %v2477_v31  ;;  %v8404_v42 = vpop.f32.mrf.mxu1 }
 0x857   : > { %6644 = vmatpush3.bf16.xpose.msra.mxu0 %v2620_v47  ;;  %6645 = vmatprep.mubr.msk.bf16.mxu0 %vm7690_vm0, %v7689_v51 }
 0x858   : > { %6655 = vmatprep.subr.bf16.mxu0 %v7689_v51  ;;  %v8409_v48 = vpop.f32.mrf.mxu1 }
 0x85a   : > { %v2707_v27 = vpop.f32.mrf.mxu1 }
 0x85b   : > { %v2716_v57 = vmul.f32 0.17677669, %v2707_v27 }
 0x85c   : > { %v6653_v38 = vpop.f32.mrf.mxu1 }
 0x85d   : > { %v2720_v14 = vadd.f32 %v8300_v2, %v2716_v57 }
 0x85e   : > { %6646 = vmatmul.mubr.msk.bf16.vlgmr.msra.gmra.mxu0 %vm1974_vm1, %v2613_v49  ;;  %v2710_v50 = vpop.f32.mrf.mxu1 }
 0x85f   : > { %6657 = vmatprep.mubr.msk.bf16.mxu0 %vm7690_vm0, %v7689_v51  ;;  %v2717_v9 = vmul.f32 0.17677669, %v2710_v50  ;;  %v2728_v19 = vsel %vm2083_vm2, %v2720_v14, -inf }
 0x860   : > { %v6654_v58 = vpop.f32.mrf.mxu1 }
 0x861   : > { %v2721_v21 = vadd.f32 %v8300_v2, %v2717_v9 }
 0x863   : > { %v2731_v22 = vsel %vm2083_vm2, %v2721_v21, -inf }
 0x916   : > { %v8414_v59 = vpop.f32.mrf.mxu0 }
 0x918   : > { %v8416_v24 = vpop.f32.mrf.mxu0 }
 0x91a   : > { %v8418_v52 = vpop.f32.mrf.mxu0 }
 0x91c   : > { %v8420_v54 = vpop.f32.mrf.mxu0 }
 0x91e   : > { %v2656_v55 = vpop.f32.mrf.mxu0 }
 0x91f   : > { %v2714_v0 = vmul.f32 0.17677669, %v2656_v55 }
 0x920   : > { %v6647_v1 = vpop.f32.mrf.mxu0 }
 0x921   : > { %v2718_v3 = vadd.f32 %v8300_v2, %v2714_v0 }
 0x922   : > { %v2659_v4 = vpop.f32.mrf.mxu0 }
 0x923   : > { %v2715_v7 = vmul.f32 0.17677669, %v2659_v4  ;;  %v2722_v8 = vsel %vm2083_vm2, %v2718_v3, -inf }
 0x924   : > { %2723 = vmax.xlane.f32.xlu0 %v2722_v8  ;;  %v6648_v15 = vpop.f32.mrf.mxu0  ;;  %v7142_v8 = vld [vmem:[%s9144_s20 + $0x20] sm:$0xff]  }
 0x925   : > { %v2719_v18 = vadd.f32 %v8300_v2, %v2715_v7  ;;  %v7141_v7 = vld [vmem:[%s9144_s20 + $0x28] sm:$0xff]  }
 0x927   : > { %v2725_v20 = vsel %vm2083_vm2, %v2719_v18, -inf }
 0x928   : > { %2729 = vmax.xlane.f32.xlu0 %v2728_v19  ;;  %2726 = vmax.xlane.f32.xlu1 %v2725_v20 }
 0x92c   : > { %2732 = vmax.xlane.f32.xlu0 %v2731_v22 }
 0x9ad   : > { %v2724_v23 = vpop.xlane.xlu0 %2723 }
 0x9ae   : > { %v2734_v25 = vsub.f32 %v2718_v3, %v2724_v23 }
 0x9b0   : > { %v2738_v32 = vmul.f32 1.442695, %v2734_v25 }
 0x9b1   : > { %v2730_v28 = vpop.xlane.xlu0 %2729  ;;  %v2727_v29 = vpop.xlane.xlu1 %2726 }
 0x9b2   : > { %v2736_v30 = vsub.f32 %v2720_v14, %v2730_v28  ;;  %v2735_v34 = vsub.f32 %v2719_v18, %v2727_v29 }
 0x9b4   : > { %v2742_v33 = vmul.f32 1.442695, %v2736_v30  ;;  %v2740_v11 = vmul.f32 1.442695, %v2735_v34 }
 0x9b5   : > { %v2733_v36 = vpop.xlane.xlu0 %2732 }
 0x9b6   : > { %7259 = vpow2.f32 %v2742_v33  ;;  %v2737_v10 = vsub.f32 %v2721_v21, %v2733_v36 }
 0x9b7   : > { %7261 = vpow2.f32 %v2738_v32 }
 0x9b8   : > { %v2744_v13 = vmul.f32 1.442695, %v2737_v10 }
 0x9ba   : > { %7263 = vpow2.f32 %v2744_v13 }
 0x9bb   : > { %7265 = vpow2.f32 %v2740_v11 }
 0x9c3   : > { %v7260_v5 = vpop.eup %7259 }
 0x9c4   : > { %v2752_v12 = vsel %vm2083_vm2, %v7260_v5, 0.0  ;;  %v7262_v6 = vpop.eup %7261 }
 0x9c5   : > { %2753 = vadd.xlane.f32.xlu0 %v2752_v12  ;;  %v2746_v39 = vsel %vm2083_vm2, %v7262_v6, 0.0 }
 0x9c7   : > { %v7264_v37 = vpop.eup %7263 }
 0x9c8   : > { %v2755_v40 = vsel %vm2083_vm2, %v7264_v37, 0.0  ;;  %v7266_v26 = vpop.eup %7265 }
 0x9c9   : > { %2747 = vadd.xlane.f32.xlu0 %v2746_v39  ;;  %2756 = vadd.xlane.f32.xlu1 %v2755_v40  ;;  %v2749_v43 = vsel %vm2083_vm2, %v7266_v26, 0.0 }
 0x9cd   : > { %2750 = vadd.xlane.f32.xlu1 %v2749_v43 }
 0x9de   : > { %2815 = vrot.lane.b32.xlu1 %v8281_v61, %s7692_s30 }
 0x9df   : > { %2768 = vrot.lane.b32.xlu0 %v8285_v63, %s7692_s30 }
 0x9e2   : > { %2937 = vrot.lane.b32.xlu1 %v8264_v16, %s7693_s27 }
 0x9e3   : > { %2935 = vrot.lane.b32.xlu0 %v8283_v62, %s7693_s27 }
 0x9e6   : > { %2988 = vrot.lane.b32.xlu1 %v8260_v41, %s7693_s27 }
 0x9ea   : > { %2986 = vrot.lane.b32.xlu1 %v8279_v60, %s7693_s27 }
 0xa4e   : > { %v2754_v31 = vpop.xlane.xlu0 %2753 }
 0xa4f   : > { %7267 = vrcp.f32 %v2754_v31 }
 0xa52   : > { %v2748_v45 = vpop.xlane.xlu0 %2747  ;;  %v2757_v47 = vpop.xlane.xlu1 %2756 }
 0xa53   : > { %7269 = vrcp.f32 %v2757_v47 }
 0xa54   : > { %7271 = vrcp.f32 %v2748_v45 }
 0xa56   : > { %v2769_v27 = vpop.permute.xlu0 %2768  ;;  %v2751_v49 = vpop.xlane.xlu1 %2750 }
 0xa57   : > { %7273 = vrcp.f32 %v2751_v49  ;;  %6656 = vmatpush3.bf16.msra.mxu0 %v2769_v27  ;;  %v2606_v27 = vadd.f32 %v8397_v44, %v8414_v59 }
 0xa58   : > { %6667 = vmatprep.subr.bf16.mxu0 %v7141_v7 }
 0xa5a   : > { %v2816_v16 = vpop.permute.xlu1 %2815  ;;  %v2936_v9 = vpop.permute.xlu0 %2935 }
 0xa5b   : > { %6662 = vmatpush3.bf16.msra.mxu1 %v2816_v16  ;;  %v2598_v16 = vadd.f32 %v8399_v46, %v8416_v24 }
 0xa5c   : > { %6675 = vmatprep.subr.bf16.mxu1 %v7689_v51  ;;  %v7268_v62 = vpop.eup %7267 }
 0xa5d   : > { %v2763_v50 = vmul.f32 %v7268_v62, %v7260_v5 }
 0xa5e   : > { %v2938_v60 = vpop.permute.xlu1 %2937 }
 0xa5f   : > { %v2943_v3 = vsel %vm1974_vm1, %v2938_v60, 0 }
 0xa60   : > { %v7270_v38 = vpop.eup %7269 }
 0xa61   : > { %v7272_v41 = vpop.eup %7271  ;;  %v2765_v58 = vmul.f32 %v7270_v38, %v7264_v37 }
 0xa62   : > { %v2759_v0 = vmul.f32 %v7272_v41, %v7262_v6  ;;  %v2989_v23 = vpop.permute.xlu1 %2988 }
 0xa63   : > { %v2767_v57 = vpack.c.bf16 %v2765_v58, %v2763_v50  ;;  %v2994_v34 = vsel %vm1974_vm1, %v2989_v23, 0  ;;  %v2609_v50 = vadd.f32 %v8404_v42, %v8418_v52 }
 0xa64   : > { %v7274_v55 = vpop.eup %7273 }
 0xa65   : > { %v2761_v1 = vmul.f32 %v7274_v55, %v7266_v26  ;;  %6664 = vmatmul.mubr.msk.bf16.vlgmr.msra.gmra.mxu1 %vm2083_vm2, %v2767_v57  ;;  %v2601_v55 = vadd.f32 %v8409_v48, %v8420_v54 }
 0xa66   : > { %6676 = vmatpush3.bf16.xpose.msra.mxu1 %v2943_v3  ;;  %6677 = vmatprep.mubr.msk.bf16.mxu1 %vm7690_vm0, %v7689_v51  ;;  %v2987_v37 = vpop.permute.xlu1 %2986 }
 0xa67   : > { %v2766_v4 = vpack.c.bf16 %v2761_v1, %v2759_v0  ;;  %6687 = vmatprep.subr.bf16.mxu1 %v7689_v51 }
 0xa69   : > { %6658 = vmatmul.mubr.msk.bf16.vlgmr.msra.gmra.mxu0 %vm2083_vm2, %v2766_v4 }
 0xa6a   : > { %6668 = vmatpush3.bf16.msra.mxu0 %v7141_v7 }
 0xa6b   : > { %6669 = vmatprep.subr.bf16.mxu0 %v7142_v8 }
 0xa6d   : > { %6678 = vmatmul.mubr.msk.bf16.vlgmr.msra.gmra.mxu1 %vm1974_vm1, %v2936_v9 }
 0xa6e   : > { %6689 = vmatprep.mubr.msk.bf16.mxu1 %vm7690_vm0, %v7689_v51  ;;  %6670 = vmatpush3.bf16.msra.mxu0 %v7142_v8 }
 0xa6f   : > { %6681 = vmatprep.subr.bf16.mxu0 %v7689_v51 }
 0xb25   : > { %v2855_v14 = vpop.f32.mrf.mxu1 }
 0xb27   : > { %v6665_v15 = vpop.f32.mrf.mxu1 }
 0xb29   : > { %v2808_v18 = vpop.f32.mrf.mxu0  ;;  %v2858_v19 = vpop.f32.mrf.mxu1 }
 0xb2a   : > { %v2863_v29 = vpack.c.bf16 %v2858_v19, %v2855_v14 }
 0xb2b   : > { %v6659_v20 = vpop.f32.mrf.mxu0  ;;  %v6666_v21 = vpop.f32.mrf.mxu1 }
 0xb2d   : > { %v2811_v22 = vpop.f32.mrf.mxu0  ;;  %v2979_v28 = vpop.f32.mrf.mxu1 }
 0xb2e   : > { %v2862_v25 = vpack.c.bf16 %v2811_v22, %v2808_v18  ;;  %v3037_v30 = vmul.f32 0.17677669, %v2979_v28 }
 0xb2f   : > { %v6660_v32 = vpop.f32.mrf.mxu0  ;;  %v6679_v33 = vpop.f32.mrf.mxu1 }
 0xb30   : > { %6671 = vmatprep.mubr.msk.bf16.mxu0 %vm1974_vm1, %v2862_v25  ;;  %v3041_v36 = vadd.f32 %v8300_v2, %v3037_v30 }
 0xb31   : > { %6672 = vmatmul.mubr.msk.bf16.vlgmr.msra.gmra.mxu0 %vm1974_vm1, %v2863_v29  ;;  %v2982_v10 = vpop.f32.mrf.mxu1 }
 0xb32   : > { %6682 = vmatpush3.bf16.xpose.msra.mxu0 %v2994_v34  ;;  %6683 = vmatprep.mubr.msk.bf16.mxu0 %vm7690_vm0, %v7689_v51  ;;  %v3038_v11 = vmul.f32 0.17677669, %v2982_v10  ;;  %v3045_v13 = vsel %vm2083_vm2, %v3041_v36, -inf }
 0xb33   : > { %6693 = vmatprep.subr.bf16.mxu0 %v7689_v51  ;;  %3046 = vmax.xlane.f32.xlu0 %v3045_v13  ;;  %v6680_v5 = vpop.f32.mrf.mxu1 }
 0xb34   : > { %v3042_v12 = vadd.f32 %v8300_v2, %v3038_v11 }
 0xb36   : > { %v3048_v6 = vsel %vm2083_vm2, %v3042_v12, -inf }
 0xb37   : > { %3049 = vmax.xlane.f32.xlu1 %v3048_v6 }
 0xb39   : > { %6684 = vmatmul.mubr.msk.bf16.vlgmr.msra.gmra.mxu0 %vm1974_vm1, %v2987_v37  ;;  %v7143_v37 = vld [vmem:[%s9144_s20 + $0x38] sm:$0xff]  }
 0xb3a   : > { %6695 = vmatprep.mubr.msk.bf16.mxu0 %vm7690_vm0, %v7689_v51 }
 0xbbc   : > { %v3047_v45 = vpop.xlane.xlu0 %3046 }
 0xbbd   : > { %v3057_v47 = vsub.f32 %v3041_v36, %v3047_v45 }
 0xbbf   : > { %v3061_v62 = vmul.f32 1.442695, %v3057_v47 }
 0xbc0   : > { %v3050_v39 = vpop.xlane.xlu1 %3049 }
 0xbc1   : > { %v3058_v40 = vsub.f32 %v3042_v12, %v3050_v39  ;;  %v7144_v39 = vld [vmem:[%s9144_s20 + $0x30] sm:$0xff]  }
 0xbc3   : > { %v3063_v26 = vmul.f32 1.442695, %v3058_v40  ;;  %v7147_v40 = vld [vmem:[%s8110_s29 + $0x74] ss:$8 sps:$4 sm:$0xff]  }
 0xbc5   : > { %7275 = vpow2.f32 %v3063_v26 }
 0xbc6   : > { %7277 = vpow2.f32 %v3061_v62  ;;  %v7145_v62 = vld [vmem:[%s8110_s29 + $0x70] ss:$8 sps:$4 sm:$0xff]  }
 0xbd2   : > { %v7276_v43 = vpop.eup %7275 }
 0xbd3   : > { %v3072_v31 = vsel %vm2083_vm2, %v7276_v43, 0.0  ;;  %v7278_v54 = vpop.eup %7277 }
 0xbd4   : > { %3073 = vadd.xlane.f32.xlu1 %v3072_v31  ;;  %v3069_v7 = vsel %vm2083_vm2, %v7278_v54, 0.0 }
 0xbf1   : > { %v6673_v49 = vpop.f32.mrf.mxu0 }
 0xbf2   : > { %v8477_v38 = vadd.f32 %v6673_v49, %v2606_v27 }
 0xbf3   : > { %v2916_v41 = vpop.f32.mrf.mxu0 }
 0xbf4   : > { %v8481_v58 = vadd.f32 %v2916_v41, %v2598_v16 }
 0xbf5   : > { %v6674_v60 = vpop.f32.mrf.mxu0 }
 0xbf6   : > { %v8485_v57 = vadd.f32 %v6674_v60, %v2609_v50  ;;  %v7150_v50 = vld [vmem:[%s8110_s29 + $0x64] ss:$8 sps:$4 sm:$0xff]  }
 0xbf7   : > { %v2919_v44 = vpop.f32.mrf.mxu0 }
 0xbf8   : > { %v8487_v59 = vadd.f32 %v2919_v44, %v2601_v55  ;;  %v7148_v55 = vld [vmem:[%s8110_s29 + $0x60] ss:$8 sps:$4 sm:$0xff]   ;;  %v7153_v44 = vld [vmem:[%s8110_s29 + $0x54] ss:$8 sps:$4 sm:$0xff]  }
 0xbf9   : > { %v3030_v46 = vpop.f32.mrf.mxu0 }
 0xbfa   : > { %v3039_v24 = vmul.f32 0.17677669, %v3030_v46  ;;  %v7151_v46 = vld [vmem:[%s8110_s29 + $0x50] ss:$8 sps:$4 sm:$0xff]  }
 0xbfb   : > { %v6685_v0 = vpop.f32.mrf.mxu0 }
 0xbfc   : > { %v3043_v1 = vadd.f32 %v8300_v2, %v3039_v24  ;;  %v7156_v24 = vld [vmem:[%s8110_s29 + $0x44] ss:$8 sps:$4 sm:$0xff]   ;;  %v7154_v0 = vld [vmem:[%s8110_s29 + $0x40] ss:$8 sps:$4 sm:$0xff]  }
 0xbfd   : > { %v3033_v3 = vpop.f32.mrf.mxu0 }
 0xbfe   : > { %v3040_v4 = vmul.f32 0.17677669, %v3033_v3  ;;  %v3051_v42 = vsel %vm2083_vm2, %v3043_v1, -inf  ;;  %v7157_v3 = vld [vmem:[%s8110_s29 + $0x30] ss:$8 sps:$4 sm:$0xff]  }
 0xbff   : > { %3052 = vmax.xlane.f32.xlu0 %v3051_v42  ;;  %v6686_v52 = vpop.f32.mrf.mxu0  ;;  %v7160_v42 = vld [vmem:[%s8110_s29 + $0x20] ss:$8 sps:$4 sm:$0xff]  }
 0xc00   : > { %v3044_v9 = vadd.f32 %v8300_v2, %v3040_v4  ;;  %v7162_v4 = vld [vmem:[%s8110_s29 + $0x24] ss:$8 sps:$4 sm:$0xff]   ;;  %v7165_v52 = vld [vmem:[%s8110_s29 + $0x14] ss:$8 sps:$4 sm:$0xff]  }
 0xc02   : > { %v3054_v48 = vsel %vm2083_vm2, %v3044_v9, -inf }
 0xc03   : > { %3055 = vmax.xlane.f32.xlu0 %v3054_v48  ;;  %v7168_v48 = vld [vmem:[%s8110_s29 + $0x4] ss:$8 sps:$4 sm:$0xff]  }
 0xc07   : > { %3070 = vadd.xlane.f32.xlu0 %v3069_v7  ;;  %v7169_v7 = vld [vmem:[%s8507_s5] sm:$0xff]  }
 0xc5d   : > { %v3074_v28 = vpop.xlane.xlu1 %3073 }
 0xc88   : > { %v3053_v8 = vpop.xlane.xlu0 %3052 }
 0xc89   : > { %v3059_v14 = vsub.f32 %v3043_v1, %v3053_v8  ;;  %v7159_v1 = vld [vmem:[%s8110_s29 + $0x34] ss:$8 sps:$4 sm:$0xff]  }
 0xc8a   : > { %v8529_v8 = vld [vmem:[%s9135_s17 + $0x38] sm:$0xff]  }
 0xc8b   : > { %v3065_v15 = vmul.f32 1.442695, %v3059_v14  ;;  %v8535_v14 = vld [vmem:[%s9135_s17 + $0x30] sm:$0xff]  }
 0xc8c   : > { %v3056_v18 = vpop.xlane.xlu0 %3055 }
 0xc8d   : > { %7279 = vpow2.f32 %v3065_v15  ;;  %v3060_v19 = vsub.f32 %v3044_v9, %v3056_v18  ;;  %v7163_v9 = vld [vmem:[%s8110_s29 + $0x10] ss:$8 sps:$4 sm:$0xff]   ;;  %v7170_v15 = vld [vmem:[%s8507_s5 + $0x8] sm:$0xff]  }
 0xc8e   : > { %v8541_v18 = vld [vmem:[%s9135_s17 + $0x28] sm:$0xff]  }
 0xc8f   : > { %v3067_v20 = vmul.f32 1.442695, %v3060_v19  ;;  %v8551_v19 = vld [vmem:[%s9135_s17 + $0x18] sm:$0xff]  }
 0xc90   : > { %v3071_v25 = vpop.xlane.xlu0 %3070 }
 0xc91   : > { %7281 = vpow2.f32 %v3067_v20  ;;  %v8556_v20 = vld [vmem:[%s9135_s17 + $0x10] sm:$0xff]  }
 0xc92   : > { %7283 = vrcp.f32 %v3071_v25 }
 0xc93   : > { %7285 = vrcp.f32 %v3074_v28 }
 0xc9a   : > { %v7280_v21 = vpop.eup %7279 }
 0xc9b   : > { %v3075_v22 = vsel %vm2083_vm2, %v7280_v21, 0.0 }
 0xc9c   : > { %3076 = vadd.xlane.f32.xlu0 %v3075_v22  ;;  %v8566_v22 = vld [vmem:[%s9135_s17] sm:$0xff]  }
 0xc9e   : > { %v7282_v2 = vpop.eup %7281 }
 0xc9f   : > { %v3078_v23 = vsel %vm2083_vm2, %v7282_v2, 0.0  ;;  %v7284_v29 = vpop.eup %7283 }
 0xca0   : > { %3079 = vadd.xlane.f32.xlu1 %v3078_v23  ;;  %v7286_v32 = vpop.eup %7285  ;;  %v3082_v33 = vmul.f32 %v7284_v29, %v7278_v54  ;;  %v7166_v54 = vld [vmem:[%s8110_s29] ss:$8 sps:$4 sm:$0xff]   ;;  %s9146_s29 = sld [smem:[#allocation28_spill]] }
 0xca1   : > { %v3084_v10 = vmul.f32 %v7286_v32, %v7276_v43 }
 0xca6   : > { %s9147_s25 = scalar_lea.vmem %s9146_s29, %s8077_s22  ;;  %s9162_s22 = sld [smem:[#allocation48_spill]] (!%p6269_p3) }
 0xcac   : > { %s9163_s18 = smov (!%p6269_p3), %s9162_s22 }
 0xcb1   : > { %3138 = vrot.lane.b32.xlu1 %v8281_v61, %s7693_s27  ;;  %v3089_v61 = vpack.c.bf16 %v3084_v10, %v3082_v33 }
 0xcb2   : > { %3091 = vrot.lane.b32.xlu0 %v8285_v63, %s7693_s27 }
 0xd25   : > { %v3077_v30 = vpop.xlane.xlu0 %3076 }
 0xd26   : > { %7287 = vrcp.f32 %v3077_v30 }
 0xd29   : > { %v3080_v34 = vpop.xlane.xlu1 %3079  ;;  %v3092_v36 = vpop.permute.xlu0 %3091 }
 0xd2a   : > { %7289 = vrcp.f32 %v3080_v34  ;;  %6688 = vmatpush3.bf16.msra.mxu1 %v3092_v36 }
 0xd2b   : > { %6699 = vmatprep.subr.bf16.mxu1 %v7143_v37 }
 0xd2d   : > { %v3139_v11 = vpop.permute.xlu1 %3138  ;;  %6690 = vmatmul.mubr.msk.bf16.vlgmr.msra.gmra.mxu1 %vm2083_vm2, %v3089_v61  ;;  %v7403_v61 = vld [vmem:[#allocation2 + $0x10] sm:$0xff] }
 0xd2e   : > { %6694 = vmatpush3.bf16.msra.mxu0 %v3139_v11  ;;  %6700 = vmatpush3.bf16.msra.mxu1 %v7143_v37  ;;  %v7405_v37 = vld [vmem:[#allocation2] sm:$0xff] }
 0xd2f   : > { %6701 = vmatprep.subr.bf16.mxu1 %v7144_v39 }
 0xd32   : > { %6702 = vmatpush3.bf16.msra.mxu1 %v7144_v39 }
 0xd33   : > { %v7288_v63 = vpop.eup %7287  ;;  %3558 = vmatprep.subr.bf16.mxu1 %v7147_v40 }
 0xd34   : > { %v3086_v5 = vmul.f32 %v7288_v63, %v7280_v21  ;;  %v8561_v21 = vld [vmem:[%s9135_s17 + $0x8] sm:$0xff]  }
 0xd37   : > { %v7290_v13 = vpop.eup %7289 }
 0xd38   : > { %v3088_v12 = vmul.f32 %v7290_v13, %v7282_v2  ;;  %v1966_v2 = vld [vmem:[%s9147_s25] sm:$0x1] }
 0xd39   : > { %v1967_v23 = vunpack.c.l.bf16 %v1966_v2  ;;  %v7177_v2 = vld [vmem:[%s8104_s4 + $0x8] sm:$0xff]  }
 0xd3a   : > { %v3090_v6 = vpack.c.bf16 %v3088_v12, %v3086_v5  ;;  %v7404_v12 = vld [vmem:[#allocation2 + $0x8] sm:$0xff] }
 0xd3b   : > { %v3261_v29 = vrot.slane %v1967_v23, %v8184_v56 }
 0xd3c   : > { %6696 = vmatmul.mubr.msk.bf16.vlgmr.msra.gmra.mxu0 %vm2083_vm2, %v3090_v6 }
 0xded   : > { %v3131_v26 = vpop.f32.mrf.mxu1 }
 0xdef   : > { %v6691_v43 = vpop.f32.mrf.mxu1 }
 0xdf1   : > { %v3134_v31 = vpop.f32.mrf.mxu1 }
 0xdf2   : > { %v3185_v45 = vpack.c.bf16 %v3134_v31, %v3131_v26  ;;  %v3445_v31 = vld [vmem:[%s8114_s21] sm:$0x3] }
 0xdf3   : > { %v6692_v47 = vpop.f32.mrf.mxu1 }
 0xdf4   : > { %6703 = vmatprep.mubr.msk.bf16.mxu1 %vm1974_vm1, %v3185_v45  ;;  %v3446_v45 = vunpack.c.l.bf16 %v3445_v31  ;;  %v7171_v47 = vld [vmem:[%s8104_s4 + $0x38] sm:$0xff]  }
 0xdf5   : > { %6707 = vmatprep.subr.bf16.mxu0 %v7171_v47 }
 0xdf6   : > { %6708 = vmatpush3.bf16.msra.mxu0 %v7171_v47 }
 0xdfc   : > { %v3178_v27 = vpop.f32.mrf.mxu0 }
 0xdfe   : > { %v6697_v49 = vpop.f32.mrf.mxu0 }
 0xdff   : > { %v7172_v49 = vld [vmem:[%s8104_s4 + $0x30] sm:$0xff]  }
 0xe00   : > { %v3181_v16 = vpop.f32.mrf.mxu0  ;;  %6709 = vmatprep.subr.bf16.mxu0 %v7172_v49 }
 0xe01   : > { %v3186_v41 = vpack.c.bf16 %v3181_v16, %v3178_v27  ;;  %v3451_v27 = vrot.slane %v3446_v45, %v8184_v56  ;;  %v3455_v16 = vrot.slane %v3446_v45, %v1505_v17  ;;  %6710 = vmatpush3.bf16.msra.mxu0 %v7172_v49  ;;  %v3270_v45 = vld [vmem:[%s1327_s13] sm:$0x1] }
 0xe02   : > { %v6698_v60 = vpop.f32.mrf.mxu0  ;;  %v3271_v47 = vunpack.c.l.bf16 %v3270_v45 }
 0xe03   : > { %6704 = vmatmul.mubr.msk.bf16.vlgmr.msra.gmra.mxu1 %vm1974_vm1, %v3186_v41  ;;  %v7173_v41 = vld [vmem:[%s8104_s4 + $0x28] sm:$0xff]  }
 0xe04   : > { %3559 = vmatpush1.bf16.msra.mxu1 %v7145_v62  ;;  %3590 = vmatprep.mubr.bf16.mxu1 %v7688_v35  ;;  %v3461_v62 = vrot.slane %v3451_v27, %v8184_v56 }
 0xe05   : > { %3560 = vmatprep.subr.bf16.mxu1 %v7150_v50  ;;  %v3465_v50 = vrot.slane %v3455_v16, %v8184_v56  ;;  %6711 = vmatprep.subr.bf16.mxu0 %v7173_v41 }
 0xe06   : > { %6712 = vmatpush3.bf16.msra.mxu0 %v7173_v41 }
 0xe08   : > { %3561 = vmatpush1.bf16.msra.mxu1 %v7148_v55 }
 0xe09   : > { %3562 = vmatprep.subr.bf16.mxu1 %v7153_v44  ;;  %v7174_v44 = vld [vmem:[%s8104_s4 + $0x20] sm:$0xff]  }
 0xe0a   : > { %6713 = vmatprep.subr.bf16.mxu0 %v7174_v44 }
 0xe0b   : > { %6714 = vmatpush3.bf16.msra.mxu0 %v7174_v44 }
 0xe0c   : > { %3563 = vmatpush1.bf16.msra.mxu1 %v7151_v46  ;;  %v7175_v46 = vld [vmem:[%s8104_s4 + $0x18] sm:$0xff]  }
 0xe0d   : > { %3564 = vmatprep.subr.bf16.mxu1 %v7156_v24  ;;  %6715 = vmatprep.subr.bf16.mxu0 %v7175_v46 }
 0xe0f   : > { %6716 = vmatpush3.bf16.msra.mxu0 %v7175_v46 }
 0xe10   : > { %3565 = vmatpush1.bf16.msra.mxu1 %v7154_v0 }
 0xe11   : > { %3566 = vmatprep.subr.bf16.mxu1 %v7159_v1 }
 0xe14   : > { %3567 = vmatpush1.bf16.msra.mxu1 %v7157_v3 }
 0xe15   : > { %3568 = vmatprep.subr.bf16.mxu1 %v7162_v4  ;;  %v7176_v4 = vld [vmem:[%s8104_s4 + $0x10] sm:$0xff]  }
 0xe16   : > { %6717 = vmatprep.subr.bf16.mxu0 %v7176_v4 }
 0xe17   : > { %6718 = vmatpush3.bf16.msra.mxu0 %v7176_v4 }
 0xe18   : > { %3569 = vmatpush1.bf16.msra.mxu1 %v7160_v42  ;;  %6719 = vmatprep.subr.bf16.mxu0 %v7177_v2 }
 0xe19   : > { %3570 = vmatprep.subr.bf16.mxu1 %v7165_v52 }
 0xe1b   : > { %6720 = vmatpush3.bf16.msra.mxu0 %v7177_v2 }
 0xe1c   : > { %3571 = vmatpush1.bf16.msra.mxu1 %v7163_v9 }
 0xe1d   : > { %3572 = vmatprep.subr.bf16.mxu1 %v7168_v48 }
 0xe20   : > { %3573 = vmatpush1.bf16.msra.mxu1 %v7166_v54 }
 0xe21   : > { %6747 = vmatprep.subr.bf16.mxu1 %v8529_v8 }
 0xe23   : > { %3591 = vmatmul.mubr.bf16.vlgmr.msra.gmra.mxu1 %v7169_v7 }
 0xe24   : > { %3600 = vmatprep.mubr.bf16.mxu1 %v7688_v35  ;;  %6748 = vmatpush3.bf16.msra.mxu1 %v8529_v8  ;;  %v8546_v35 = vld [vmem:[%s9135_s17 + $0x20] sm:$0xff]  }
 0xe25   : > { %6749 = vmatprep.subr.bf16.mxu1 %v8535_v14 }
 0xe28   : > { %6750 = vmatpush3.bf16.msra.mxu1 %v8535_v14 }
 0xe29   : > { %6751 = vmatprep.subr.bf16.mxu1 %v8541_v18 }
 0xe2b   : > { %3601 = vmatmul.mubr.bf16.gmra.mxu1 %v7170_v15 }
 0xe2c   : > { %6752 = vmatpush3.bf16.msra.mxu1 %v8541_v18 }
 0xe2d   : > { %6753 = vmatprep.subr.bf16.mxu1 %v8546_v35 }
 0xe30   : > { %6754 = vmatpush3.bf16.msra.mxu1 %v8546_v35 }
 0xe31   : > { %6755 = vmatprep.subr.bf16.mxu1 %v8551_v19 }
 0xe34   : > { %6756 = vmatpush3.bf16.msra.mxu1 %v8551_v19 }
 0xe35   : > { %6757 = vmatprep.subr.bf16.mxu1 %v8556_v20 }
 0xe38   : > { %6758 = vmatpush3.bf16.msra.mxu1 %v8556_v20 }
 0xe39   : > { %6759 = vmatprep.subr.bf16.mxu1 %v8561_v21 }
 0xe3c   : > { %6760 = vmatpush3.bf16.msra.mxu1 %v8561_v21 }
 0xe3d   : > { %6761 = vmatprep.subr.bf16.mxu1 %v8566_v22 }
 0xe40   : > { %6762 = vmatpush3.bf16.msra.mxu1 %v8566_v22 }
 0xe41   : > { %6773 = vmatprep.subr.bf16.mxu1 %v7689_v51 }
 0xec3   : > { %v6705_v25 = vpop.f32.mrf.mxu1 }
 0xec4   : > { %v3256_v33 = vadd.f32 %v6705_v25, %v8477_v38 }
 0xec5   : > { %v3239_v28 = vpop.f32.mrf.mxu1 }
 0xec6   : > { %v3254_v30 = vadd.f32 %v3239_v28, %v8481_v58  ;;  %v3264_v5 = vadd.f32 %v3261_v29, %v3256_v33 }
 0xec7   : > { %v6706_v32 = vpop.f32.mrf.mxu1 }
 0xec8   : > { %v3262_v34 = vadd.f32 %v3261_v29, %v3254_v30  ;;  %v3257_v36 = vadd.f32 %v6706_v32, %v8485_v57  ;;  %v7406_v57 = vld [vmem:[#allocation2 + $0x18] sm:$0xff]  ;;  %v7178_v32 = vld [vmem:[%s8104_s4] sm:$0xff]  }
 0xec9   : > { %v3242_v10 = vpop.f32.mrf.mxu1  ;;  %v8587_v40 = vadd.f32 %v7406_v57, %v3264_v5  ;;  %6721 = vmatprep.subr.bf16.mxu0 %v7178_v32 }
 0xeca   : > { %v8578_v11 = vadd.f32 %v7403_v61, %v3262_v34  ;;  %v3265_v63 = vadd.f32 %v3261_v29, %v3257_v36  ;;  %v3255_v13 = vadd.f32 %v3242_v10, %v8487_v59  ;;  %6722 = vmatpush3.bf16.msra.mxu0 %v7178_v32 }
 0xecb   : > { %v3274_v43 = vmul.f32 %v8587_v40, %v8587_v40  ;;  %6727 = vmatprep.subr.bf16.mxu0 %v8529_v8 }
 0xecc   : > { %v8581_v6 = vadd.f32 %v7404_v12, %v3265_v63  ;;  %v3263_v58 = vadd.f32 %v3261_v29, %v3255_v13  ;;  %v3272_v38 = vmul.f32 %v8578_v11, %v8578_v11 }
 0xece   : > { %v8585_v39 = vadd.f32 %v7405_v37, %v3263_v58  ;;  %3276 = vadd.xlane.f32.xlu1 %v3272_v38  ;;  %v3275_v59 = vmul.f32 %v8581_v6, %v8581_v6 }
 0xed0   : > { %v3273_v26 = vmul.f32 %v8585_v39, %v8585_v39 }
 0xed2   : > { %3282 = vadd.xlane.f32.xlu1 %v3275_v59  ;;  %3278 = vadd.xlane.f32.xlu0 %v3273_v26 }
 0xed6   : > { %3280 = vadd.xlane.f32.xlu0 %v3274_v43 }
 0xee3   : > { %v3592_v60 = vpop.f32.mrf.mxu1 }
 0xee4   : > { %v8604_v55 = vadd.f32 %v3592_v60, %v3461_v62 }
 0xee5   : > { %v3594_v24 = vpop.f32.mrf.mxu1 }
 0xee6   : > { %v3595_v0 = vadd.f32 %v3594_v24, %v3465_v50  ;;  %v3686_v1 = vmul.f32 %v8604_v55, %v8604_v55 }
 0xee7   : > { %v3596_v17 = vpop.f32.mrf.mxu1 }
 0xee8   : > { %v8610_v3 = vadd.f32 %v3596_v17, %v3461_v62 }
 0xee9   : > { %v3598_v42 = vpop.f32.mrf.mxu1 }
 0xeea   : > { %v3687_v52 = vmul.f32 %v8610_v3, %v8610_v3  ;;  %v3599_v9 = vadd.f32 %v3598_v42, %v3465_v50 }
 0xeeb   : > { %v3602_v48 = vpop.f32.mrf.mxu1 }
 0xeec   : > { %v8615_v54 = vpack.c.bf16 %v3599_v9, %v3595_v0  ;;  %v8617_v7 = vadd.f32 %v3602_v48, %v3461_v62  ;;  %v3690_v15 = vpack.c.bf16 %v3687_v52, %v3686_v1 }
 0xeed   : > { %v3604_v23 = vpop.f32.mrf.mxu1 }
 0xeee   : > { %v3605_v25 = vadd.f32 %v3604_v23, %v3465_v50  ;;  %6763 = vmatprep.mubr.bf16.mxu1 %v3690_v15  ;;  %v3688_v29 = vmul.f32 %v8617_v7, %v8617_v7 }
 0xeef   : > { %v3606_v28 = vpop.f32.mrf.mxu1 }
 0xef0   : > { %v8622_v30 = vadd.f32 %v3606_v28, %v3461_v62  ;;  %v3303_v62 = vrot.slane %v3271_v47, %v8184_v56 }
 0xef1   : > { %v3608_v36 = vpop.f32.mrf.mxu1 }
 0xef2   : > { %v3689_v33 = vmul.f32 %v8622_v30, %v8622_v30  ;;  %v3609_v10 = vadd.f32 %v3608_v36, %v3465_v50 }
 0xef4   : > { %v3691_v34 = vpack.c.bf16 %v3689_v33, %v3688_v29  ;;  %v8630_v61 = vpack.c.bf16 %v3609_v10, %v3605_v25 }
 0xef6   : > { %6764 = vmatmul.mubr.bf16.vlgmr.msra.gmra.mxu1 %v3691_v34 }
 0xef7   : > { %6775 = vmatprep.mubr.msk.bf16.mxu1 %vm7690_vm0, %v7689_v51 }
 0xf57   : > { %v3277_v63 = vpop.xlane.xlu1 %3276 }
 0xf58   : > { %v3284_v13 = vmul.f32 0.0078125, %v3277_v63 }
 0xf5a   : > { %v3288_v5 = vadd.f32 1e-06, %v3284_v13 }
 0xf5b   : > { %v3283_v12 = vpop.xlane.xlu1 %3282  ;;  %v3279_v58 = vpop.xlane.xlu0 %3278 }
 0xf5c   : > { %v3287_v38 = vmul.f32 0.0078125, %v3283_v12  ;;  %v3285_v37 = vmul.f32 0.0078125, %v3279_v58  ;;  %7291 = vrsqrt.f32 %v3288_v5 }
 0xf5e   : > { %v3291_v57 = vadd.f32 1e-06, %v3287_v38  ;;  %v3289_v59 = vadd.f32 1e-06, %v3285_v37 }
 0xf5f   : > { %v3281_v26 = vpop.xlane.xlu0 %3280 }
 0xf60   : > { %7293 = vrsqrt.f32 %v3291_v57  ;;  %v3286_v43 = vmul.f32 0.0078125, %v3281_v26 }
 0xf61   : > { %7295 = vrsqrt.f32 %v3289_v59 }
 0xf62   : > { %v3290_v31 = vadd.f32 1e-06, %v3286_v43 }
 0xf64   : > { %7297 = vrsqrt.f32 %v3290_v31 }
 0xf69   : > { %v7292_v27 = vpop.eup %7291 }
 0xf6a   : > { %v3296_v16 = vmul.f32 %v7292_v27, %v8578_v11 }
 0xf6c   : > { %v3304_v46 = vmul.f32 %v3303_v62, %v3296_v16 }
 0xf6d   : > { %v7294_v49 = vpop.eup %7293 }
 0xf6e   : > { %v7296_v41 = vpop.eup %7295  ;;  %v3299_v60 = vmul.f32 %v7294_v49, %v8581_v6 }
 0xf6f   : > { %v3297_v50 = vmul.f32 %v7296_v41, %v8585_v39 }
 0xf70   : > { %v3307_v4 = vmul.f32 %v3303_v62, %v3299_v60 }
 0xf71   : > { %v7298_v44 = vpop.eup %7297  ;;  %v3305_v24 = vmul.f32 %v3303_v62, %v3297_v50 }
 0xf72   : > { %v3298_v0 = vmul.f32 %v7298_v44, %v8587_v40 }
 0xf73   : > { %v3308_v17 = vpack.c.bf16 %v3305_v24, %v3304_v46 }
 0xf74   : > { %v3306_v1 = vmul.f32 %v3303_v62, %v3298_v0 }
 0xf75   : > { %6723 = vmatprep.mubr.bf16.mxu0 %v3308_v17 }
 0xf76   : > { %v3309_v42 = vpack.c.bf16 %v3307_v4, %v3306_v1  ;;  %v3611_v1 = vld [vmem:[%s1347_s14] sm:$0x1]  ;;  %s6128_s14 = sshll.u32 %s9171_s23, 1  ;;  %s9153_s23 = sld [smem:[#allocation53_spill]] }
 0xf77   : > { %v3612_v4 = vunpack.c.l.bf16 %v3611_v1 }
 0xf78   : > { %6724 = vmatmul.mubr.bf16.vlgmr.msra.gmra.mxu0 %v3309_v42 }
 0xf79   : > { %6728 = vmatpush3.bf16.msra.mxu0 %v8529_v8 }
 0xf7a   : > { %6729 = vmatprep.subr.bf16.mxu0 %v8535_v14 }
 0xf7d   : > { %6730 = vmatpush3.bf16.msra.mxu0 %v8535_v14 }
 0xf7e   : > { %6731 = vmatprep.subr.bf16.mxu0 %v8541_v18 }
 0xf81   : > { %6732 = vmatpush3.bf16.msra.mxu0 %v8541_v18 }
 0xf82   : > { %6733 = vmatprep.subr.bf16.mxu0 %v8546_v35 }
 0xf85   : > { %6734 = vmatpush3.bf16.msra.mxu0 %v8546_v35 }
 0xf86   : > { %6735 = vmatprep.subr.bf16.mxu0 %v8551_v19 }
 0xf89   : > { %6736 = vmatpush3.bf16.msra.mxu0 %v8551_v19 }
 0xf8a   : > { %6737 = vmatprep.subr.bf16.mxu0 %v8556_v20 }
 0xf8d   : > { %6738 = vmatpush3.bf16.msra.mxu0 %v8556_v20 }
 0xf8e   : > { %6739 = vmatprep.subr.bf16.mxu0 %v8561_v21 }
 0xf91   : > { %6740 = vmatpush3.bf16.msra.mxu0 %v8561_v21  ;;  %v3684_v21 = vld [vmem:[%s1350_s7] sm:$0x1]  ;;  %s9152_s7 = sld [smem:[#allocation19_spill]] }
 0xf92   : > { %6741 = vmatprep.subr.bf16.mxu0 %v8566_v22  ;;  %v3685_v48 = vunpack.c.l.bf16 %v3684_v21 }
 0xf94   : > { %v3752_v2 = vrot.slane %v3685_v48, %v8184_v56 }
 0xf95   : > { %6742 = vmatpush3.bf16.msra.mxu0 %v8566_v22 }
 0xf96   : > { %6767 = vmatprep.subr.bf16.mxu0 %v7689_v51 }
 0xf97   : > { %s1404_s26 = scalar_lea.vmem %s9152_s7, %s6128_s14 }
 0xfb6   : > { %v6765_v8 = vpop.f32.mrf.mxu1 }
 0xfb7   : > { %v3735_v14 = vadd.f32 1e-06, %v6765_v8 }
 0xfb8   : > { %v3726_v18 = vpop.f32.mrf.mxu1 }
 0xfb9   : > { %7299 = vrsqrt.f32 %v3735_v14  ;;  %v3727_v35 = vadd.f32 1e-06, %v3726_v18  ;;  %v3679_v18 = vrot.slane %v3612_v4, %v8184_v56 }
 0xfba   : > { %v6766_v19 = vpop.f32.mrf.mxu1 }
 0xfbb   : > { %7301 = vrsqrt.f32 %v3727_v35  ;;  %v3738_v20 = vadd.f32 1e-06, %v6766_v19 }
 0xfbc   : > { %v3729_v52 = vpop.f32.mrf.mxu1 }
 0xfbd   : > { %7303 = vrsqrt.f32 %v3738_v20  ;;  %v3730_v9 = vadd.f32 1e-06, %v3729_v52 }
 0xfbf   : > { %7305 = vrsqrt.f32 %v3730_v9 }
 0xfc6   : > { %v7300_v15 = vpop.eup %7299 }
 0xfc7   : > { %v3747_v22 = vmul.f32 %v7300_v15, %v8617_v7 }
 0xfc8   : > { %v7302_v23 = vpop.eup %7301 }
 0xfc9   : > { %v3745_v25 = vmul.f32 %v7302_v23, %v8604_v55  ;;  %v3755_v32 = vmul.f32 %v3752_v2, %v3747_v22  ;;  %v3326_v55 = vld [vmem:[%s1335_s8] sm:$0x1] }
 0xfca   : > { %v7304_v28 = vpop.eup %7303 }
 0xfcb   : > { %v3748_v29 = vmul.f32 %v7304_v28, %v8622_v30  ;;  %v3753_v33 = vmul.f32 %v3752_v2, %v3745_v25  ;;  %v3327_v30 = vunpack.c.l.bf16 %v3326_v55  ;;  %v7694_v25 = vmov 1966171168  }
 0xfcc   : > { %v7306_v34 = vpop.eup %7305  ;;  %v3767_v28 = vunpack.c.l.s4 %v7694_v25 }
 0xfcd   : > { %v3746_v36 = vmul.f32 %v7306_v34, %v8610_v3  ;;  %v3756_v10 = vmul.f32 %v3752_v2, %v3748_v29  ;;  %v3331_v58 = vrot.slane %v3327_v30, %v8184_v56 }
 0xfce   : > { %v3768_v29 = vunpack.c.0.s8 %v3767_v28 }
 0xfcf   : > { %v8664_v63 = vpack.c.bf16 %v3756_v10, %v3755_v32  ;;  %v3754_v13 = vmul.f32 %v3752_v2, %v3746_v36  ;;  %v6220_v32 = vld.sshfl [vmem:[%s1404_s26] sm:$0x11 pattern:$0x75316420] }
 0xfd0   : > { %v3765_v34 = vcombine.high %v6220_v32, %v6220_v32 }
 0xfd1   : > { %v3855_v7 = vsel %vm1974_vm1, %v8664_v63, 0  ;;  %v8668_v5 = vpack.c.bf16 %v3754_v13, %v3753_v33  ;;  %v3771_v33 = vsub.s32 %v3768_v29, %v8178_v53 }
 0xfd2   : > { %6774 = vmatpush3.bf16.xpose.msra.mxu1 %v3855_v7 }
 0xfd3   : > { %6785 = vmatprep.subr.bf16.mxu1 %v7689_v51  ;;  %v3808_v62 = vsel %vm1974_vm1, %v8668_v5, 0  ;;  %v3772_v36 = vrot.slane %v6220_v32, %v3771_v33  ;;  %v3779_v10 = vrot.slane %v3765_v34, %v3771_v33 }
 0xfd5   : > { %v8704_v7 = vrot.slane %v3772_v36, %v8184_v56 }
0x1038   : > { %v6725_v12 = vpop.f32.mrf.mxu0 }
0x1039   : > { %v3423_v59 = vadd.f32 %v6725_v12, %v3331_v58 }
0x103a   : > { %v3414_v38 = vpop.f32.mrf.mxu0 }
0x103b   : > { %v3415_v37 = vadd.f32 %v3414_v38, %v3331_v58  ;;  %v3615_v27 = vmul.f32 %v3423_v59, %v3423_v59  ;;  %v8707_v38 = vrot.slane %v3779_v10, %v8184_v56 }
0x103c   : > { %v6726_v3 = vpop.f32.mrf.mxu0 }
0x103d   : > { %v3426_v57 = vadd.f32 %v6726_v3, %v3331_v58  ;;  %v3613_v45 = vmul.f32 %v3415_v37, %v3415_v37 }
0x103e   : > { %v3417_v26 = vpop.f32.mrf.mxu0 }
0x103f   : > { %v3418_v43 = vadd.f32 %v3417_v26, %v3331_v58  ;;  %v3616_v31 = vmul.f32 %v3426_v57, %v3426_v57 }
0x1041   : > { %v3614_v47 = vmul.f32 %v3418_v43, %v3418_v43  ;;  %v3618_v16 = vpack.c.bf16 %v3616_v31, %v3615_v27 }
0x1043   : > { %v3617_v49 = vpack.c.bf16 %v3614_v47, %v3613_v45 }
0x1045   : > { %6743 = vmatprep.mubr.bf16.mxu0 %v3617_v49 }
0x1046   : > { %6744 = vmatmul.mubr.bf16.vlgmr.msra.gmra.mxu0 %v3618_v16 }
0x1047   : > { %6768 = vmatpush3.bf16.xpose.msra.mxu0 %v3808_v62  ;;  %6769 = vmatprep.mubr.msk.bf16.mxu0 %vm7690_vm0, %v7689_v51 }
0x1048   : > { %6779 = vmatprep.subr.bf16.mxu0 %v7689_v51 }
0x1106   : > { %v6745_v41 = vpop.f32.mrf.mxu0 }
0x1107   : > { %v3662_v50 = vadd.f32 1e-06, %v6745_v41 }
0x1108   : > { %v3653_v60 = vpop.f32.mrf.mxu0 }
0x1109   : > { %7307 = vrsqrt.f32 %v3662_v50  ;;  %v3654_v44 = vadd.f32 1e-06, %v3653_v60 }
0x110a   : > { %v6746_v46 = vpop.f32.mrf.mxu0 }
0x110b   : > { %7309 = vrsqrt.f32 %v3654_v44  ;;  %v3665_v24 = vadd.f32 1e-06, %v6746_v46 }
0x110c   : > { %v3656_v0 = vpop.f32.mrf.mxu0 }
0x110d   : > { %7311 = vrsqrt.f32 %v3665_v24  ;;  %v3657_v17 = vadd.f32 1e-06, %v3656_v0 }
0x110f   : > { %7313 = vrsqrt.f32 %v3657_v17 }
0x1116   : > { %v7308_v42 = vpop.eup %7307 }
0x1117   : > { %v3674_v14 = vmul.f32 %v7308_v42, %v3423_v59 }
0x1118   : > { %v7310_v8 = vpop.eup %7309 }
0x1119   : > { %v3672_v19 = vmul.f32 %v7310_v8, %v3415_v37  ;;  %v3682_v21 = vmul.f32 %v3679_v18, %v3674_v14 }
0x111a   : > { %v7312_v35 = vpop.eup %7311 }
0x111b   : > { %v3675_v20 = vmul.f32 %v7312_v35, %v3426_v57  ;;  %v3680_v22 = vmul.f32 %v3679_v18, %v3672_v19 }
0x111c   : > { %v7314_v52 = vpop.eup %7313 }
0x111d   : > { %v3673_v9 = vmul.f32 %v7314_v52, %v3418_v43  ;;  %v3683_v48 = vmul.f32 %v3679_v18, %v3675_v20 }
0x111f   : > { %v8684_v15 = vpack.c.bf16 %v3683_v48, %v3682_v21  ;;  %v3681_v2 = vmul.f32 %v3679_v18, %v3673_v9 }
0x1121   : > { %6776 = vmatmul.mubr.msk.bf16.vlgmr.msra.gmra.mxu1 %vm1974_vm1, %v8684_v15  ;;  %v8688_v23 = vpack.c.bf16 %v3681_v2, %v3680_v22 }
0x1122   : > { %6786 = vmatpush3.bf16.msra.mxu1 %v8630_v61  ;;  %6787 = vmatprep.mubr.msk.bf16.mxu1 %vm7690_vm0, %v7689_v51 }
0x1123   : > { %6770 = vmatmul.mubr.msk.bf16.vlgmr.msra.gmra.mxu0 %vm1974_vm1, %v8688_v23  ;;  %6797 = vmatprep.subr.bf16.mxu1 %v7689_v51 }
0x1124   : > { %6780 = vmatpush3.bf16.msra.mxu0 %v8615_v54  ;;  %6781 = vmatprep.mubr.msk.bf16.mxu0 %vm7690_vm0, %v7689_v51 }
0x1125   : > { %6791 = vmatprep.subr.bf16.mxu0 %v7689_v51 }
0x11e1   : > { %v3891_v13 = vpop.f32.mrf.mxu1 }
0x11e2   : > { %v3900_v12 = vmul.f32 0.17677669, %v3891_v13 }
0x11e3   : > { %v3844_v55 = vpop.f32.mrf.mxu0  ;;  %v6777_v30 = vpop.f32.mrf.mxu1 }
0x11e4   : > { %v3898_v58 = vmul.f32 0.17677669, %v3844_v55  ;;  %v3914_v45 = vadd.f32 %v8707_v38, %v3900_v12 }
0x11e5   : > { %v6771_v3 = vpop.f32.mrf.mxu0  ;;  %v3894_v37 = vpop.f32.mrf.mxu1 }
0x11e6   : > { %v3912_v57 = vadd.f32 %v8704_v7, %v3898_v58  ;;  %v3901_v26 = vmul.f32 0.17677669, %v3894_v37  ;;  %v3922_v49 = vsel %vm2083_vm2, %v3914_v45, -inf }
0x11e7   : > { %v3847_v59 = vpop.f32.mrf.mxu0  ;;  %v6778_v53 = vpop.f32.mrf.mxu1 }
0x11e8   : > { %v3899_v43 = vmul.f32 0.17677669, %v3847_v59  ;;  %v3916_v31 = vsel %vm2083_vm2, %v3912_v57, -inf  ;;  %v3915_v62 = vadd.f32 %v8707_v38, %v3901_v26 }
0x11e9   : > { %3917 = vmax.xlane.f32.xlu0 %v3916_v31  ;;  %v6772_v47 = vpop.f32.mrf.mxu0 }
0x11ea   : > { %v3913_v27 = vadd.f32 %v8704_v7, %v3899_v43  ;;  %v3925_v41 = vsel %vm2083_vm2, %v3915_v62, -inf }
0x11ec   : > { %v3919_v16 = vsel %vm2083_vm2, %v3913_v27, -inf }
0x11ed   : > { %3923 = vmax.xlane.f32.xlu0 %v3922_v49  ;;  %3920 = vmax.xlane.f32.xlu1 %v3919_v16 }
0x11f1   : > { %3926 = vmax.xlane.f32.xlu1 %v3925_v41 }
0x1202   : > { %4109 = vrot.lane.b32.xlu1 %v8664_v63, %s7691_s10 }
0x1272   : > { %v3918_v50 = vpop.xlane.xlu0 %3917 }
0x1273   : > { %v3928_v60 = vsub.f32 %v3912_v57, %v3918_v50 }
0x1275   : > { %v3932_v0 = vmul.f32 1.442695, %v3928_v60 }
0x1276   : > { %v3924_v44 = vpop.xlane.xlu0 %3923  ;;  %v3921_v46 = vpop.xlane.xlu1 %3920 }
0x1277   : > { %v3930_v24 = vsub.f32 %v3914_v45, %v3924_v44  ;;  %v3929_v1 = vsub.f32 %v3913_v27, %v3921_v46 }
0x1279   : > { %v3936_v17 = vmul.f32 1.442695, %v3930_v24  ;;  %v3934_v8 = vmul.f32 1.442695, %v3929_v1 }
0x127a   : > { %v3927_v4 = vpop.xlane.xlu1 %3926 }
0x127b   : > { %7315 = vpow2.f32 %v3936_v17  ;;  %v3931_v42 = vsub.f32 %v3915_v62, %v3927_v4 }
0x127c   : > { %7317 = vpow2.f32 %v3932_v0 }
0x127d   : > { %v3938_v14 = vmul.f32 1.442695, %v3931_v42 }
0x127e   : > { %v4110_v22 = vpop.permute.xlu1 %4109 }
0x127f   : > { %7319 = vpow2.f32 %v3938_v14  ;;  %v4115_v58 = vsel %vm1974_vm1, %v4110_v22, 0 }
0x1280   : > { %7321 = vpow2.f32 %v3934_v8 }
0x1288   : > { %v7316_v18 = vpop.eup %7315 }
0x1289   : > { %v3946_v35 = vsel %vm2083_vm2, %v7316_v18, 0.0  ;;  %v7318_v19 = vpop.eup %7317 }
0x128a   : > { %3947 = vadd.xlane.f32.xlu0 %v3946_v35  ;;  %v3940_v52 = vsel %vm2083_vm2, %v7318_v19, 0.0 }
0x128c   : > { %v7320_v20 = vpop.eup %7319 }
0x128d   : > { %v3949_v9 = vsel %vm2083_vm2, %v7320_v20, 0.0  ;;  %v7322_v21 = vpop.eup %7321 }
0x128e   : > { %3941 = vadd.xlane.f32.xlu0 %v3940_v52  ;;  %3950 = vadd.xlane.f32.xlu1 %v3949_v9  ;;  %v3943_v48 = vsel %vm2083_vm2, %v7322_v21, 0.0 }
0x1292   : > { %3944 = vadd.xlane.f32.xlu1 %v3943_v48 }
0x12a3   : > { %4053 = vrot.lane.b32.xlu1 %v8688_v23, %s7691_s10 }
0x12a4   : > { %4056 = vrot.lane.b32.xlu0 %v8668_v5, %s7691_s10 }
0x12a7   : > { %4106 = vrot.lane.b32.xlu1 %v8684_v15, %s7691_s10 }
0x1313   : > { %v3948_v2 = vpop.xlane.xlu0 %3947 }
0x1314   : > { %7323 = vrcp.f32 %v3948_v2 }
0x1317   : > { %v3942_v25 = vpop.xlane.xlu0 %3941  ;;  %v3951_v28 = vpop.xlane.xlu1 %3950 }
0x1318   : > { %7325 = vrcp.f32 %v3951_v28 }
0x1319   : > { %7327 = vrcp.f32 %v3942_v25 }
0x131b   : > { %v3945_v29 = vpop.xlane.xlu1 %3944  ;;  %v4057_v3 = vpop.permute.xlu0 %4056 }
0x131c   : > { %7329 = vrcp.f32 %v3945_v29  ;;  %v4062_v59 = vsel %vm1974_vm1, %v4057_v3, 0 }
0x131f   : > { %v4054_v37 = vpop.permute.xlu1 %4053 }
0x1321   : > { %v7324_v32 = vpop.eup %7323 }
0x1322   : > { %v3957_v36 = vmul.f32 %v7324_v32, %v7316_v18 }
0x1323   : > { %v4107_v53 = vpop.permute.xlu1 %4106 }
0x1325   : > { %v7326_v33 = vpop.eup %7325 }
0x1326   : > { %v7328_v34 = vpop.eup %7327  ;;  %v3959_v10 = vmul.f32 %v7326_v33, %v7320_v20 }
0x1327   : > { %v3953_v30 = vmul.f32 %v7328_v34, %v7318_v19 }
0x1328   : > { %v3961_v55 = vpack.c.bf16 %v3959_v10, %v3957_v36 }
0x1329   : > { %v7330_v13 = vpop.eup %7329 }
0x132a   : > { %v3955_v12 = vmul.f32 %v7330_v13, %v7322_v21  ;;  %6788 = vmatmul.mubr.msk.bf16.vlgmr.msra.gmra.mxu1 %vm2083_vm2, %v3961_v55 }
0x132b   : > { %6798 = vmatpush3.bf16.xpose.msra.mxu1 %v4115_v58  ;;  %6799 = vmatprep.mubr.msk.bf16.mxu1 %vm7690_vm0, %v7689_v51 }
0x132c   : > { %v3960_v57 = vpack.c.bf16 %v3955_v12, %v3953_v30  ;;  %6809 = vmatprep.subr.bf16.mxu1 %v7689_v51 }
0x132e   : > { %6782 = vmatmul.mubr.msk.bf16.vlgmr.msra.gmra.mxu0 %vm2083_vm2, %v3960_v57 }
0x132f   : > { %6792 = vmatpush3.bf16.xpose.msra.mxu0 %v4062_v59  ;;  %6793 = vmatprep.mubr.msk.bf16.mxu0 %vm7690_vm0, %v7689_v51 }
0x1330   : > { %6803 = vmatprep.subr.bf16.mxu0 %v7689_v51 }
0x1332   : > { %6800 = vmatmul.mubr.msk.bf16.vlgmr.msra.gmra.mxu1 %vm1974_vm1, %v4107_v53 }
0x1333   : > { %6811 = vmatprep.mubr.msk.bf16.mxu1 %vm7690_vm0, %v7689_v51 }
0x1336   : > { %6794 = vmatmul.mubr.msk.bf16.vlgmr.msra.gmra.mxu0 %vm1974_vm1, %v4054_v37 }
0x1337   : > { %6805 = vmatprep.mubr.msk.bf16.mxu0 %vm7690_vm0, %v7689_v51 }
0x13ea   : > { %v8745_v26 = vpop.f32.mrf.mxu1 }
0x13ec   : > { %v6789_v43 = vpop.f32.mrf.mxu1 }
0x13ee   : > { %v8747_v31 = vpop.f32.mrf.mxu0  ;;  %v8749_v45 = vpop.f32.mrf.mxu1 }
0x13ef   : > { %v4051_v47 = vpack.c.bf16 %v8749_v45, %v8745_v26 }
0x13f0   : > { %v6783_v27 = vpop.f32.mrf.mxu0  ;;  %v6790_v49 = vpop.f32.mrf.mxu1 }
0x13f2   : > { %v8753_v16 = vpop.f32.mrf.mxu0  ;;  %v4151_v41 = vpop.f32.mrf.mxu1 }
0x13f3   : > { %v4050_v62 = vpack.c.bf16 %v8753_v16, %v8747_v31  ;;  %v4160_v46 = vmul.f32 0.17677669, %v4151_v41  ;;  %v7181_v16 = vld [vmem:[%s9153_s23 + $0x18] sm:$0xff]  }
0x13f4   : > { %v6784_v50 = vpop.f32.mrf.mxu0  ;;  %v6801_v60 = vpop.f32.mrf.mxu1 }
0x13f5   : > { %v4164_v35 = vadd.f32 %v4160_v46, %v8707_v38  ;;  %v7179_v60 = vld [vmem:[%s9153_s23 + $0x8] sm:$0xff]  }
0x13f6   : > { %v4098_v44 = vpop.f32.mrf.mxu0  ;;  %v4154_v0 = vpop.f32.mrf.mxu1 }
0x13f7   : > { %v4158_v24 = vmul.f32 0.17677669, %v4098_v44  ;;  %v4161_v8 = vmul.f32 0.17677669, %v4154_v0  ;;  %v4172_v52 = vsel %vm2083_vm2, %v4164_v35, -inf }
0x13f8   : > { %v6795_v17 = vpop.f32.mrf.mxu0  ;;  %v6802_v1 = vpop.f32.mrf.mxu1 }
0x13f9   : > { %v4162_v4 = vadd.f32 %v4158_v24, %v8704_v7  ;;  %v4165_v21 = vadd.f32 %v4161_v8, %v8707_v38  ;;  %v7180_v8 = vld [vmem:[%s9153_s23] sm:$0xff]  }
0x13fa   : > { %v4101_v42 = vpop.f32.mrf.mxu0 }
0x13fb   : > { %v4159_v14 = vmul.f32 0.17677669, %v4101_v42  ;;  %v4166_v18 = vsel %vm2083_vm2, %v4162_v4, -inf  ;;  %v4175_v48 = vsel %vm2083_vm2, %v4165_v21, -inf }
0x13fc   : > { %4167 = vmax.xlane.f32.xlu0 %v4166_v18  ;;  %v6796_v19 = vpop.f32.mrf.mxu0 }
0x13fd   : > { %v4163_v20 = vadd.f32 %v4159_v14, %v8704_v7 }
0x13ff   : > { %v4169_v9 = vsel %vm2083_vm2, %v4163_v20, -inf }
0x1400   : > { %4173 = vmax.xlane.f32.xlu0 %v4172_v52  ;;  %4170 = vmax.xlane.f32.xlu1 %v4169_v9 }
0x1404   : > { %4176 = vmax.xlane.f32.xlu0 %v4175_v48 }
0x1485   : > { %v4168_v22 = vpop.xlane.xlu0 %4167 }
0x1486   : > { %v4178_v2 = vsub.f32 %v4162_v4, %v4168_v22 }
0x1488   : > { %v4182_v32 = vmul.f32 1.442695, %v4178_v2 }
0x1489   : > { %v4174_v25 = vpop.xlane.xlu0 %4173  ;;  %v4171_v28 = vpop.xlane.xlu1 %4170 }
0x148a   : > { %v4180_v29 = vsub.f32 %v4164_v35, %v4174_v25  ;;  %v4179_v34 = vsub.f32 %v4163_v20, %v4171_v28 }
0x148c   : > { %v4186_v33 = vmul.f32 1.442695, %v4180_v29  ;;  %v4184_v13 = vmul.f32 1.442695, %v4179_v34 }
0x148d   : > { %v4177_v36 = vpop.xlane.xlu0 %4176 }
0x148e   : > { %7331 = vpow2.f32 %v4186_v33  ;;  %v4181_v10 = vsub.f32 %v4165_v21, %v4177_v36 }
0x148f   : > { %7333 = vpow2.f32 %v4182_v32 }
0x1490   : > { %v4188_v55 = vmul.f32 1.442695, %v4181_v10 }
0x1492   : > { %7335 = vpow2.f32 %v4188_v55 }
0x1493   : > { %7337 = vpow2.f32 %v4184_v13 }
0x149b   : > { %v7332_v30 = vpop.eup %7331 }
0x149c   : > { %v4196_v12 = vsel %vm2083_vm2, %v7332_v30, 0.0  ;;  %v7334_v58 = vpop.eup %7333 }
0x149d   : > { %4197 = vadd.xlane.f32.xlu0 %v4196_v12  ;;  %v4190_v37 = vsel %vm2083_vm2, %v7334_v58, 0.0 }
0x149f   : > { %v7336_v3 = vpop.eup %7335 }
0x14a0   : > { %v4199_v57 = vsel %vm2083_vm2, %v7336_v3, 0.0  ;;  %v7338_v59 = vpop.eup %7337 }
0x14a1   : > { %4191 = vadd.xlane.f32.xlu0 %v4190_v37  ;;  %4200 = vadd.xlane.f32.xlu1 %v4199_v57  ;;  %v4193_v53 = vsel %vm2083_vm2, %v7338_v59, 0.0 }
0x14a5   : > { %4194 = vadd.xlane.f32.xlu1 %v4193_v53 }
0x14b6   : > { %4261 = vrot.lane.b32.xlu1 %v8630_v61, %s7691_s10 }
0x14b7   : > { %4213 = vrot.lane.b32.xlu0 %v8615_v54, %s7691_s10 }
0x14ba   : > { %4446 = vrot.lane.b32.xlu1 %v8668_v5, %s7692_s30 }
0x14bb   : > { %4444 = vrot.lane.b32.xlu0 %v8688_v23, %s7692_s30 }
0x14be   : > { %4497 = vrot.lane.b32.xlu1 %v8664_v63, %s7692_s30 }
0x14c2   : > { %4495 = vrot.lane.b32.xlu1 %v8684_v15, %s7692_s30 }
0x1526   : > { %v4198_v43 = vpop.xlane.xlu0 %4197 }
0x1527   : > { %7339 = vrcp.f32 %v4198_v43 }
0x152a   : > { %v4192_v27 = vpop.xlane.xlu0 %4191  ;;  %v4201_v49 = vpop.xlane.xlu1 %4200 }
0x152b   : > { %7341 = vrcp.f32 %v4201_v49 }
0x152c   : > { %7343 = vrcp.f32 %v4192_v27 }
0x152e   : > { %v4214_v41 = vpop.permute.xlu0 %4213  ;;  %v4195_v50 = vpop.xlane.xlu1 %4194 }
0x152f   : > { %7345 = vrcp.f32 %v4195_v50  ;;  %6804 = vmatpush3.bf16.msra.mxu0 %v4214_v41 }
0x1530   : > { %6815 = vmatprep.subr.bf16.mxu0 %v7181_v16 }
0x1532   : > { %v4262_v44 = vpop.permute.xlu1 %4261  ;;  %v4445_v13 = vpop.permute.xlu0 %4444 }
0x1533   : > { %6810 = vmatpush3.bf16.msra.mxu1 %v4262_v44 }
0x1534   : > { %6823 = vmatprep.subr.bf16.mxu1 %v7179_v60  ;;  %v7340_v46 = vpop.eup %7339 }
0x1535   : > { %v4207_v17 = vmul.f32 %v7340_v46, %v7332_v30 }
0x1536   : > { %v4447_v14 = vpop.permute.xlu1 %4446 }
0x1537   : > { %v4452_v33 = vsel %vm1974_vm1, %v4447_v14, 0 }
0x1538   : > { %v7342_v24 = vpop.eup %7341 }
0x1539   : > { %v7344_v0 = vpop.eup %7343  ;;  %v4209_v1 = vmul.f32 %v7342_v24, %v7336_v3 }
0x153a   : > { %v4203_v18 = vmul.f32 %v7344_v0, %v7334_v58  ;;  %v4498_v20 = vpop.permute.xlu1 %4497 }
0x153b   : > { %v4211_v42 = vpack.c.bf16 %v4209_v1, %v4207_v17  ;;  %v4503_v52 = vsel %vm1974_vm1, %v4498_v20, 0 }
0x153c   : > { %v7346_v4 = vpop.eup %7345 }
0x153d   : > { %v4205_v35 = vmul.f32 %v7346_v4, %v7338_v59  ;;  %6812 = vmatmul.mubr.msk.bf16.vlgmr.msra.gmra.mxu1 %vm2083_vm2, %v4211_v42 }
0x153e   : > { %6824 = vmatpush3.bf16.msra.mxu1 %v7179_v60  ;;  %6827 = vmatprep.mubr.msk.bf16.mxu1 %vm1974_vm1, %v4050_v62  ;;  %v4496_v31 = vpop.permute.xlu1 %4495  ;;  %v7182_v62 = vld [vmem:[%s9153_s23 + $0x10] sm:$0xff]  }
0x153f   : > { %v4210_v19 = vpack.c.bf16 %v4205_v35, %v4203_v18  ;;  %6825 = vmatprep.subr.bf16.mxu1 %v7180_v8 }
0x1541   : > { %6806 = vmatmul.mubr.msk.bf16.vlgmr.msra.gmra.mxu0 %vm2083_vm2, %v4210_v19 }
0x1542   : > { %6826 = vmatpush3.bf16.msra.mxu1 %v7180_v8  ;;  %6816 = vmatpush3.bf16.msra.mxu0 %v7181_v16 }
0x1543   : > { %6837 = vmatprep.subr.bf16.mxu1 %v7689_v51  ;;  %6817 = vmatprep.subr.bf16.mxu0 %v7182_v62 }
0x1545   : > { %6828 = vmatmul.mubr.msk.bf16.vlgmr.msra.gmra.mxu1 %vm1974_vm1, %v4051_v47 }
0x1546   : > { %6838 = vmatpush3.bf16.xpose.msra.mxu1 %v4503_v52  ;;  %6839 = vmatprep.mubr.msk.bf16.mxu1 %vm7690_vm0, %v7689_v51 }
0x1547   : > { %6849 = vmatprep.subr.bf16.mxu1 %v7689_v51  ;;  %6818 = vmatpush3.bf16.msra.mxu0 %v7182_v62 }
0x1548   : > { %6831 = vmatprep.subr.bf16.mxu0 %v7689_v51 }
0x154d   : > { %6840 = vmatmul.mubr.msk.bf16.vlgmr.msra.gmra.mxu1 %vm1974_vm1, %v4496_v31 }
0x154e   : > { %6851 = vmatprep.mubr.msk.bf16.mxu1 %vm7690_vm0, %v7689_v51 }
0x15fd   : > { %v4301_v26 = vpop.f32.mrf.mxu1 }
0x15ff   : > { %v6813_v45 = vpop.f32.mrf.mxu1 }
0x1601   : > { %v4253_v47 = vpop.f32.mrf.mxu0  ;;  %v4304_v9 = vpop.f32.mrf.mxu1 }
0x1602   : > { %v4309_v28 = vpack.c.bf16 %v4304_v9, %v4301_v26 }
0x1603   : > { %v6807_v21 = vpop.f32.mrf.mxu0  ;;  %v6814_v48 = vpop.f32.mrf.mxu1 }
0x1605   : > { %v4256_v22 = vpop.f32.mrf.mxu0  ;;  %v8804_v25 = vpop.f32.mrf.mxu1 }
0x1606   : > { %v4308_v2 = vpack.c.bf16 %v4256_v22, %v4253_v47 }
0x1607   : > { %v6808_v29 = vpop.f32.mrf.mxu0  ;;  %v8806_v32 = vpop.f32.mrf.mxu1 }
0x1608   : > { %6819 = vmatprep.mubr.msk.bf16.mxu0 %vm1974_vm1, %v4308_v2 }
0x1609   : > { %6820 = vmatmul.mubr.msk.bf16.vlgmr.msra.gmra.mxu0 %vm1974_vm1, %v4309_v28  ;;  %v8811_v34 = vpop.f32.mrf.mxu1 }
0x160a   : > { %6832 = vmatpush3.bf16.xpose.msra.mxu0 %v4452_v33  ;;  %6833 = vmatprep.mubr.msk.bf16.mxu0 %vm7690_vm0, %v7689_v51 }
0x160b   : > { %6843 = vmatprep.subr.bf16.mxu0 %v7689_v51  ;;  %v8816_v36 = vpop.f32.mrf.mxu1 }
0x160d   : > { %v4539_v10 = vpop.f32.mrf.mxu1 }
0x160e   : > { %v4548_v53 = vmul.f32 0.17677669, %v4539_v10 }
0x160f   : > { %v6841_v55 = vpop.f32.mrf.mxu1 }
0x1610   : > { %v4552_v46 = vadd.f32 %v4548_v53, %v8707_v38 }
0x1611   : > { %6834 = vmatmul.mubr.msk.bf16.vlgmr.msra.gmra.mxu0 %vm1974_vm1, %v4445_v13  ;;  %v4542_v30 = vpop.f32.mrf.mxu1 }
0x1612   : > { %6845 = vmatprep.mubr.msk.bf16.mxu0 %vm7690_vm0, %v7689_v51  ;;  %v4549_v50 = vmul.f32 0.17677669, %v4542_v30  ;;  %v4560_v17 = vsel %vm2083_vm2, %v4552_v46, -inf }
0x1613   : > { %v6842_v12 = vpop.f32.mrf.mxu1 }
0x1614   : > { %v4553_v4 = vadd.f32 %v4549_v50, %v8707_v38 }
0x1616   : > { %v4563_v42 = vsel %vm2083_vm2, %v4553_v4, -inf }
0x16c9   : > { %v8821_v58 = vpop.f32.mrf.mxu0 }
0x16cb   : > { %v8823_v3 = vpop.f32.mrf.mxu0 }
0x16cd   : > { %v8825_v37 = vpop.f32.mrf.mxu0 }
0x16cf   : > { %v8827_v57 = vpop.f32.mrf.mxu0 }
0x16d1   : > { %v4488_v59 = vpop.f32.mrf.mxu0 }
0x16d2   : > { %v4546_v43 = vmul.f32 0.17677669, %v4488_v59 }
0x16d3   : > { %v6835_v27 = vpop.f32.mrf.mxu0 }
0x16d4   : > { %v4550_v49 = vadd.f32 %v4546_v43, %v8704_v7 }
0x16d5   : > { %v4491_v41 = vpop.f32.mrf.mxu0 }
0x16d6   : > { %v4547_v60 = vmul.f32 0.17677669, %v4491_v41  ;;  %v4554_v44 = vsel %vm2083_vm2, %v4550_v49, -inf }
0x16d7   : > { %4555 = vmax.xlane.f32.xlu0 %v4554_v44  ;;  %v6836_v24 = vpop.f32.mrf.mxu0 }
0x16d8   : > { %v4551_v0 = vadd.f32 %v4547_v60, %v8704_v7  ;;  %v7184_v24 = vld [vmem:[%s9153_s23 + $0x20] sm:$0xff]  }
0x16da   : > { %v4557_v1 = vsel %vm2083_vm2, %v4551_v0, -inf }
0x16db   : > { %4561 = vmax.xlane.f32.xlu0 %v4560_v17  ;;  %4558 = vmax.xlane.f32.xlu1 %v4557_v1 }
0x16df   : > { %4564 = vmax.xlane.f32.xlu0 %v4563_v42 }
0x1760   : > { %v4556_v8 = vpop.xlane.xlu0 %4555 }
0x1761   : > { %v4566_v14 = vsub.f32 %v4550_v49, %v4556_v8 }
0x1763   : > { %v4570_v20 = vmul.f32 1.442695, %v4566_v14 }
0x1764   : > { %v4562_v18 = vpop.xlane.xlu0 %4561  ;;  %v4559_v35 = vpop.xlane.xlu1 %4558 }
0x1765   : > { %v4568_v19 = vsub.f32 %v4552_v46, %v4562_v18  ;;  %v4567_v31 = vsub.f32 %v4551_v0, %v4559_v35  ;;  %v7183_v46 = vld [vmem:[%s9153_s23 + $0x28] sm:$0xff]  }
0x1767   : > { %v4574_v52 = vmul.f32 1.442695, %v4568_v19  ;;  %v4572_v26 = vmul.f32 1.442695, %v4567_v31 }
0x1768   : > { %v4565_v16 = vpop.xlane.xlu0 %4564 }
0x1769   : > { %7347 = vpow2.f32 %v4574_v52  ;;  %v4569_v62 = vsub.f32 %v4553_v4, %v4565_v16 }
0x176a   : > { %7349 = vpow2.f32 %v4570_v20 }
0x176b   : > { %v4576_v45 = vmul.f32 1.442695, %v4569_v62 }
0x176d   : > { %7351 = vpow2.f32 %v4576_v45 }
0x176e   : > { %7353 = vpow2.f32 %v4572_v26 }
0x1776   : > { %v7348_v47 = vpop.eup %7347 }
0x1777   : > { %v4584_v9 = vsel %vm2083_vm2, %v7348_v47, 0.0  ;;  %v7350_v21 = vpop.eup %7349 }
0x1778   : > { %4585 = vadd.xlane.f32.xlu0 %v4584_v9  ;;  %v4578_v22 = vsel %vm2083_vm2, %v7350_v21, 0.0 }
0x177a   : > { %v7352_v48 = vpop.eup %7351 }
0x177b   : > { %v4587_v2 = vsel %vm2083_vm2, %v7352_v48, 0.0  ;;  %v7354_v28 = vpop.eup %7353 }
0x177c   : > { %4579 = vadd.xlane.f32.xlu0 %v4578_v22  ;;  %4588 = vadd.xlane.f32.xlu1 %v4587_v2  ;;  %v4581_v29 = vsel %vm2083_vm2, %v7354_v28, 0.0 }
0x1780   : > { %4582 = vadd.xlane.f32.xlu1 %v4581_v29 }
0x1791   : > { %4647 = vrot.lane.b32.xlu1 %v8630_v61, %s7692_s30 }
0x1792   : > { %4600 = vrot.lane.b32.xlu0 %v8615_v54, %s7692_s30 }
0x1795   : > { %4769 = vrot.lane.b32.xlu1 %v8668_v5, %s7693_s27 }
0x1796   : > { %4767 = vrot.lane.b32.xlu0 %v8688_v23, %s7693_s27 }
0x1799   : > { %4820 = vrot.lane.b32.xlu1 %v8664_v63, %s7693_s27 }
0x179d   : > { %4818 = vrot.lane.b32.xlu1 %v8684_v15, %s7693_s27 }
0x1801   : > { %v4586_v33 = vpop.xlane.xlu0 %4585 }
0x1802   : > { %7355 = vrcp.f32 %v4586_v33 }
0x1805   : > { %v4580_v10 = vpop.xlane.xlu0 %4579  ;;  %v4589_v13 = vpop.xlane.xlu1 %4588 }
0x1806   : > { %7357 = vrcp.f32 %v4589_v13 }
0x1807   : > { %7359 = vrcp.f32 %v4580_v10 }
0x1809   : > { %v4601_v55 = vpop.permute.xlu0 %4600  ;;  %v4583_v30 = vpop.xlane.xlu1 %4582 }
0x180a   : > { %7361 = vrcp.f32 %v4583_v30  ;;  %6844 = vmatpush3.bf16.msra.mxu0 %v4601_v55 }
0x180b   : > { %6855 = vmatprep.subr.bf16.mxu0 %v7183_v46 }
0x180d   : > { %v4648_v5 = vpop.permute.xlu1 %4647  ;;  %v4768_v44 = vpop.permute.xlu0 %4767 }
0x180e   : > { %6850 = vmatpush3.bf16.msra.mxu1 %v4648_v5 }
0x180f   : > { %6863 = vmatprep.subr.bf16.mxu1 %v7689_v51  ;;  %v7356_v23 = vpop.eup %7355 }
0x1810   : > { %v4595_v59 = vmul.f32 %v7356_v23, %v7348_v47  ;;  %v4430_v23 = vadd.f32 %v8806_v32, %v8823_v3 }
0x1811   : > { %v4770_v15 = vpop.permute.xlu1 %4769 }
0x1812   : > { %v4775_v50 = vsel %vm1974_vm1, %v4770_v15, 0 }
0x1813   : > { %v7358_v12 = vpop.eup %7357 }
0x1814   : > { %v7360_v63 = vpop.eup %7359  ;;  %v4597_v53 = vmul.f32 %v7358_v12, %v7352_v48 }
0x1815   : > { %v4591_v49 = vmul.f32 %v7360_v63, %v7350_v21  ;;  %v4821_v18 = vpop.permute.xlu1 %4820 }
0x1816   : > { %v4599_v27 = vpack.c.bf16 %v4597_v53, %v4595_v59  ;;  %v4826_v62 = vsel %vm1974_vm1, %v4821_v18, 0  ;;  %v4441_v59 = vadd.f32 %v8811_v34, %v8825_v37 }
0x1817   : > { %v7362_v43 = vpop.eup %7361 }
0x1818   : > { %v4593_v41 = vmul.f32 %v7362_v43, %v7354_v28  ;;  %6852 = vmatmul.mubr.msk.bf16.vlgmr.msra.gmra.mxu1 %vm2083_vm2, %v4599_v27  ;;  %v4433_v43 = vadd.f32 %v8816_v36, %v8827_v57 }
0x1819   : > { %6864 = vmatpush3.bf16.xpose.msra.mxu1 %v4775_v50  ;;  %6865 = vmatprep.mubr.msk.bf16.mxu1 %vm7690_vm0, %v7689_v51  ;;  %v4819_v2 = vpop.permute.xlu1 %4818 }
0x181a   : > { %v4598_v60 = vpack.c.bf16 %v4593_v41, %v4591_v49  ;;  %6875 = vmatprep.subr.bf16.mxu1 %v7689_v51 }
0x181c   : > { %6846 = vmatmul.mubr.msk.bf16.vlgmr.msra.gmra.mxu0 %vm2083_vm2, %v4598_v60 }
0x181d   : > { %6856 = vmatpush3.bf16.msra.mxu0 %v7183_v46 }
0x181e   : > { %6857 = vmatprep.subr.bf16.mxu0 %v7184_v24 }
0x1820   : > { %6866 = vmatmul.mubr.msk.bf16.vlgmr.msra.gmra.mxu1 %vm1974_vm1, %v4768_v44 }
0x1821   : > { %6877 = vmatprep.mubr.msk.bf16.mxu1 %vm7690_vm0, %v7689_v51  ;;  %6858 = vmatpush3.bf16.msra.mxu0 %v7184_v24 }
0x1822   : > { %6869 = vmatprep.subr.bf16.mxu0 %v7689_v51 }
0x18d8   : > { %v4687_v0 = vpop.f32.mrf.mxu1 }
0x18da   : > { %v6853_v17 = vpop.f32.mrf.mxu1 }
0x18dc   : > { %v4640_v1 = vpop.f32.mrf.mxu0  ;;  %v4690_v4 = vpop.f32.mrf.mxu1 }
0x18dd   : > { %v4695_v20 = vpack.c.bf16 %v4690_v4, %v4687_v0 }
0x18de   : > { %v6847_v42 = vpop.f32.mrf.mxu0  ;;  %v6854_v8 = vpop.f32.mrf.mxu1 }
0x18e0   : > { %v4643_v14 = vpop.f32.mrf.mxu0  ;;  %v4811_v19 = vpop.f32.mrf.mxu1 }
0x18e1   : > { %v4694_v35 = vpack.c.bf16 %v4643_v14, %v4640_v1  ;;  %v4869_v52 = vmul.f32 0.17677669, %v4811_v19 }
0x18e2   : > { %v6848_v31 = vpop.f32.mrf.mxu0  ;;  %v6867_v16 = vpop.f32.mrf.mxu1 }
0x18e3   : > { %6859 = vmatprep.mubr.msk.bf16.mxu0 %vm1974_vm1, %v4694_v35  ;;  %v4873_v26 = vadd.f32 %v4869_v52, %v8704_v7 }
0x18e4   : > { %6860 = vmatmul.mubr.msk.bf16.vlgmr.msra.gmra.mxu0 %vm1974_vm1, %v4695_v20  ;;  %v4814_v45 = vpop.f32.mrf.mxu1 }
0x18e5   : > { %6870 = vmatpush3.bf16.xpose.msra.mxu0 %v4826_v62  ;;  %6871 = vmatprep.mubr.msk.bf16.mxu0 %vm7690_vm0, %v7689_v51  ;;  %v4870_v47 = vmul.f32 0.17677669, %v4814_v45  ;;  %v4877_v9 = vsel %vm2083_vm2, %v4873_v26, -inf }
0x18e6   : > { %6881 = vmatprep.subr.bf16.mxu0 %v7689_v51  ;;  %4878 = vmax.xlane.f32.xlu0 %v4877_v9  ;;  %v6868_v21 = vpop.f32.mrf.mxu1 }
0x18e7   : > { %v4874_v48 = vadd.f32 %v4870_v47, %v8704_v7  ;;  %v4438_v7 = vadd.f32 %v8804_v25, %v8821_v58 }
0x18e9   : > { %v4880_v22 = vsel %vm2083_vm2, %v4874_v48, -inf }
0x18ea   : > { %4881 = vmax.xlane.f32.xlu1 %v4880_v22 }
0x18ec   : > { %6872 = vmatmul.mubr.msk.bf16.vlgmr.msra.gmra.mxu0 %vm1974_vm1, %v4819_v2  ;;  %v7185_v2 = vld [vmem:[%s9153_s23 + $0x38] sm:$0xff]  }
0x18ed   : > { %6883 = vmatprep.mubr.msk.bf16.mxu0 %vm7690_vm0, %v7689_v51 }
0x196f   : > { %v4879_v55 = vpop.xlane.xlu0 %4878 }
0x1970   : > { %v4889_v30 = vsub.f32 %v4873_v26, %v4879_v55 }
0x1972   : > { %v4893_v12 = vmul.f32 1.442695, %v4889_v30 }
0x1973   : > { %v4882_v28 = vpop.xlane.xlu1 %4881 }
0x1974   : > { %v4890_v29 = vsub.f32 %v4874_v48, %v4882_v28  ;;  %v7186_v28 = vld [vmem:[%s9153_s23 + $0x30] sm:$0xff]  }
0x1976   : > { %v4895_v33 = vmul.f32 1.442695, %v4890_v29 }
0x1978   : > { %7363 = vpow2.f32 %v4895_v33 }
0x1979   : > { %7365 = vpow2.f32 %v4893_v12 }
0x1985   : > { %v7364_v10 = vpop.eup %7363 }
0x1986   : > { %v4904_v13 = vsel %vm2083_vm2, %v7364_v10, 0.0  ;;  %v7366_v57 = vpop.eup %7365 }
0x1987   : > { %4905 = vadd.xlane.f32.xlu1 %v4904_v13  ;;  %v4901_v46 = vsel %vm2083_vm2, %v7366_v57, 0.0 }
0x19a4   : > { %v6861_v5 = vpop.f32.mrf.mxu0 }
0x19a5   : > { %v8884_v63 = vadd.f32 %v6861_v5, %v4438_v7 }
0x19a6   : > { %v4748_v51 = vpop.f32.mrf.mxu0 }
0x19a7   : > { %v8888_v53 = vadd.f32 %v4748_v51, %v4430_v23  ;;  %v3796_v51 = vld [vmem:[%s1353_s3] sm:$0x1] }
0x19a8   : > { %v6862_v15 = vpop.f32.mrf.mxu0 }
0x19a9   : > { %v8892_v27 = vadd.f32 %v6862_v15, %v4441_v59  ;;  %v3797_v59 = vunpack.c.l.bf16 %v3796_v51  ;;  %v7198_v51 = vld [vmem:[%s9157_s28 + $0x20] sm:$0xff]  }
0x19aa   : > { %v4751_v25 = vpop.f32.mrf.mxu0 }
0x19ab   : > { %v8894_v58 = vadd.f32 %v4751_v25, %v4433_v43  ;;  %v5093_v25 = vrot.slane %v3797_v59, %v8184_v56  ;;  %v7199_v59 = vld [vmem:[%s9157_s28 + $0x18] sm:$0xff]  }
0x19ac   : > { %v4862_v32 = vpop.f32.mrf.mxu0 }
0x19ad   : > { %v4871_v3 = vmul.f32 0.17677669, %v4862_v32 }
0x19ae   : > { %v6873_v49 = vpop.f32.mrf.mxu0 }
0x19af   : > { %v4875_v41 = vadd.f32 %v4871_v3, %v8707_v38 }
0x19b0   : > { %v4865_v50 = vpop.f32.mrf.mxu0 }
0x19b1   : > { %v4872_v60 = vmul.f32 0.17677669, %v4865_v50  ;;  %v4883_v34 = vsel %vm2083_vm2, %v4875_v41, -inf }
0x19b2   : > { %4884 = vmax.xlane.f32.xlu0 %v4883_v34  ;;  %v6874_v37 = vpop.f32.mrf.mxu0 }
0x19b3   : > { %v4876_v44 = vadd.f32 %v4872_v60, %v8707_v38 }
0x19b5   : > { %v4886_v36 = vsel %vm2083_vm2, %v4876_v44, -inf }
0x19b6   : > { %4887 = vmax.xlane.f32.xlu0 %v4886_v36 }
0x19ba   : > { %4902 = vadd.xlane.f32.xlu0 %v4901_v46 }
0x1a10   : > { %v4906_v19 = vpop.xlane.xlu1 %4905 }
0x1a3b   : > { %v4885_v24 = vpop.xlane.xlu0 %4884 }
0x1a3c   : > { %v4891_v0 = vsub.f32 %v4875_v41, %v4885_v24  ;;  %v7189_v24 = vld [vmem:[%s9155_s16 + $0x28] sm:$0xff]  }
0x1a3e   : > { %v4897_v17 = vmul.f32 1.442695, %v4891_v0  ;;  %v7190_v0 = vld [vmem:[%s9155_s16 + $0x20] sm:$0xff]  }
0x1a3f   : > { %v4888_v1 = vpop.xlane.xlu0 %4887 }
0x1a40   : > { %7367 = vpow2.f32 %v4897_v17  ;;  %v4892_v4 = vsub.f32 %v4876_v44, %v4888_v1  ;;  %v7191_v17 = vld [vmem:[%s9155_s16 + $0x18] sm:$0xff]   ;;  %v7192_v1 = vld [vmem:[%s9155_s16 + $0x10] sm:$0xff]  }
0x1a42   : > { %v4899_v42 = vmul.f32 1.442695, %v4892_v4  ;;  %v7193_v4 = vld [vmem:[%s9155_s16 + $0x8] sm:$0xff]  }
0x1a43   : > { %v4903_v35 = vpop.xlane.xlu0 %4902 }
0x1a44   : > { %7369 = vpow2.f32 %v4899_v42  ;;  %v7194_v42 = vld [vmem:[%s9155_s16] sm:$0xff]  }
0x1a45   : > { %7371 = vrcp.f32 %v4903_v35 }
0x1a46   : > { %7373 = vrcp.f32 %v4906_v19 }
0x1a4d   : > { %v7368_v8 = vpop.eup %7367 }
0x1a4e   : > { %v4907_v14 = vsel %vm2083_vm2, %v7368_v8, 0.0 }
0x1a4f   : > { %4908 = vadd.xlane.f32.xlu0 %v4907_v14 }
0x1a51   : > { %v7370_v38 = vpop.eup %7369 }
0x1a52   : > { %v4910_v18 = vsel %vm2083_vm2, %v7370_v38, 0.0  ;;  %v7372_v20 = vpop.eup %7371 }
0x1a53   : > { %4911 = vadd.xlane.f32.xlu1 %v4910_v18  ;;  %v7374_v31 = vpop.eup %7373  ;;  %v4914_v16 = vmul.f32 %v7372_v20, %v7366_v57 }
0x1a54   : > { %v4916_v45 = vmul.f32 %v7374_v31, %v7364_v10 }
0x1a64   : > { %4970 = vrot.lane.b32.xlu1 %v8630_v61, %s7693_s27  ;;  %v4921_v61 = vpack.c.bf16 %v4916_v45, %v4914_v16  ;;  %v5102_v45 = vld [vmem:[%s1356_s6] sm:$0x1] }
0x1a65   : > { %4923 = vrot.lane.b32.xlu0 %v8615_v54, %s7693_s27 }
0x1ad8   : > { %v4909_v52 = vpop.xlane.xlu0 %4908 }
0x1ad9   : > { %7375 = vrcp.f32 %v4909_v52 }
0x1adc   : > { %v4912_v62 = vpop.xlane.xlu1 %4911  ;;  %v4924_v26 = vpop.permute.xlu0 %4923 }
0x1add   : > { %7377 = vrcp.f32 %v4912_v62  ;;  %6876 = vmatpush3.bf16.msra.mxu1 %v4924_v26 }
0x1ade   : > { %6887 = vmatprep.subr.bf16.mxu1 %v7185_v2 }
0x1ae0   : > { %v4971_v47 = vpop.permute.xlu1 %4970  ;;  %6878 = vmatmul.mubr.msk.bf16.vlgmr.msra.gmra.mxu1 %vm2083_vm2, %v4921_v61  ;;  %v5103_v61 = vunpack.c.l.bf16 %v5102_v45 }
0x1ae1   : > { %6882 = vmatpush3.bf16.msra.mxu0 %v4971_v47  ;;  %6888 = vmatpush3.bf16.msra.mxu1 %v7185_v2 }
0x1ae2   : > { %6889 = vmatprep.subr.bf16.mxu1 %v7186_v28 }
0x1ae5   : > { %6890 = vmatpush3.bf16.msra.mxu1 %v7186_v28 }
0x1ae6   : > { %v7376_v54 = vpop.eup %7375 }
0x1ae7   : > { %v4918_v21 = vmul.f32 %v7376_v54, %v7368_v8 }
0x1aea   : > { %v7378_v9 = vpop.eup %7377 }
0x1aeb   : > { %v4920_v48 = vmul.f32 %v7378_v9, %v7370_v38 }
0x1aed   : > { %v4922_v22 = vpack.c.bf16 %v4920_v48, %v4918_v21  ;;  %v5135_v21 = vrot.slane %v5103_v61, %v8184_v56 }
0x1aef   : > { %6884 = vmatmul.mubr.msk.bf16.vlgmr.msra.gmra.mxu0 %vm2083_vm2, %v4922_v22 }
0x1ba0   : > { %v4963_v29 = vpop.f32.mrf.mxu1 }
0x1ba2   : > { %v6879_v33 = vpop.f32.mrf.mxu1 }
0x1ba4   : > { %v4966_v10 = vpop.f32.mrf.mxu1 }
0x1ba5   : > { %v5017_v13 = vpack.c.bf16 %v4966_v10, %v4963_v29 }
0x1ba6   : > { %v6880_v55 = vpop.f32.mrf.mxu1 }
0x1ba7   : > { %6891 = vmatprep.mubr.msk.bf16.mxu1 %vm1974_vm1, %v5017_v13 }
0x1baf   : > { %v5010_v30 = vpop.f32.mrf.mxu0 }
0x1bb1   : > { %v6885_v7 = vpop.f32.mrf.mxu0 }
0x1bb3   : > { %v5013_v5 = vpop.f32.mrf.mxu0 }
0x1bb4   : > { %v5018_v23 = vpack.c.bf16 %v5013_v5, %v5010_v30  ;;  %v7195_v5 = vld [vmem:[%s9157_s28 + $0x38] sm:$0xff]  }
0x1bb5   : > { %v6886_v12 = vpop.f32.mrf.mxu0  ;;  %6915 = vmatprep.subr.bf16.mxu1 %v7195_v5 }
0x1bb6   : > { %6892 = vmatmul.mubr.msk.bf16.vlgmr.msra.gmra.mxu1 %vm1974_vm1, %v5018_v23  ;;  %v7196_v23 = vld [vmem:[%s9157_s28 + $0x30] sm:$0xff]   ;;  %v7197_v12 = vld [vmem:[%s9157_s28 + $0x28] sm:$0xff]  }
0x1bb7   : > { %6916 = vmatpush3.bf16.msra.mxu1 %v7195_v5 }
0x1bb8   : > { %6917 = vmatprep.subr.bf16.mxu1 %v7196_v23 }
0x1bbb   : > { %6918 = vmatpush3.bf16.msra.mxu1 %v7196_v23 }
0x1bbc   : > { %6919 = vmatprep.subr.bf16.mxu1 %v7197_v12 }
0x1bbf   : > { %6920 = vmatpush3.bf16.msra.mxu1 %v7197_v12 }
0x1bc0   : > { %6921 = vmatprep.subr.bf16.mxu1 %v7198_v51 }
0x1bc3   : > { %6922 = vmatpush3.bf16.msra.mxu1 %v7198_v51 }
0x1bc4   : > { %6923 = vmatprep.subr.bf16.mxu1 %v7199_v59 }
0x1bc7   : > { %6924 = vmatpush3.bf16.msra.mxu1 %v7199_v59 }
0x1c76   : > { %v6893_v15 = vpop.f32.mrf.mxu1 }
0x1c77   : > { %v5088_v49 = vadd.f32 %v6893_v15, %v8884_v63  ;;  %v7200_v15 = vld [vmem:[%s9157_s28 + $0x10] sm:$0xff]  }
0x1c78   : > { %v5071_v43 = vpop.f32.mrf.mxu1  ;;  %6925 = vmatprep.subr.bf16.mxu1 %v7200_v15 }
0x1c79   : > { %v5086_v32 = vadd.f32 %v5071_v43, %v8888_v53  ;;  %v5096_v36 = vadd.f32 %v5093_v25, %v5088_v49  ;;  %v7201_v43 = vld [vmem:[%s9157_s28 + $0x8] sm:$0xff]   ;;  %6926 = vmatpush3.bf16.msra.mxu1 %v7200_v15 }
0x1c7a   : > { %v6894_v3 = vpop.f32.mrf.mxu1  ;;  %6927 = vmatprep.subr.bf16.mxu1 %v7201_v43 }
0x1c7b   : > { %v5094_v41 = vadd.f32 %v5093_v25, %v5086_v32  ;;  %v5089_v50 = vadd.f32 %v6894_v3, %v8892_v27  ;;  %v5158_v32 = vld [vmem:[%s1359_s9] sm:$0x1] }
0x1c7c   : > { %v5074_v60 = vpop.f32.mrf.mxu1  ;;  %v5159_v3 = vunpack.c.l.bf16 %v5158_v32 }
0x1c7d   : > { %v8921_v34 = vadd.f32 %v5094_v41, %v8578_v11  ;;  %v5097_v37 = vadd.f32 %v5093_v25, %v5089_v50  ;;  %v5087_v44 = vadd.f32 %v5074_v60, %v8894_v58  ;;  %v8933_v11 = vadd.f32 %v5096_v36, %v8587_v40  ;;  %v7188_v40 = vld [vmem:[%s9155_s16 + $0x30] sm:$0xff]   ;;  %6928 = vmatpush3.bf16.msra.mxu1 %v7201_v43 }
0x1c7e   : > { %v5163_v49 = vrot.slane %v5159_v3, %v8184_v56 }
0x1c7f   : > { %v8925_v57 = vadd.f32 %v5097_v37, %v8581_v6  ;;  %v5095_v53 = vadd.f32 %v5093_v25, %v5087_v44  ;;  %v5104_v63 = vmul.f32 %v8921_v34, %v8921_v34  ;;  %v5106_v46 = vmul.f32 %v8933_v11, %v8933_v11  ;;  %v7202_v25 = vld [vmem:[%s9157_s28] sm:$0xff]  }
0x1c80   : > { %6929 = vmatprep.subr.bf16.mxu1 %v7202_v25 }
0x1c81   : > { %v8930_v27 = vadd.f32 %v5095_v53, %v8585_v39  ;;  %5108 = vadd.xlane.f32.xlu1 %v5104_v63  ;;  %v5107_v58 = vmul.f32 %v8925_v57, %v8925_v57  ;;  %v7187_v39 = vld [vmem:[%s9155_s16 + $0x38] sm:$0xff]   ;;  %6930 = vmatpush3.bf16.msra.mxu1 %v7202_v25 }
0x1c82   : > { %6895 = vmatprep.subr.bf16.mxu0 %v7187_v39 }
0x1c83   : > { %v5105_v6 = vmul.f32 %v8930_v27, %v8930_v27  ;;  %6896 = vmatpush3.bf16.msra.mxu0 %v7187_v39 }
0x1c84   : > { %6897 = vmatprep.subr.bf16.mxu0 %v7188_v40 }
0x1c85   : > { %5114 = vadd.xlane.f32.xlu1 %v5107_v58  ;;  %5110 = vadd.xlane.f32.xlu0 %v5105_v6 }
0x1c87   : > { %6898 = vmatpush3.bf16.msra.mxu0 %v7188_v40 }
0x1c88   : > { %6899 = vmatprep.subr.bf16.mxu0 %v7189_v24 }
0x1c89   : > { %5112 = vadd.xlane.f32.xlu0 %v5106_v46 }
0x1c8b   : > { %6900 = vmatpush3.bf16.msra.mxu0 %v7189_v24 }
0x1c8c   : > { %6901 = vmatprep.subr.bf16.mxu0 %v7190_v0 }
0x1c8f   : > { %6902 = vmatpush3.bf16.msra.mxu0 %v7190_v0 }
0x1c90   : > { %6903 = vmatprep.subr.bf16.mxu0 %v7191_v17 }
0x1c93   : > { %6904 = vmatpush3.bf16.msra.mxu0 %v7191_v17 }
0x1c94   : > { %6905 = vmatprep.subr.bf16.mxu0 %v7192_v1 }
0x1c97   : > { %6906 = vmatpush3.bf16.msra.mxu0 %v7192_v1 }
0x1c98   : > { %6907 = vmatprep.subr.bf16.mxu0 %v7193_v4 }
0x1c9b   : > { %6908 = vmatpush3.bf16.msra.mxu0 %v7193_v4 }
0x1c9c   : > { %6909 = vmatprep.subr.bf16.mxu0 %v7194_v42 }
0x1c9f   : > { %6910 = vmatpush3.bf16.msra.mxu0 %v7194_v42 }
0x1d0a   : > { %v5109_v8 = vpop.xlane.xlu1 %5108 }
0x1d0b   : > { %v5116_v14 = vmul.f32 0.0078125, %v5109_v8 }
0x1d0d   : > { %v5120_v38 = vadd.f32 1e-06, %v5116_v14 }
0x1d0e   : > { %v5115_v18 = vpop.xlane.xlu1 %5114  ;;  %v5111_v35 = vpop.xlane.xlu0 %5110 }
0x1d0f   : > { %v5119_v19 = vmul.f32 0.0078125, %v5115_v18  ;;  %v5117_v20 = vmul.f32 0.0078125, %v5111_v35  ;;  %7379 = vrsqrt.f32 %v5120_v38 }
0x1d11   : > { %v5123_v52 = vadd.f32 1e-06, %v5119_v19  ;;  %v5121_v31 = vadd.f32 1e-06, %v5117_v20 }
0x1d12   : > { %v5113_v16 = vpop.xlane.xlu0 %5112 }
0x1d13   : > { %7381 = vrsqrt.f32 %v5123_v52  ;;  %v5118_v62 = vmul.f32 0.0078125, %v5113_v16 }
0x1d14   : > { %7383 = vrsqrt.f32 %v5121_v31 }
0x1d15   : > { %v5122_v26 = vadd.f32 1e-06, %v5118_v62 }
0x1d17   : > { %7385 = vrsqrt.f32 %v5122_v26 }
0x1d1c   : > { %v7380_v47 = vpop.eup %7379 }
0x1d1d   : > { %v5128_v9 = vmul.f32 %v7380_v47, %v8921_v34 }
0x1d1f   : > { %v5136_v29 = vmul.f32 %v5135_v21, %v5128_v9 }
0x1d20   : > { %v7382_v54 = vpop.eup %7381 }
0x1d21   : > { %v7384_v48 = vpop.eup %7383  ;;  %v5131_v2 = vmul.f32 %v7382_v54, %v8925_v57 }
0x1d22   : > { %v5129_v22 = vmul.f32 %v7384_v48, %v8930_v27 }
0x1d23   : > { %v5139_v30 = vmul.f32 %v5135_v21, %v5131_v2 }
0x1d24   : > { %v7386_v28 = vpop.eup %7385  ;;  %v5137_v33 = vmul.f32 %v5135_v21, %v5129_v22 }
0x1d25   : > { %v5130_v10 = vmul.f32 %v7386_v28, %v8933_v11 }
0x1d26   : > { %v5140_v13 = vpack.c.bf16 %v5137_v33, %v5136_v29 }
0x1d27   : > { %v5138_v55 = vmul.f32 %v5135_v21, %v5130_v10 }
0x1d28   : > { %6911 = vmatprep.mubr.bf16.mxu0 %v5140_v13 }
0x1d29   : > { %v5141_v7 = vpack.c.bf16 %v5139_v30, %v5138_v55  ;;  %v5315_v30 = vld [vmem:[%s1362_s19] sm:$0x1]  ;;  %s9160_s19 = sld [smem:[#allocation44_spill]] (!%p6269_p3) }
0x1d2b   : > { %6912 = vmatmul.mubr.bf16.vlgmr.msra.gmra.mxu0 %v5141_v7  ;;  %v5316_v7 = vunpack.c.l.bf16 %v5315_v30 }
0x1d2d   : > { %v5320_v5 = vrot.slane %v5316_v7, %v8184_v56 }
0x1deb   : > { %v6913_v41 = vpop.f32.mrf.mxu0 }
0x1dec   : > { %v5255_v50 = vadd.f32 %v6913_v41, %v5163_v49 }
0x1ded   : > { %v5246_v60 = vpop.f32.mrf.mxu0 }
0x1dee   : > { %v5267_v37 = vmul.f32 0.044715, %v5255_v50  ;;  %v5247_v44 = vadd.f32 %v5246_v60, %v5163_v49  ;;  %v5263_v2 = vmul.f32 0.5, %v5255_v50 }
0x1def   : > { %v6914_v36 = vpop.f32.mrf.mxu0 }
0x1df0   : > { %v5271_v53 = vmul.f32 %v5267_v37, %v5255_v50  ;;  %v5265_v63 = vmul.f32 0.044715, %v5247_v44  ;;  %v5258_v58 = vadd.f32 %v6914_v36, %v5163_v49  ;;  %v5261_v21 = vmul.f32 0.5, %v5247_v44 }
0x1df1   : > { %v5249_v6 = vpop.f32.mrf.mxu0 }
0x1df2   : > { %v5275_v46 = vmul.f32 %v5271_v53, %v5255_v50  ;;  %v5269_v39 = vmul.f32 %v5265_v63, %v5247_v44  ;;  %v5268_v40 = vmul.f32 0.044715, %v5258_v58  ;;  %v5250_v24 = vadd.f32 %v5249_v6, %v5163_v49 }
0x1df3   : > { %v5264_v54 = vmul.f32 0.5, %v5258_v58 }
0x1df4   : > { %v5279_v0 = vadd.f32 %v5275_v46, %v5255_v50  ;;  %v5273_v17 = vmul.f32 %v5269_v39, %v5247_v44  ;;  %v5272_v1 = vmul.f32 %v5268_v40, %v5258_v58  ;;  %v5266_v4 = vmul.f32 0.044715, %v5250_v24 }
0x1df5   : > { %v5262_v48 = vmul.f32 0.5, %v5250_v24 }
0x1df6   : > { %v5276_v42 = vmul.f32 %v5272_v1, %v5258_v58  ;;  %v5270_v8 = vmul.f32 %v5266_v4, %v5250_v24  ;;  %v5277_v14 = vadd.f32 %v5273_v17, %v5247_v44  ;;  %v5283_v38 = vmul.f32 0.7978846, %v5279_v0 }
0x1df8   : > { %v5280_v18 = vadd.f32 %v5276_v42, %v5258_v58  ;;  %v5274_v35 = vmul.f32 %v5270_v8, %v5250_v24  ;;  %v5281_v19 = vmul.f32 0.7978846, %v5277_v14 }
0x1dfa   : > { %v5284_v20 = vmul.f32 0.7978846, %v5280_v18  ;;  %v5278_v52 = vadd.f32 %v5274_v35, %v5250_v24  ;;  %7387 = vtanh.f32 %v5281_v19 }
0x1dfb   : > { %7389 = vtanh.f32 %v5283_v38 }
0x1dfc   : > { %7391 = vtanh.f32 %v5284_v20  ;;  %v5282_v31 = vmul.f32 0.7978846, %v5278_v52 }
0x1dfe   : > { %7393 = vtanh.f32 %v5282_v31 }
0x1e07   : > { %v7388_v16 = vpop.eup %7387 }
0x1e08   : > { %v7390_v62 = vpop.eup %7389  ;;  %v5289_v45 = vadd.f32 1.0, %v7388_v16 }
0x1e09   : > { %v7392_v26 = vpop.eup %7391  ;;  %v5291_v9 = vadd.f32 1.0, %v7390_v62 }
0x1e0a   : > { %v5292_v61 = vadd.f32 1.0, %v7392_v26  ;;  %v5293_v29 = vmul.f32 %v5289_v45, %v5261_v21 }
0x1e0b   : > { %v7394_v47 = vpop.eup %7393  ;;  %v5295_v10 = vmul.f32 %v5291_v9, %v5263_v2 }
0x1e0c   : > { %v5290_v22 = vadd.f32 1.0, %v7394_v47  ;;  %v5296_v28 = vmul.f32 %v5292_v61, %v5264_v54 }
0x1e0e   : > { %v5294_v33 = vmul.f32 %v5290_v22, %v5262_v48  ;;  %v5298_v55 = vpack.c.bf16 %v5296_v28, %v5295_v10 }
0x1e10   : > { %v5297_v13 = vpack.c.bf16 %v5294_v33, %v5293_v29 }
0x1e12   : > { %6931 = vmatprep.mubr.bf16.mxu1 %v5297_v13 }
0x1e13   : > { %6932 = vmatmul.mubr.bf16.vlgmr.msra.gmra.mxu1 %v5298_v55 }
0x1ed3   : > { %v6933_v23 = vpop.f32.mrf.mxu1 }
0x1ed4   : > { %v5412_v12 = vadd.f32 %v6933_v23, %v5320_v5 }
0x1ed5   : > { %v5403_v51 = vpop.f32.mrf.mxu1 }
0x1ed6   : > { %v8974_v59 = vadd.f32 %v5412_v12, %v8933_v11  ;;  %v5404_v15 = vadd.f32 %v5403_v51, %v5320_v5 }
0x1ed7   : > { %v6934_v43 = vpop.f32.mrf.mxu1 }
0x1ed8   : > { %5424 = vst [vmem:[#allocation2 + $0x18] sm:$0xff] %v8974_v59  ;;  %v8978_v25 = vadd.f32 %v5404_v15, %v8921_v34  ;;  %v5415_v32 = vadd.f32 %v6934_v43, %v5320_v5 }
0x1ed9   : > { %v5406_v3 = vpop.f32.mrf.mxu1 }
0x1eda   : > { %5422 = vst [vmem:[#allocation2 + $0x10] sm:$0xff] %v8978_v25  ;;  %v8982_v49 = vadd.f32 %v5415_v32, %v8925_v57  ;;  %v5407_v41 = vadd.f32 %v5406_v3, %v5320_v5  ;;  %5429 = sbr.rel (%p6269_p3) target bundleno = 8509 (0x213d), region = 176 }
0x1edc   : > { %5425 = vst [vmem:[#allocation2 + $0x8] sm:$0xff] %v8982_v49  ;;  %v5419_v11 = vadd.f32 %v5407_v41, %v8930_v27 }
0x1ede   : > { %5423 = vst [vmem:[#allocation2] sm:$0xff] %v5419_v11 }
0x1edf   : > { %v5434_v34 = vmul.f32 %v8974_v59, %v8974_v59  ;;  %v5432_v50 = vmul.f32 %v8978_v25, %v8978_v25  ;;  %v7407_v57 = vld [vmem:[%s9160_s19 + $0x38] sm:$0xff]   ;;  %v5435_v27 = vmul.f32 %v8982_v49, %v8982_v49  ;;  %v5433_v60 = vmul.f32 %v5419_v11, %v5419_v11  ;;  %v7408_v37 = vld [vmem:[%s9160_s19 + $0x30] sm:$0xff]   ;;  %v7409_v44 = vld [vmem:[%s9160_s19 + $0x28] sm:$0xff]  }
0x1ee0   : > { %6935 = vmatprep.subr.bf16.mxu0 %v7407_v57  ;;  %v7410_v36 = vld [vmem:[%s9160_s19 + $0x20] sm:$0xff]   ;;  %v7411_v53 = vld [vmem:[%s9160_s19 + $0x18] sm:$0xff]   ;;  %v7412_v63 = vld [vmem:[%s9160_s19 + $0x10] sm:$0xff]  }
0x1ee1   : > { %5440 = vadd.xlane.f32.xlu1 %v5434_v34  ;;  %5436 = vadd.xlane.f32.xlu0 %v5432_v50  ;;  %v7413_v58 = vld [vmem:[%s9160_s19 + $0x8] sm:$0xff]   ;;  %v7414_v6 = vld [vmem:[%s9160_s19] sm:$0xff]   ;;  %v7416_v28 = vld [vmem:[#allocation10 + $0x30] sm:$0xff]  }
0x1ee2   : > { %6936 = vmatpush3.bf16.msra.mxu0 %v7407_v57  ;;  %v5430_v18 = vld [vmem:[%s9161_s0] sm:$0x1]  ;;  %v7417_v29 = vld [vmem:[#allocation10 + $0x28] sm:$0xff]   ;;  %v7418_v33 = vld [vmem:[#allocation10 + $0x20] sm:$0xff]  }
0x1ee3   : > { %6937 = vmatprep.subr.bf16.mxu0 %v7408_v37  ;;  %v5431_v35 = vunpack.c.l.bf16 %v5430_v18  ;;  %v7415_v2 = vld [vmem:[#allocation10 + $0x38] sm:$0xff]   ;;  %v7420_v13 = vld [vmem:[#allocation10 + $0x10] sm:$0xff]   ;;  %v7421_v55 = vld [vmem:[#allocation10 + $0x8] sm:$0xff]  }
0x1ee4   : > { %6955 = vmatprep.subr.bf16.mxu1 %v7415_v2  ;;  %v7419_v10 = vld [vmem:[#allocation10 + $0x18] sm:$0xff]   ;;  %v7422_v30 = vld [vmem:[#allocation10] sm:$0xff]  }
0x1ee5   : > { %5442 = vadd.xlane.f32.xlu1 %v5435_v27  ;;  %5438 = vadd.xlane.f32.xlu0 %v5433_v60  ;;  %v5463_v31 = vrot.slane %v5431_v35, %v8184_v56  ;;  %v5486_v7 = vld [vmem:[#allocation8] sm:$0x1] }
0x1ee6   : > { %6938 = vmatpush3.bf16.msra.mxu0 %v7408_v37  ;;  %6956 = vmatpush3.bf16.msra.mxu1 %v7415_v2  ;;  %v5487_v5 = vunpack.c.l.bf16 %v5486_v7 }
0x1ee7   : > { %6939 = vmatprep.subr.bf16.mxu0 %v7409_v44  ;;  %6957 = vmatprep.subr.bf16.mxu1 %v7416_v28 }
0x1ee8   : > { %v5491_v23 = vrot.slane %v5487_v5, %v8184_v56 }
0x1eea   : > { %6940 = vmatpush3.bf16.msra.mxu0 %v7409_v44  ;;  %6958 = vmatpush3.bf16.msra.mxu1 %v7416_v28 }
0x1eeb   : > { %6941 = vmatprep.subr.bf16.mxu0 %v7410_v36  ;;  %6959 = vmatprep.subr.bf16.mxu1 %v7417_v29 }
0x1eee   : > { %6942 = vmatpush3.bf16.msra.mxu0 %v7410_v36  ;;  %6960 = vmatpush3.bf16.msra.mxu1 %v7417_v29 }
0x1eef   : > { %6943 = vmatprep.subr.bf16.mxu0 %v7411_v53  ;;  %6961 = vmatprep.subr.bf16.mxu1 %v7418_v33 }
0x1ef2   : > { %6944 = vmatpush3.bf16.msra.mxu0 %v7411_v53  ;;  %6962 = vmatpush3.bf16.msra.mxu1 %v7418_v33 }
0x1ef3   : > { %6945 = vmatprep.subr.bf16.mxu0 %v7412_v63  ;;  %6963 = vmatprep.subr.bf16.mxu1 %v7419_v10 }
0x1ef6   : > { %6946 = vmatpush3.bf16.msra.mxu0 %v7412_v63  ;;  %6964 = vmatpush3.bf16.msra.mxu1 %v7419_v10 }
0x1ef7   : > { %6947 = vmatprep.subr.bf16.mxu0 %v7413_v58  ;;  %6965 = vmatprep.subr.bf16.mxu1 %v7420_v13 }
0x1efa   : > { %6948 = vmatpush3.bf16.msra.mxu0 %v7413_v58  ;;  %6966 = vmatpush3.bf16.msra.mxu1 %v7420_v13 }
0x1efb   : > { %6949 = vmatprep.subr.bf16.mxu0 %v7414_v6  ;;  %6967 = vmatprep.subr.bf16.mxu1 %v7421_v55 }
0x1efe   : > { %6950 = vmatpush3.bf16.msra.mxu0 %v7414_v6  ;;  %6968 = vmatpush3.bf16.msra.mxu1 %v7421_v55 }
0x1eff   : > { %6969 = vmatprep.subr.bf16.mxu1 %v7422_v30 }
0x1f02   : > { %6970 = vmatpush3.bf16.msra.mxu1 %v7422_v30 }
0x1f6a   : > { %v5441_v46 = vpop.xlane.xlu1 %5440  ;;  %v5437_v39 = vpop.xlane.xlu0 %5436 }
0x1f6b   : > { %v5446_v40 = vmul.f32 0.0078125, %v5441_v46  ;;  %v5444_v24 = vmul.f32 0.0078125, %v5437_v39 }
0x1f6d   : > { %v5450_v0 = vadd.f32 1e-06, %v5446_v40  ;;  %v5448_v17 = vadd.f32 1e-06, %v5444_v24 }
0x1f6e   : > { %v5443_v1 = vpop.xlane.xlu1 %5442  ;;  %v5439_v4 = vpop.xlane.xlu0 %5438 }
0x1f6f   : > { %7423 = vrsqrt.f32 %v5450_v0  ;;  %v5447_v42 = vmul.f32 0.0078125, %v5443_v1  ;;  %v5445_v8 = vmul.f32 0.0078125, %v5439_v4 }
0x1f70   : > { %7425 = vrsqrt.f32 %v5448_v17 }
0x1f71   : > { %v5451_v14 = vadd.f32 1e-06, %v5447_v42  ;;  %v5449_v38 = vadd.f32 1e-06, %v5445_v8 }
0x1f73   : > { %7427 = vrsqrt.f32 %v5451_v14 }
0x1f74   : > { %7429 = vrsqrt.f32 %v5449_v38 }
0x1f7c   : > { %v7424_v19 = vpop.eup %7423 }
0x1f7d   : > { %v7426_v20 = vpop.eup %7425  ;;  %v5458_v52 = vmul.f32 %v7424_v19, %v8974_v59 }
0x1f7e   : > { %v5456_v62 = vmul.f32 %v7426_v20, %v8978_v25 }
0x1f7f   : > { %v5466_v47 = vmul.f32 %v5463_v31, %v5458_v52 }
0x1f80   : > { %v7428_v16 = vpop.eup %7427  ;;  %v5464_v9 = vmul.f32 %v5463_v31, %v5456_v62 }
0x1f81   : > { %v7430_v26 = vpop.eup %7429  ;;  %v5459_v45 = vmul.f32 %v7428_v16, %v8982_v49 }
0x1f82   : > { %v5457_v61 = vmul.f32 %v7430_v26, %v5419_v11 }
0x1f83   : > { %v5467_v54 = vmul.f32 %v5463_v31, %v5459_v45 }
0x1f84   : > { %v5465_v21 = vmul.f32 %v5463_v31, %v5457_v61 }
0x1f85   : > { %v5469_v48 = vpack.c.bf16 %v5467_v54, %v5466_v47  ;;  %v5643_v47 = vld [vmem:[#allocation11] sm:$0x1] }
0x1f86   : > { %v5468_v22 = vpack.c.bf16 %v5465_v21, %v5464_v9  ;;  %v5644_v54 = vunpack.c.l.bf16 %v5643_v47 }
0x1f88   : > { %6951 = vmatprep.mubr.bf16.mxu0 %v5468_v22  ;;  %v5648_v21 = vrot.slane %v5644_v54, %v8184_v56 }
0x1f89   : > { %6952 = vmatmul.mubr.bf16.vlgmr.msra.gmra.mxu0 %v5469_v48 }
0x2049   : > { %v6953_v12 = vpop.f32.mrf.mxu0 }
0x204a   : > { %v5583_v51 = vadd.f32 %v6953_v12, %v5491_v23 }
0x204b   : > { %v5574_v59 = vpop.f32.mrf.mxu0 }
0x204c   : > { %v5595_v15 = vmul.f32 0.044715, %v5583_v51  ;;  %v5575_v43 = vadd.f32 %v5574_v59, %v5491_v23  ;;  %v5591_v52 = vmul.f32 0.5, %v5583_v51 }
0x204d   : > { %v6954_v25 = vpop.f32.mrf.mxu0 }
0x204e   : > { %v5599_v32 = vmul.f32 %v5595_v15, %v5583_v51  ;;  %v5593_v3 = vmul.f32 0.044715, %v5575_v43  ;;  %v5586_v49 = vadd.f32 %v6954_v25, %v5491_v23  ;;  %v5589_v35 = vmul.f32 0.5, %v5575_v43 }
0x204f   : > { %v5577_v41 = vpop.f32.mrf.mxu0 }
0x2050   : > { %v5603_v11 = vmul.f32 %v5599_v32, %v5583_v51  ;;  %v5596_v34 = vmul.f32 0.044715, %v5586_v49  ;;  %v5578_v50 = vadd.f32 %v5577_v41, %v5491_v23  ;;  %v5597_v57 = vmul.f32 %v5593_v3, %v5575_v43 }
0x2051   : > { %v5592_v38 = vmul.f32 0.5, %v5586_v49 }
0x2052   : > { %v5600_v27 = vmul.f32 %v5596_v34, %v5586_v49  ;;  %v5594_v60 = vmul.f32 0.044715, %v5578_v50  ;;  %v5601_v37 = vmul.f32 %v5597_v57, %v5575_v43  ;;  %v5607_v44 = vadd.f32 %v5603_v11, %v5583_v51 }
0x2053   : > { %v5590_v19 = vmul.f32 0.5, %v5578_v50 }
0x2054   : > { %v5604_v36 = vmul.f32 %v5600_v27, %v5586_v49  ;;  %v5598_v53 = vmul.f32 %v5594_v60, %v5578_v50  ;;  %v5605_v63 = vadd.f32 %v5601_v37, %v5575_v43  ;;  %v5611_v58 = vmul.f32 0.7978846, %v5607_v44 }
0x2056   : > { %v5602_v6 = vmul.f32 %v5598_v53, %v5578_v50  ;;  %v5609_v46 = vmul.f32 0.7978846, %v5605_v63  ;;  %v5608_v39 = vadd.f32 %v5604_v36, %v5586_v49 }
0x2058   : > { %v5606_v40 = vadd.f32 %v5602_v6, %v5578_v50  ;;  %7431 = vtanh.f32 %v5609_v46  ;;  %v5612_v24 = vmul.f32 0.7978846, %v5608_v39 }
0x2059   : > { %7433 = vtanh.f32 %v5611_v58 }
0x205a   : > { %v5610_v0 = vmul.f32 0.7978846, %v5606_v40  ;;  %7435 = vtanh.f32 %v5612_v24 }
0x205c   : > { %7437 = vtanh.f32 %v5610_v0 }
0x2065   : > { %v7432_v17 = vpop.eup %7431 }
0x2066   : > { %v7434_v1 = vpop.eup %7433  ;;  %v5617_v42 = vadd.f32 1.0, %v7432_v17 }
0x2067   : > { %v7436_v4 = vpop.eup %7435  ;;  %v5619_v18 = vadd.f32 1.0, %v7434_v1 }
0x2068   : > { %v5620_v8 = vadd.f32 1.0, %v7436_v4  ;;  %v5621_v16 = vmul.f32 %v5617_v42, %v5589_v35 }
0x2069   : > { %v7438_v14 = vpop.eup %7437  ;;  %v5623_v26 = vmul.f32 %v5619_v18, %v5591_v52 }
0x206a   : > { %v5618_v20 = vadd.f32 1.0, %v7438_v14  ;;  %v5624_v31 = vmul.f32 %v5620_v8, %v5592_v38 }
0x206c   : > { %v5622_v62 = vmul.f32 %v5618_v20, %v5590_v19  ;;  %v5626_v61 = vpack.c.bf16 %v5624_v31, %v5623_v26 }
0x206e   : > { %v5625_v45 = vpack.c.bf16 %v5622_v62, %v5621_v16 }
0x2070   : > { %6971 = vmatprep.mubr.bf16.mxu1 %v5625_v45 }
0x2071   : > { %6972 = vmatmul.mubr.bf16.vlgmr.msra.gmra.mxu1 %v5626_v61 }
0x2131   : > { %v6973_v9 = vpop.f32.mrf.mxu1 }
0x2132   : > { %v5740_v2 = vadd.f32 %v6973_v9, %v5648_v21 }
0x2133   : > { %v5731_v48 = vpop.f32.mrf.mxu1 }
0x2134   : > { %v5732_v33 = vadd.f32 %v5731_v48, %v5648_v21 }
0x2135   : > { %v6974_v22 = vpop.f32.mrf.mxu1 }
0x2136   : > { %v5743_v28 = vadd.f32 %v6974_v22, %v5648_v21 }
0x2137   : > { %v5734_v29 = vpop.f32.mrf.mxu1 }
0x2138   : > { %v6319_v10 = vpack.c.bf16 %v5743_v28, %v5740_v2  ;;  %v5735_v13 = vadd.f32 %v5734_v29, %v5648_v21 }
0x213a   : > { %6322 = vst [vmem:[%s9162_s22 + $0x8] sm:$0xff] %v6319_v10   ;;  %v6314_v55 = vpack.c.bf16 %v5735_v13, %v5732_v33 }
0x213c   : > { %6315 = vst [vmem:[%s9163_s18] sm:$0xff] %v6314_v55  }
0x213d PF: > { %s9164_s28 = sld [smem:[#allocation51_spill]] }
0x213e   : > { %s9165_s22 = sld [smem:[#allocation49_spill]] }
0x213f   : > { %s9166_s23 = sld [smem:[#allocation50_spill]] }
0x2140   : > { %s9167_s26 = sld [smem:[#allocation52_spill]] }
0x2143   : > { %p78_p6 = scmp.ge.s32.totalorder %s9164_s28, 4  }
0x2145   :  { %80 = sbr.rel (!%p78_p6) target bundleno = 78 (0x4e), region = 311 }
0x214a   :  { %5777 = vsyncpa [#allocation4], 1 }
0x214b   :  { %5779 = vsyncpa [#allocation4 + $0x1], 1 }
0x214c   :  { %5780 = vsyncpa [#allocation6], 1 }
0x214d   :  { %5782 = vsyncpa [#allocation6 + $0x1], 1 }
0x214e   :  { %5783 = vsyncpa [#allocation9], 1 }
0x214f   :  { %5784 = vsyncpa [#allocation12], 1 }

</bundles_post_ra>
